<compile_context>
chip_gen: v7x
topology: tpu7x:2x2x1
jax: 0.10.0
libtpu: 0.0.40
codegen_flags: <defaults>
</compile_context>

<pallas_src>
import functools
import math

import jax
import jax.numpy as jnp
from jax.experimental import pallas as pl
from jax.experimental.pallas import tpu as pltpu


def _layernorm(x, g, b, eps=1e-6):
    mu = jnp.mean(x, axis=-1, keepdims=True)
    var = jnp.mean((x - mu) ** 2, axis=-1, keepdims=True)
    return (x - mu) * jax.lax.rsqrt(var + eps) * g + b


def _gelu_tanh(x):
    # tanh-form GELU: one EUP tanh instead of ~10 VALU ops + exp per element.
    c = math.sqrt(2.0 / math.pi)
    return 0.5 * x * (1.0 + jnp.tanh(c * (x + 0.044715 * x * x * x)))


def bert4rec_kernel(x_ref, keep_ref,
                    emb_g_ref, emb_b_ref,
                    wq_ref, wk_ref, wv_ref, wo_ref,
                    ln1_g_ref, ln1_b_ref,
                    w1_ref, b1_ref, w2_ref, b2_ref,
                    ln2_g_ref, ln2_b_ref,
                    out_w_ref, out_b_ref,
                    o_ref,
                    x_vmem,
                    *, num_layers, hidden_units, bt, seq_len):
    H = hidden_units
    L = seq_len
    rows = bt * L

    # ---- transformer stack: run once per batch tile (at vocab tile 0) ----
    @pl.when(pl.program_id(1) == 0)
    def _stack():
        x = x_ref[...].reshape(rows, H).astype(jnp.float32)   # [rows, H]
        keep = keep_ref[...]                                   # [bt, 1, L] 0/1
        neg = (1.0 - keep) * jnp.float32(-1e9)                 # hoisted mask

        # embedding LayerNorm (dropout is identity at inference)
        x = _layernorm(x, emb_g_ref[...], emb_b_ref[...])

        scale = jnp.float32(1.0 / math.sqrt(H))
        for l in range(num_layers):       # static unroll, num_layers is small
            # ----- multi-head attention (num_heads == 1, per reference) -----
            xb = x.astype(jnp.bfloat16)
            q = jnp.dot(xb, wq_ref[l], preferred_element_type=jnp.float32)
            k = jnp.dot(xb, wk_ref[l], preferred_element_type=jnp.float32)
            v = jnp.dot(xb, wv_ref[l], preferred_element_type=jnp.float32)
            q3 = (q * scale).astype(jnp.bfloat16).reshape(bt, L, H)
            k3 = k.astype(jnp.bfloat16).reshape(bt, L, H)
            v3 = v.astype(jnp.bfloat16).reshape(bt, L, H)
            # transposed contraction handled natively by the MXU (no k.T)
            s = jnp.einsum("bqd,bkd->bqk", q3, k3,
                           preferred_element_type=jnp.float32)    # [bt, L, L]
            # masked_fill(mask == 0, -1e9): mul+add with hoisted mask tensors
            s = s * keep + neg
            s = s - jnp.max(s, axis=-1, keepdims=True)
            e = jnp.exp(s)
            attn = e * pl.reciprocal(jnp.sum(e, axis=-1, keepdims=True),
                                     approx=True)
            ctx = jnp.einsum("bqk,bkd->bqd", attn.astype(jnp.bfloat16), v3,
                             preferred_element_type=jnp.float32)
            ctx = ctx.reshape(rows, H).astype(jnp.bfloat16)
            o = jnp.dot(ctx, wo_ref[l], preferred_element_type=jnp.float32)
            x = _layernorm(o + x, ln1_g_ref[l], ln1_b_ref[l])

            # ----- position-wise feed-forward -----
            h = jnp.dot(x.astype(jnp.bfloat16), w1_ref[l],
                        preferred_element_type=jnp.float32) + b1_ref[l]
            h = _gelu_tanh(h)
            f = jnp.dot(h.astype(jnp.bfloat16), w2_ref[l],
                        preferred_element_type=jnp.float32) + b2_ref[l]
            x = _layernorm(f + x, ln2_g_ref[l], ln2_b_ref[l])

        x_vmem[...] = x.astype(jnp.bfloat16)   # reused by all vocab tiles

    # ---- vocab-tiled output projection (every grid step) ----
    logits = jnp.dot(x_vmem[...], out_w_ref[...],
                     preferred_element_type=jnp.float32) + out_b_ref[...]
    o_ref[...] = logits.reshape(bt, L, -1)


def bert4rec_forward(log_seqs, params, *, num_layers, hidden_units,
                     bt=None, tv=None):
    B, L = log_seqs.shape
    H = hidden_units
    V = params["out_w"].shape[-1]    # num_item + 1

    # Batch tile: aim for ~256 matmul rows per grid step.
    if bt is None:
        target = max(1, 256 // L)
        bt = 1
        for cand in range(1, B + 1):
            if B % cand == 0 and cand <= target:
                bt = cand
    # Vocab tile: largest 128-multiple divisor (keeps out_w VMEM-safe on v7x).
    if tv is None:
        tv = V
        for cand in (2048, 1024, 512, 256, 128):
            if V % cand == 0:
                tv = cand
                break
    assert B % bt == 0 and V % tv == 0

    # Glue (embedding gathers) in plain JAX; the transformer stack is in-kernel.
    seqs = jnp.take(params["item_emb"], log_seqs, axis=0)            # [B, L, H]
    seqs = seqs + params["pos_emb"][None, :L, :]
    key_keep = (log_seqs > 0).astype(jnp.float32).reshape(B, 1, L)   # 0/1 mask

    weight_names = ["emb_g", "emb_b", "wq", "wk", "wv", "wo",
                    "ln1_g", "ln1_b", "w1", "b1", "w2", "b2",
                    "ln2_g", "ln2_b"]
    weights = [params[n] for n in weight_names]

    def const_spec(arr):
        nd = arr.ndim
        return pl.BlockSpec(arr.shape, lambda b, v, _nd=nd: (0,) * _nd)

    grid = (B // bt, V // tv)
    in_specs = ([pl.BlockSpec((bt, L, H), lambda b, v: (b, 0, 0)),
                 pl.BlockSpec((bt, 1, L), lambda b, v: (b, 0, 0))]
                + [const_spec(w) for w in weights]
                + [pl.BlockSpec((H, tv), lambda b, v: (0, v)),
                   pl.BlockSpec((1, tv), lambda b, v: (0, v))])
    out_spec = pl.BlockSpec((bt, L, tv), lambda b, v: (b, 0, v))

    kernel = functools.partial(bert4rec_kernel,
                               num_layers=num_layers, hidden_units=H,
                               bt=bt, seq_len=L)

    return pl.pallas_call(
        kernel,
        out_shape=jax.ShapeDtypeStruct((B, L, V), jnp.float32),
        grid=grid,
        in_specs=in_specs,
        out_specs=out_spec,
        scratch_shapes=[pltpu.VMEM((bt * L, H), jnp.bfloat16)],
        compiler_params=pltpu.CompilerParams(
            dimension_semantics=("parallel", "arbitrary"),
            vmem_limit_bytes=64 * 1024 * 1024),
    )(seqs, key_keep, *weights, params["out_w"], params["out_b"])


def init_params(key, num_item, hidden_units, num_layers, max_len):
    H = hidden_units
    V = num_item + 1
    ks = jax.random.split(key, 12)
    bf = jnp.bfloat16

    def nrm(k, shape, scale=0.02, dtype=jnp.float32):
        return (scale * jax.random.normal(k, shape)).astype(dtype)

    item_emb = nrm(ks[0], (num_item + 2, H), 1.0)
    item_emb = item_emb.at[0].set(0.0)          # padding_idx = 0
    pos_emb = nrm(ks[1], (max_len, H), 1.0)

    return {
        "item_emb": item_emb,
        "pos_emb": pos_emb,
        "emb_g": jnp.ones((1, H), jnp.float32),
        "emb_b": jnp.zeros((1, H), jnp.float32),
        # per-layer stacked weights (leading dim = num_layers); matmul weights
        # stored in bf16 (halves HBM traffic / VMEM; accumulation stays f32)
        "wq": nrm(ks[2], (num_layers, H, H), dtype=bf),
        "wk": nrm(ks[3], (num_layers, H, H), dtype=bf),
        "wv": nrm(ks[4], (num_layers, H, H), dtype=bf),
        "wo": nrm(ks[5], (num_layers, H, H), dtype=bf),
        "ln1_g": jnp.ones((num_layers, 1, H), jnp.float32),
        "ln1_b": jnp.zeros((num_layers, 1, H), jnp.float32),
        "w1": nrm(ks[6], (num_layers, H, 4 * H), dtype=bf),
        "b1": nrm(ks[7], (num_layers, 1, 4 * H)),
        "w2": nrm(ks[8], (num_layers, 4 * H, H), dtype=bf),
        "b2": nrm(ks[9], (num_layers, 1, H)),
        "ln2_g": jnp.ones((num_layers, 1, H), jnp.float32),
        "ln2_b": jnp.zeros((num_layers, 1, H), jnp.float32),
        "out_w": nrm(ks[10], (H, V), dtype=bf),
        "out_b": nrm(ks[11], (1, V)),
    }


if __name__ == "__main__":
    # Small config consistent with the module: L = max_len = 8, H = 32,
    # num_heads = 1 (required by the reference .view), num_layers = 2.
    # num_item = 255 -> vocab V = 256 so the 128-wide vocab tiling is
    # exercised; B = 8 with bt = 4 gives a 2-block parallel batch axis.
    B, L, H = 8, 8, 32
    num_layers = 2
    num_item, max_len = 255, 8

    key = jax.random.PRNGKey(0)
    pkey, dkey = jax.random.split(key)
    params = init_params(pkey, num_item, H, num_layers, max_len)

    log_seqs = jax.random.randint(dkey, (B, L), 0, num_item + 2, dtype=jnp.int32)
    log_seqs = log_seqs.at[:, 0].set(0)   # padding positions exercise the mask

    out = bert4rec_forward(log_seqs, params, num_layers=num_layers,
                           hidden_units=H, bt=4, tv=128)
    jax.block_until_ready(out)
    assert out.shape == (B, L, num_item + 1)
    assert out.dtype == jnp.float32
    print("KERNEL_OK")
</pallas_src>

<mosaic_0001>
module attributes {stable_mosaic.version = 11 : i64} {
  func.func @bert4rec_kernel(%arg0: i32, %arg1: i32, %arg2: memref<4x8x32xf32, #tpu.memory_space<vmem>>, %arg3: memref<4x1x8xf32, #tpu.memory_space<vmem>>, %arg4: memref<1x32xf32, #tpu.memory_space<vmem>>, %arg5: memref<1x32xf32, #tpu.memory_space<vmem>>, %arg6: memref<2x32x32xbf16, #tpu.memory_space<vmem>>, %arg7: memref<2x32x32xbf16, #tpu.memory_space<vmem>>, %arg8: memref<2x32x32xbf16, #tpu.memory_space<vmem>>, %arg9: memref<2x32x32xbf16, #tpu.memory_space<vmem>>, %arg10: memref<2x1x32xf32, #tpu.memory_space<vmem>>, %arg11: memref<2x1x32xf32, #tpu.memory_space<vmem>>, %arg12: memref<2x32x128xbf16, #tpu.memory_space<vmem>>, %arg13: memref<2x1x128xf32, #tpu.memory_space<vmem>>, %arg14: memref<2x128x32xbf16, #tpu.memory_space<vmem>>, %arg15: memref<2x1x32xf32, #tpu.memory_space<vmem>>, %arg16: memref<2x1x32xf32, #tpu.memory_space<vmem>>, %arg17: memref<2x1x32xf32, #tpu.memory_space<vmem>>, %arg18: memref<32x128xbf16, #tpu.memory_space<vmem>>, %arg19: memref<1x128xf32, #tpu.memory_space<vmem>>, %arg20: memref<4x8x128xf32, #tpu.memory_space<vmem>>, %arg21: memref<32x32xbf16, #tpu.memory_space<vmem>>) attributes {dimension_semantics = [#tpu.dimension_semantics<parallel>, #tpu.dimension_semantics<arbitrary>], iteration_bounds = array<i64: 2, 2>, scalar_prefetch = 0 : i64, scratch_operands = 1 : i64, tpu.core_type = #tpu.core_type<tc>, window_params = [{transform_indices = @transform_0, window_bounds = array<i64: 4, 8, 32>}, {transform_indices = @transform_1, window_bounds = array<i64: 4, 1, 8>}, {pipeline_mode = #tpu.pipeline_mode<synchronous>, transform_indices = @transform_2, window_bounds = array<i64: 1, 32>}, {pipeline_mode = #tpu.pipeline_mode<synchronous>, transform_indices = @transform_3, window_bounds = array<i64: 1, 32>}, {pipeline_mode = #tpu.pipeline_mode<synchronous>, transform_indices = @transform_4, window_bounds = array<i64: 2, 32, 32>}, {pipeline_mode = #tpu.pipeline_mode<synchronous>, transform_indices = @transform_5, window_bounds = array<i64: 2, 32, 32>}, {pipeline_mode = #tpu.pipeline_mode<synchronous>, transform_indices = @transform_6, window_bounds = array<i64: 2, 32, 32>}, {pipeline_mode = #tpu.pipeline_mode<synchronous>, transform_indices = @transform_7, window_bounds = array<i64: 2, 32, 32>}, {pipeline_mode = #tpu.pipeline_mode<synchronous>, transform_indices = @transform_8, window_bounds = array<i64: 2, 1, 32>}, {pipeline_mode = #tpu.pipeline_mode<synchronous>, transform_indices = @transform_9, window_bounds = array<i64: 2, 1, 32>}, {pipeline_mode = #tpu.pipeline_mode<synchronous>, transform_indices = @transform_10, window_bounds = array<i64: 2, 32, 128>}, {pipeline_mode = #tpu.pipeline_mode<synchronous>, transform_indices = @transform_11, window_bounds = array<i64: 2, 1, 128>}, {pipeline_mode = #tpu.pipeline_mode<synchronous>, transform_indices = @transform_12, window_bounds = array<i64: 2, 128, 32>}, {pipeline_mode = #tpu.pipeline_mode<synchronous>, transform_indices = @transform_13, window_bounds = array<i64: 2, 1, 32>}, {pipeline_mode = #tpu.pipeline_mode<synchronous>, transform_indices = @transform_14, window_bounds = array<i64: 2, 1, 32>}, {pipeline_mode = #tpu.pipeline_mode<synchronous>, transform_indices = @transform_15, window_bounds = array<i64: 2, 1, 32>}, {transform_indices = @transform_16, window_bounds = array<i64: 32, 128>}, {transform_indices = @transform_17, window_bounds = array<i64: 1, 128>}, {transform_indices = @transform_18, window_bounds = array<i64: 4, 8, 128>}]} {
    %c0_i32 = arith.constant 0 : i32
    %0 = arith.cmpi eq, %arg1, %c0_i32 : i32
    %1 = arith.extui %0 : i1 to i32
    %c0_i32_0 = arith.constant 0 : i32
    %2 = arith.cmpi ne, %1, %c0_i32_0 : i32
    scf.if %2 {
      %c0_9 = arith.constant 0 : index
      %c0_10 = arith.constant 0 : index
      %c0_11 = arith.constant 0 : index
      %11 = vector.load %arg2[%c0_9, %c0_10, %c0_11] : memref<4x8x32xf32, #tpu.memory_space<vmem>>, vector<4x8x32xf32>
      %12 = vector.shape_cast %11 : vector<4x8x32xf32> to vector<32x32xf32>
      %c0_12 = arith.constant 0 : index
      %c0_13 = arith.constant 0 : index
      %c0_14 = arith.constant 0 : index
      %13 = vector.load %arg3[%c0_12, %c0_13, %c0_14] : memref<4x1x8xf32, #tpu.memory_space<vmem>>, vector<4x1x8xf32>
      %cst_15 = arith.constant 1.000000e+00 : f32
      %14 = vector.broadcast %cst_15 : f32 to vector<4x1x8xf32>
      %15 = arith.subf %14, %13 : vector<4x1x8xf32>
      %cst_16 = arith.constant -1.000000e+09 : f32
      %16 = vector.broadcast %cst_16 : f32 to vector<4x1x8xf32>
      %17 = arith.mulf %15, %16 : vector<4x1x8xf32>
      %c0_17 = arith.constant 0 : index
      %c0_18 = arith.constant 0 : index
      %18 = vector.load %arg4[%c0_17, %c0_18] : memref<1x32xf32, #tpu.memory_space<vmem>>, vector<1x32xf32>
      %c0_19 = arith.constant 0 : index
      %c0_20 = arith.constant 0 : index
      %19 = vector.load %arg5[%c0_19, %c0_20] : memref<1x32xf32, #tpu.memory_space<vmem>>, vector<1x32xf32>
      %cst_21 = arith.constant dense<0.000000e+00> : vector<32xf32>
      %20 = vector.multi_reduction <add>, %12, %cst_21 [1] : vector<32x32xf32> to vector<32xf32>
      %21 = vector.shape_cast %20 : vector<32xf32> to vector<32x1xf32>
      %cst_22 = arith.constant 3.200000e+01 : f32
      %22 = vector.broadcast %cst_22 : f32 to vector<32x1xf32>
      %23 = arith.divf %21, %22 : vector<32x1xf32>
      %24 = vector.broadcast %23 : vector<32x1xf32> to vector<32x32xf32>
      %25 = arith.subf %12, %24 : vector<32x32xf32>
      %26 = arith.mulf %25, %25 : vector<32x32xf32>
      %cst_23 = arith.constant dense<0.000000e+00> : vector<32xf32>
      %27 = vector.multi_reduction <add>, %26, %cst_23 [1] : vector<32x32xf32> to vector<32xf32>
      %28 = vector.shape_cast %27 : vector<32xf32> to vector<32x1xf32>
      %cst_24 = arith.constant 3.200000e+01 : f32
      %29 = vector.broadcast %cst_24 : f32 to vector<32x1xf32>
      %30 = arith.divf %28, %29 : vector<32x1xf32>
      %31 = vector.broadcast %23 : vector<32x1xf32> to vector<32x32xf32>
      %32 = arith.subf %12, %31 : vector<32x32xf32>
      %cst_25 = arith.constant 9.99999997E-7 : f32
      %33 = vector.broadcast %cst_25 : f32 to vector<32x1xf32>
      %34 = arith.addf %30, %33 : vector<32x1xf32>
      %35 = math.rsqrt %34 : vector<32x1xf32>
      %36 = vector.broadcast %35 : vector<32x1xf32> to vector<32x32xf32>
      %37 = arith.mulf %32, %36 : vector<32x32xf32>
      %38 = vector.broadcast %18 : vector<1x32xf32> to vector<32x32xf32>
      %39 = arith.mulf %37, %38 : vector<32x32xf32>
      %40 = vector.broadcast %19 : vector<1x32xf32> to vector<32x32xf32>
      %41 = arith.addf %39, %40 : vector<32x32xf32>
      %42 = arith.truncf %41 : vector<32x32xf32> to vector<32x32xbf16>
      %c0_26 = arith.constant 0 : index
      %c0_27 = arith.constant 0 : index
      %c0_28 = arith.constant 0 : index
      %43 = vector.load %arg6[%c0_26, %c0_27, %c0_28] : memref<2x32x32xbf16, #tpu.memory_space<vmem>>, vector<1x32x32xbf16>
      %44 = vector.shape_cast %43 : vector<1x32x32xbf16> to vector<32x32xbf16>
      %cst_29 = arith.constant dense<0.000000e+00> : vector<32x32xf32>
      %45 = tpu.matmul %42, %44, %cst_29 {dimension_numbers = #tpu.dot_dimension_numbers<[1], [0], [0], [1], [0, 0, 1, 1], [], []>} : vector<32x32xbf16>, vector<32x32xbf16>, vector<32x32xf32> -> vector<32x32xf32>
      %c0_30 = arith.constant 0 : index
      %c0_31 = arith.constant 0 : index
      %c0_32 = arith.constant 0 : index
      %46 = vector.load %arg7[%c0_30, %c0_31, %c0_32] : memref<2x32x32xbf16, #tpu.memory_space<vmem>>, vector<1x32x32xbf16>
      %47 = vector.shape_cast %46 : vector<1x32x32xbf16> to vector<32x32xbf16>
      %cst_33 = arith.constant dense<0.000000e+00> : vector<32x32xf32>
      %48 = tpu.matmul %42, %47, %cst_33 {dimension_numbers = #tpu.dot_dimension_numbers<[1], [0], [0], [1], [0, 0, 1, 1], [], []>} : vector<32x32xbf16>, vector<32x32xbf16>, vector<32x32xf32> -> vector<32x32xf32>
      %c0_34 = arith.constant 0 : index
      %c0_35 = arith.constant 0 : index
      %c0_36 = arith.constant 0 : index
      %49 = vector.load %arg8[%c0_34, %c0_35, %c0_36] : memref<2x32x32xbf16, #tpu.memory_space<vmem>>, vector<1x32x32xbf16>
      %50 = vector.shape_cast %49 : vector<1x32x32xbf16> to vector<32x32xbf16>
      %cst_37 = arith.constant dense<0.000000e+00> : vector<32x32xf32>
      %51 = tpu.matmul %42, %50, %cst_37 {dimension_numbers = #tpu.dot_dimension_numbers<[1], [0], [0], [1], [0, 0, 1, 1], [], []>} : vector<32x32xbf16>, vector<32x32xbf16>, vector<32x32xf32> -> vector<32x32xf32>
      %cst_38 = arith.constant 0.176776692 : f32
      %52 = vector.broadcast %cst_38 : f32 to vector<32x32xf32>
      %53 = arith.mulf %45, %52 : vector<32x32xf32>
      %54 = arith.truncf %53 : vector<32x32xf32> to vector<32x32xbf16>
      %55 = vector.shape_cast %54 : vector<32x32xbf16> to vector<4x8x32xbf16>
      %56 = arith.truncf %48 : vector<32x32xf32> to vector<32x32xbf16>
      %57 = vector.shape_cast %56 : vector<32x32xbf16> to vector<4x8x32xbf16>
      %58 = arith.truncf %51 : vector<32x32xf32> to vector<32x32xbf16>
      %59 = vector.shape_cast %58 : vector<32x32xbf16> to vector<4x8x32xbf16>
      "tpu.trace_start"() <{level = 10 : i32, message = "bqd,bkd->bqk"}> : () -> ()
      %cst_39 = arith.constant dense<0.000000e+00> : vector<4x8x8xf32>
      %60 = tpu.matmul %55, %57, %cst_39 {dimension_numbers = #tpu.dot_dimension_numbers<[2], [2], [1], [1], [0, 0, 0, 1, 1, 1], [0], [0]>} : vector<4x8x32xbf16>, vector<4x8x32xbf16>, vector<4x8x8xf32> -> vector<4x8x8xf32>
      "tpu.trace_stop"() : () -> ()
      %61 = vector.broadcast %13 : vector<4x1x8xf32> to vector<4x8x8xf32>
      %62 = arith.mulf %60, %61 : vector<4x8x8xf32>
      %63 = vector.broadcast %17 : vector<4x1x8xf32> to vector<4x8x8xf32>
      %64 = arith.addf %62, %63 : vector<4x8x8xf32>
      %cst_40 = arith.constant dense<0xFF800000> : vector<4x8xf32>
      %65 = vector.multi_reduction <maximumf>, %64, %cst_40 [2] : vector<4x8x8xf32> to vector<4x8xf32>
      %66 = vector.shape_cast %65 : vector<4x8xf32> to vector<4x8x1xf32>
      %67 = vector.broadcast %66 : vector<4x8x1xf32> to vector<4x8x8xf32>
      %68 = arith.subf %64, %67 : vector<4x8x8xf32>
      %69 = math.exp %68 : vector<4x8x8xf32>
      %cst_41 = arith.constant dense<0.000000e+00> : vector<4x8xf32>
      %70 = vector.multi_reduction <add>, %69, %cst_41 [2] : vector<4x8x8xf32> to vector<4x8xf32>
      %71 = vector.shape_cast %70 : vector<4x8xf32> to vector<4x8x1xf32>
      %72 = tpu.reciprocal %71 {approx = true} : vector<4x8x1xf32> -> vector<4x8x1xf32>
      %73 = vector.broadcast %72 : vector<4x8x1xf32> to vector<4x8x8xf32>
      %74 = arith.mulf %69, %73 : vector<4x8x8xf32>
      %75 = arith.truncf %74 : vector<4x8x8xf32> to vector<4x8x8xbf16>
      "tpu.trace_start"() <{level = 10 : i32, message = "bqk,bkd->bqd"}> : () -> ()
      %cst_42 = arith.constant dense<0.000000e+00> : vector<4x8x32xf32>
      %76 = tpu.matmul %75, %59, %cst_42 {dimension_numbers = #tpu.dot_dimension_numbers<[2], [1], [1], [2], [0, 0, 0, 1, 1, 2], [0], [0]>} : vector<4x8x8xbf16>, vector<4x8x32xbf16>, vector<4x8x32xf32> -> vector<4x8x32xf32>
      "tpu.trace_stop"() : () -> ()
      %77 = vector.shape_cast %76 : vector<4x8x32xf32> to vector<32x32xf32>
      %78 = arith.truncf %77 : vector<32x32xf32> to vector<32x32xbf16>
      %c0_43 = arith.constant 0 : index
      %c0_44 = arith.constant 0 : index
      %c0_45 = arith.constant 0 : index
      %79 = vector.load %arg9[%c0_43, %c0_44, %c0_45] : memref<2x32x32xbf16, #tpu.memory_space<vmem>>, vector<1x32x32xbf16>
      %80 = vector.shape_cast %79 : vector<1x32x32xbf16> to vector<32x32xbf16>
      %cst_46 = arith.constant dense<0.000000e+00> : vector<32x32xf32>
      %81 = tpu.matmul %78, %80, %cst_46 {dimension_numbers = #tpu.dot_dimension_numbers<[1], [0], [0], [1], [0, 0, 1, 1], [], []>} : vector<32x32xbf16>, vector<32x32xbf16>, vector<32x32xf32> -> vector<32x32xf32>
      %82 = arith.addf %81, %41 : vector<32x32xf32>
      %c0_47 = arith.constant 0 : index
      %c0_48 = arith.constant 0 : index
      %c0_49 = arith.constant 0 : index
      %83 = vector.load %arg10[%c0_47, %c0_48, %c0_49] : memref<2x1x32xf32, #tpu.memory_space<vmem>>, vector<1x1x32xf32>
      %84 = vector.shape_cast %83 : vector<1x1x32xf32> to vector<1x32xf32>
      %c0_50 = arith.constant 0 : index
      %c0_51 = arith.constant 0 : index
      %c0_52 = arith.constant 0 : index
      %85 = vector.load %arg11[%c0_50, %c0_51, %c0_52] : memref<2x1x32xf32, #tpu.memory_space<vmem>>, vector<1x1x32xf32>
      %86 = vector.shape_cast %85 : vector<1x1x32xf32> to vector<1x32xf32>
      %cst_53 = arith.constant dense<0.000000e+00> : vector<32xf32>
      %87 = vector.multi_reduction <add>, %82, %cst_53 [1] : vector<32x32xf32> to vector<32xf32>
      %88 = vector.shape_cast %87 : vector<32xf32> to vector<32x1xf32>
      %cst_54 = arith.constant 3.200000e+01 : f32
      %89 = vector.broadcast %cst_54 : f32 to vector<32x1xf32>
      %90 = arith.divf %88, %89 : vector<32x1xf32>
      %91 = vector.broadcast %90 : vector<32x1xf32> to vector<32x32xf32>
      %92 = arith.subf %82, %91 : vector<32x32xf32>
      %93 = arith.mulf %92, %92 : vector<32x32xf32>
      %cst_55 = arith.constant dense<0.000000e+00> : vector<32xf32>
      %94 = vector.multi_reduction <add>, %93, %cst_55 [1] : vector<32x32xf32> to vector<32xf32>
      %95 = vector.shape_cast %94 : vector<32xf32> to vector<32x1xf32>
      %cst_56 = arith.constant 3.200000e+01 : f32
      %96 = vector.broadcast %cst_56 : f32 to vector<32x1xf32>
      %97 = arith.divf %95, %96 : vector<32x1xf32>
      %98 = vector.broadcast %90 : vector<32x1xf32> to vector<32x32xf32>
      %99 = arith.subf %82, %98 : vector<32x32xf32>
      %cst_57 = arith.constant 9.99999997E-7 : f32
      %100 = vector.broadcast %cst_57 : f32 to vector<32x1xf32>
      %101 = arith.addf %97, %100 : vector<32x1xf32>
      %102 = math.rsqrt %101 : vector<32x1xf32>
      %103 = vector.broadcast %102 : vector<32x1xf32> to vector<32x32xf32>
      %104 = arith.mulf %99, %103 : vector<32x32xf32>
      %105 = vector.broadcast %84 : vector<1x32xf32> to vector<32x32xf32>
      %106 = arith.mulf %104, %105 : vector<32x32xf32>
      %107 = vector.broadcast %86 : vector<1x32xf32> to vector<32x32xf32>
      %108 = arith.addf %106, %107 : vector<32x32xf32>
      %109 = arith.truncf %108 : vector<32x32xf32> to vector<32x32xbf16>
      %c0_58 = arith.constant 0 : index
      %c0_59 = arith.constant 0 : index
      %c0_60 = arith.constant 0 : index
      %110 = vector.load %arg12[%c0_58, %c0_59, %c0_60] : memref<2x32x128xbf16, #tpu.memory_space<vmem>>, vector<1x32x128xbf16>
      %111 = vector.shape_cast %110 : vector<1x32x128xbf16> to vector<32x128xbf16>
      %cst_61 = arith.constant dense<0.000000e+00> : vector<32x128xf32>
      %112 = tpu.matmul %109, %111, %cst_61 {dimension_numbers = #tpu.dot_dimension_numbers<[1], [0], [0], [1], [0, 0, 1, 1], [], []>} : vector<32x32xbf16>, vector<32x128xbf16>, vector<32x128xf32> -> vector<32x128xf32>
      %c0_62 = arith.constant 0 : index
      %c0_63 = arith.constant 0 : index
      %c0_64 = arith.constant 0 : index
      %113 = vector.load %arg13[%c0_62, %c0_63, %c0_64] : memref<2x1x128xf32, #tpu.memory_space<vmem>>, vector<1x1x128xf32>
      %114 = vector.shape_cast %113 : vector<1x1x128xf32> to vector<1x128xf32>
      %115 = vector.broadcast %114 : vector<1x128xf32> to vector<32x128xf32>
      %116 = arith.addf %112, %115 : vector<32x128xf32>
      %cst_65 = arith.constant 5.000000e-01 : f32
      %117 = vector.broadcast %cst_65 : f32 to vector<32x128xf32>
      %118 = arith.mulf %117, %116 : vector<32x128xf32>
      %cst_66 = arith.constant 4.471500e-02 : f32
      %119 = vector.broadcast %cst_66 : f32 to vector<32x128xf32>
      %120 = arith.mulf %119, %116 : vector<32x128xf32>
      %121 = arith.mulf %120, %116 : vector<32x128xf32>
      %122 = arith.mulf %121, %116 : vector<32x128xf32>
      %123 = arith.addf %116, %122 : vector<32x128xf32>
      %cst_67 = arith.constant 0.797884583 : f32
      %124 = vector.broadcast %cst_67 : f32 to vector<32x128xf32>
      %125 = arith.mulf %124, %123 : vector<32x128xf32>
      %126 = math.tanh %125 : vector<32x128xf32>
      %cst_68 = arith.constant 1.000000e+00 : f32
      %127 = vector.broadcast %cst_68 : f32 to vector<32x128xf32>
      %128 = arith.addf %127, %126 : vector<32x128xf32>
      %129 = arith.mulf %118, %128 : vector<32x128xf32>
      %130 = arith.truncf %129 : vector<32x128xf32> to vector<32x128xbf16>
      %c0_69 = arith.constant 0 : index
      %c0_70 = arith.constant 0 : index
      %c0_71 = arith.constant 0 : index
      %131 = vector.load %arg14[%c0_69, %c0_70, %c0_71] : memref<2x128x32xbf16, #tpu.memory_space<vmem>>, vector<1x128x32xbf16>
      %132 = vector.shape_cast %131 : vector<1x128x32xbf16> to vector<128x32xbf16>
      %cst_72 = arith.constant dense<0.000000e+00> : vector<32x32xf32>
      %133 = tpu.matmul %130, %132, %cst_72 {dimension_numbers = #tpu.dot_dimension_numbers<[1], [0], [0], [1], [0, 0, 1, 1], [], []>} : vector<32x128xbf16>, vector<128x32xbf16>, vector<32x32xf32> -> vector<32x32xf32>
      %c0_73 = arith.constant 0 : index
      %c0_74 = arith.constant 0 : index
      %c0_75 = arith.constant 0 : index
      %134 = vector.load %arg15[%c0_73, %c0_74, %c0_75] : memref<2x1x32xf32, #tpu.memory_space<vmem>>, vector<1x1x32xf32>
      %135 = vector.shape_cast %134 : vector<1x1x32xf32> to vector<1x32xf32>
      %136 = vector.broadcast %135 : vector<1x32xf32> to vector<32x32xf32>
      %137 = arith.addf %133, %136 : vector<32x32xf32>
      %138 = arith.addf %137, %108 : vector<32x32xf32>
      %c0_76 = arith.constant 0 : index
      %c0_77 = arith.constant 0 : index
      %c0_78 = arith.constant 0 : index
      %139 = vector.load %arg16[%c0_76, %c0_77, %c0_78] : memref<2x1x32xf32, #tpu.memory_space<vmem>>, vector<1x1x32xf32>
      %140 = vector.shape_cast %139 : vector<1x1x32xf32> to vector<1x32xf32>
      %c0_79 = arith.constant 0 : index
      %c0_80 = arith.constant 0 : index
      %c0_81 = arith.constant 0 : index
      %141 = vector.load %arg17[%c0_79, %c0_80, %c0_81] : memref<2x1x32xf32, #tpu.memory_space<vmem>>, vector<1x1x32xf32>
      %142 = vector.shape_cast %141 : vector<1x1x32xf32> to vector<1x32xf32>
      %cst_82 = arith.constant dense<0.000000e+00> : vector<32xf32>
      %143 = vector.multi_reduction <add>, %138, %cst_82 [1] : vector<32x32xf32> to vector<32xf32>
      %144 = vector.shape_cast %143 : vector<32xf32> to vector<32x1xf32>
      %cst_83 = arith.constant 3.200000e+01 : f32
      %145 = vector.broadcast %cst_83 : f32 to vector<32x1xf32>
      %146 = arith.divf %144, %145 : vector<32x1xf32>
      %147 = vector.broadcast %146 : vector<32x1xf32> to vector<32x32xf32>
      %148 = arith.subf %138, %147 : vector<32x32xf32>
      %149 = arith.mulf %148, %148 : vector<32x32xf32>
      %cst_84 = arith.constant dense<0.000000e+00> : vector<32xf32>
      %150 = vector.multi_reduction <add>, %149, %cst_84 [1] : vector<32x32xf32> to vector<32xf32>
      %151 = vector.shape_cast %150 : vector<32xf32> to vector<32x1xf32>
      %cst_85 = arith.constant 3.200000e+01 : f32
      %152 = vector.broadcast %cst_85 : f32 to vector<32x1xf32>
      %153 = arith.divf %151, %152 : vector<32x1xf32>
      %154 = vector.broadcast %146 : vector<32x1xf32> to vector<32x32xf32>
      %155 = arith.subf %138, %154 : vector<32x32xf32>
      %cst_86 = arith.constant 9.99999997E-7 : f32
      %156 = vector.broadcast %cst_86 : f32 to vector<32x1xf32>
      %157 = arith.addf %153, %156 : vector<32x1xf32>
      %158 = math.rsqrt %157 : vector<32x1xf32>
      %159 = vector.broadcast %158 : vector<32x1xf32> to vector<32x32xf32>
      %160 = arith.mulf %155, %159 : vector<32x32xf32>
      %161 = vector.broadcast %140 : vector<1x32xf32> to vector<32x32xf32>
      %162 = arith.mulf %160, %161 : vector<32x32xf32>
      %163 = vector.broadcast %142 : vector<1x32xf32> to vector<32x32xf32>
      %164 = arith.addf %162, %163 : vector<32x32xf32>
      %165 = arith.truncf %164 : vector<32x32xf32> to vector<32x32xbf16>
      %c1 = arith.constant 1 : index
      %c0_87 = arith.constant 0 : index
      %c0_88 = arith.constant 0 : index
      %166 = vector.load %arg6[%c1, %c0_87, %c0_88] : memref<2x32x32xbf16, #tpu.memory_space<vmem>>, vector<1x32x32xbf16>
      %167 = vector.shape_cast %166 : vector<1x32x32xbf16> to vector<32x32xbf16>
      %cst_89 = arith.constant dense<0.000000e+00> : vector<32x32xf32>
      %168 = tpu.matmul %165, %167, %cst_89 {dimension_numbers = #tpu.dot_dimension_numbers<[1], [0], [0], [1], [0, 0, 1, 1], [], []>} : vector<32x32xbf16>, vector<32x32xbf16>, vector<32x32xf32> -> vector<32x32xf32>
      %c1_90 = arith.constant 1 : index
      %c0_91 = arith.constant 0 : index
      %c0_92 = arith.constant 0 : index
      %169 = vector.load %arg7[%c1_90, %c0_91, %c0_92] : memref<2x32x32xbf16, #tpu.memory_space<vmem>>, vector<1x32x32xbf16>
      %170 = vector.shape_cast %169 : vector<1x32x32xbf16> to vector<32x32xbf16>
      %cst_93 = arith.constant dense<0.000000e+00> : vector<32x32xf32>
      %171 = tpu.matmul %165, %170, %cst_93 {dimension_numbers = #tpu.dot_dimension_numbers<[1], [0], [0], [1], [0, 0, 1, 1], [], []>} : vector<32x32xbf16>, vector<32x32xbf16>, vector<32x32xf32> -> vector<32x32xf32>
      %c1_94 = arith.constant 1 : index
      %c0_95 = arith.constant 0 : index
      %c0_96 = arith.constant 0 : index
      %172 = vector.load %arg8[%c1_94, %c0_95, %c0_96] : memref<2x32x32xbf16, #tpu.memory_space<vmem>>, vector<1x32x32xbf16>
      %173 = vector.shape_cast %172 : vector<1x32x32xbf16> to vector<32x32xbf16>
      %cst_97 = arith.constant dense<0.000000e+00> : vector<32x32xf32>
      %174 = tpu.matmul %165, %173, %cst_97 {dimension_numbers = #tpu.dot_dimension_numbers<[1], [0], [0], [1], [0, 0, 1, 1], [], []>} : vector<32x32xbf16>, vector<32x32xbf16>, vector<32x32xf32> -> vector<32x32xf32>
      %cst_98 = arith.constant 0.176776692 : f32
      %175 = vector.broadcast %cst_98 : f32 to vector<32x32xf32>
      %176 = arith.mulf %168, %175 : vector<32x32xf32>
      %177 = arith.truncf %176 : vector<32x32xf32> to vector<32x32xbf16>
      %178 = vector.shape_cast %177 : vector<32x32xbf16> to vector<4x8x32xbf16>
      %179 = arith.truncf %171 : vector<32x32xf32> to vector<32x32xbf16>
      %180 = vector.shape_cast %179 : vector<32x32xbf16> to vector<4x8x32xbf16>
      %181 = arith.truncf %174 : vector<32x32xf32> to vector<32x32xbf16>
      %182 = vector.shape_cast %181 : vector<32x32xbf16> to vector<4x8x32xbf16>
      "tpu.trace_start"() <{level = 10 : i32, message = "bqd,bkd->bqk"}> : () -> ()
      %cst_99 = arith.constant dense<0.000000e+00> : vector<4x8x8xf32>
      %183 = tpu.matmul %178, %180, %cst_99 {dimension_numbers = #tpu.dot_dimension_numbers<[2], [2], [1], [1], [0, 0, 0, 1, 1, 1], [0], [0]>} : vector<4x8x32xbf16>, vector<4x8x32xbf16>, vector<4x8x8xf32> -> vector<4x8x8xf32>
      "tpu.trace_stop"() : () -> ()
      %184 = vector.broadcast %13 : vector<4x1x8xf32> to vector<4x8x8xf32>
      %185 = arith.mulf %183, %184 : vector<4x8x8xf32>
      %186 = vector.broadcast %17 : vector<4x1x8xf32> to vector<4x8x8xf32>
      %187 = arith.addf %185, %186 : vector<4x8x8xf32>
      %cst_100 = arith.constant dense<0xFF800000> : vector<4x8xf32>
      %188 = vector.multi_reduction <maximumf>, %187, %cst_100 [2] : vector<4x8x8xf32> to vector<4x8xf32>
      %189 = vector.shape_cast %188 : vector<4x8xf32> to vector<4x8x1xf32>
      %190 = vector.broadcast %189 : vector<4x8x1xf32> to vector<4x8x8xf32>
      %191 = arith.subf %187, %190 : vector<4x8x8xf32>
      %192 = math.exp %191 : vector<4x8x8xf32>
      %cst_101 = arith.constant dense<0.000000e+00> : vector<4x8xf32>
      %193 = vector.multi_reduction <add>, %192, %cst_101 [2] : vector<4x8x8xf32> to vector<4x8xf32>
      %194 = vector.shape_cast %193 : vector<4x8xf32> to vector<4x8x1xf32>
      %195 = tpu.reciprocal %194 {approx = true} : vector<4x8x1xf32> -> vector<4x8x1xf32>
      %196 = vector.broadcast %195 : vector<4x8x1xf32> to vector<4x8x8xf32>
      %197 = arith.mulf %192, %196 : vector<4x8x8xf32>
      %198 = arith.truncf %197 : vector<4x8x8xf32> to vector<4x8x8xbf16>
      "tpu.trace_start"() <{level = 10 : i32, message = "bqk,bkd->bqd"}> : () -> ()
      %cst_102 = arith.constant dense<0.000000e+00> : vector<4x8x32xf32>
      %199 = tpu.matmul %198, %182, %cst_102 {dimension_numbers = #tpu.dot_dimension_numbers<[2], [1], [1], [2], [0, 0, 0, 1, 1, 2], [0], [0]>} : vector<4x8x8xbf16>, vector<4x8x32xbf16>, vector<4x8x32xf32> -> vector<4x8x32xf32>
      "tpu.trace_stop"() : () -> ()
      %200 = vector.shape_cast %199 : vector<4x8x32xf32> to vector<32x32xf32>
      %201 = arith.truncf %200 : vector<32x32xf32> to vector<32x32xbf16>
      %c1_103 = arith.constant 1 : index
      %c0_104 = arith.constant 0 : index
      %c0_105 = arith.constant 0 : index
      %202 = vector.load %arg9[%c1_103, %c0_104, %c0_105] : memref<2x32x32xbf16, #tpu.memory_space<vmem>>, vector<1x32x32xbf16>
      %203 = vector.shape_cast %202 : vector<1x32x32xbf16> to vector<32x32xbf16>
      %cst_106 = arith.constant dense<0.000000e+00> : vector<32x32xf32>
      %204 = tpu.matmul %201, %203, %cst_106 {dimension_numbers = #tpu.dot_dimension_numbers<[1], [0], [0], [1], [0, 0, 1, 1], [], []>} : vector<32x32xbf16>, vector<32x32xbf16>, vector<32x32xf32> -> vector<32x32xf32>
      %205 = arith.addf %204, %164 : vector<32x32xf32>
      %c1_107 = arith.constant 1 : index
      %c0_108 = arith.constant 0 : index
      %c0_109 = arith.constant 0 : index
      %206 = vector.load %arg10[%c1_107, %c0_108, %c0_109] : memref<2x1x32xf32, #tpu.memory_space<vmem>>, vector<1x1x32xf32>
      %207 = vector.shape_cast %206 : vector<1x1x32xf32> to vector<1x32xf32>
      %c1_110 = arith.constant 1 : index
      %c0_111 = arith.constant 0 : index
      %c0_112 = arith.constant 0 : index
      %208 = vector.load %arg11[%c1_110, %c0_111, %c0_112] : memref<2x1x32xf32, #tpu.memory_space<vmem>>, vector<1x1x32xf32>
      %209 = vector.shape_cast %208 : vector<1x1x32xf32> to vector<1x32xf32>
      %cst_113 = arith.constant dense<0.000000e+00> : vector<32xf32>
      %210 = vector.multi_reduction <add>, %205, %cst_113 [1] : vector<32x32xf32> to vector<32xf32>
      %211 = vector.shape_cast %210 : vector<32xf32> to vector<32x1xf32>
      %cst_114 = arith.constant 3.200000e+01 : f32
      %212 = vector.broadcast %cst_114 : f32 to vector<32x1xf32>
      %213 = arith.divf %211, %212 : vector<32x1xf32>
      %214 = vector.broadcast %213 : vector<32x1xf32> to vector<32x32xf32>
      %215 = arith.subf %205, %214 : vector<32x32xf32>
      %216 = arith.mulf %215, %215 : vector<32x32xf32>
      %cst_115 = arith.constant dense<0.000000e+00> : vector<32xf32>
      %217 = vector.multi_reduction <add>, %216, %cst_115 [1] : vector<32x32xf32> to vector<32xf32>
      %218 = vector.shape_cast %217 : vector<32xf32> to vector<32x1xf32>
      %cst_116 = arith.constant 3.200000e+01 : f32
      %219 = vector.broadcast %cst_116 : f32 to vector<32x1xf32>
      %220 = arith.divf %218, %219 : vector<32x1xf32>
      %221 = vector.broadcast %213 : vector<32x1xf32> to vector<32x32xf32>
      %222 = arith.subf %205, %221 : vector<32x32xf32>
      %cst_117 = arith.constant 9.99999997E-7 : f32
      %223 = vector.broadcast %cst_117 : f32 to vector<32x1xf32>
      %224 = arith.addf %220, %223 : vector<32x1xf32>
      %225 = math.rsqrt %224 : vector<32x1xf32>
      %226 = vector.broadcast %225 : vector<32x1xf32> to vector<32x32xf32>
      %227 = arith.mulf %222, %226 : vector<32x32xf32>
      %228 = vector.broadcast %207 : vector<1x32xf32> to vector<32x32xf32>
      %229 = arith.mulf %227, %228 : vector<32x32xf32>
      %230 = vector.broadcast %209 : vector<1x32xf32> to vector<32x32xf32>
      %231 = arith.addf %229, %230 : vector<32x32xf32>
      %232 = arith.truncf %231 : vector<32x32xf32> to vector<32x32xbf16>
      %c1_118 = arith.constant 1 : index
      %c0_119 = arith.constant 0 : index
      %c0_120 = arith.constant 0 : index
      %233 = vector.load %arg12[%c1_118, %c0_119, %c0_120] : memref<2x32x128xbf16, #tpu.memory_space<vmem>>, vector<1x32x128xbf16>
      %234 = vector.shape_cast %233 : vector<1x32x128xbf16> to vector<32x128xbf16>
      %cst_121 = arith.constant dense<0.000000e+00> : vector<32x128xf32>
      %235 = tpu.matmul %232, %234, %cst_121 {dimension_numbers = #tpu.dot_dimension_numbers<[1], [0], [0], [1], [0, 0, 1, 1], [], []>} : vector<32x32xbf16>, vector<32x128xbf16>, vector<32x128xf32> -> vector<32x128xf32>
      %c1_122 = arith.constant 1 : index
      %c0_123 = arith.constant 0 : index
      %c0_124 = arith.constant 0 : index
      %236 = vector.load %arg13[%c1_122, %c0_123, %c0_124] : memref<2x1x128xf32, #tpu.memory_space<vmem>>, vector<1x1x128xf32>
      %237 = vector.shape_cast %236 : vector<1x1x128xf32> to vector<1x128xf32>
      %238 = vector.broadcast %237 : vector<1x128xf32> to vector<32x128xf32>
      %239 = arith.addf %235, %238 : vector<32x128xf32>
      %cst_125 = arith.constant 5.000000e-01 : f32
      %240 = vector.broadcast %cst_125 : f32 to vector<32x128xf32>
      %241 = arith.mulf %240, %239 : vector<32x128xf32>
      %cst_126 = arith.constant 4.471500e-02 : f32
      %242 = vector.broadcast %cst_126 : f32 to vector<32x128xf32>
      %243 = arith.mulf %242, %239 : vector<32x128xf32>
      %244 = arith.mulf %243, %239 : vector<32x128xf32>
      %245 = arith.mulf %244, %239 : vector<32x128xf32>
      %246 = arith.addf %239, %245 : vector<32x128xf32>
      %cst_127 = arith.constant 0.797884583 : f32
      %247 = vector.broadcast %cst_127 : f32 to vector<32x128xf32>
      %248 = arith.mulf %247, %246 : vector<32x128xf32>
      %249 = math.tanh %248 : vector<32x128xf32>
      %cst_128 = arith.constant 1.000000e+00 : f32
      %250 = vector.broadcast %cst_128 : f32 to vector<32x128xf32>
      %251 = arith.addf %250, %249 : vector<32x128xf32>
      %252 = arith.mulf %241, %251 : vector<32x128xf32>
      %253 = arith.truncf %252 : vector<32x128xf32> to vector<32x128xbf16>
      %c1_129 = arith.constant 1 : index
      %c0_130 = arith.constant 0 : index
      %c0_131 = arith.constant 0 : index
      %254 = vector.load %arg14[%c1_129, %c0_130, %c0_131] : memref<2x128x32xbf16, #tpu.memory_space<vmem>>, vector<1x128x32xbf16>
      %255 = vector.shape_cast %254 : vector<1x128x32xbf16> to vector<128x32xbf16>
      %cst_132 = arith.constant dense<0.000000e+00> : vector<32x32xf32>
      %256 = tpu.matmul %253, %255, %cst_132 {dimension_numbers = #tpu.dot_dimension_numbers<[1], [0], [0], [1], [0, 0, 1, 1], [], []>} : vector<32x128xbf16>, vector<128x32xbf16>, vector<32x32xf32> -> vector<32x32xf32>
      %c1_133 = arith.constant 1 : index
      %c0_134 = arith.constant 0 : index
      %c0_135 = arith.constant 0 : index
      %257 = vector.load %arg15[%c1_133, %c0_134, %c0_135] : memref<2x1x32xf32, #tpu.memory_space<vmem>>, vector<1x1x32xf32>
      %258 = vector.shape_cast %257 : vector<1x1x32xf32> to vector<1x32xf32>
      %259 = vector.broadcast %258 : vector<1x32xf32> to vector<32x32xf32>
      %260 = arith.addf %256, %259 : vector<32x32xf32>
      %261 = arith.addf %260, %231 : vector<32x32xf32>
      %c1_136 = arith.constant 1 : index
      %c0_137 = arith.constant 0 : index
      %c0_138 = arith.constant 0 : index
      %262 = vector.load %arg16[%c1_136, %c0_137, %c0_138] : memref<2x1x32xf32, #tpu.memory_space<vmem>>, vector<1x1x32xf32>
      %263 = vector.shape_cast %262 : vector<1x1x32xf32> to vector<1x32xf32>
      %c1_139 = arith.constant 1 : index
      %c0_140 = arith.constant 0 : index
      %c0_141 = arith.constant 0 : index
      %264 = vector.load %arg17[%c1_139, %c0_140, %c0_141] : memref<2x1x32xf32, #tpu.memory_space<vmem>>, vector<1x1x32xf32>
      %265 = vector.shape_cast %264 : vector<1x1x32xf32> to vector<1x32xf32>
      %cst_142 = arith.constant dense<0.000000e+00> : vector<32xf32>
      %266 = vector.multi_reduction <add>, %261, %cst_142 [1] : vector<32x32xf32> to vector<32xf32>
      %267 = vector.shape_cast %266 : vector<32xf32> to vector<32x1xf32>
      %cst_143 = arith.constant 3.200000e+01 : f32
      %268 = vector.broadcast %cst_143 : f32 to vector<32x1xf32>
      %269 = arith.divf %267, %268 : vector<32x1xf32>
      %270 = vector.broadcast %269 : vector<32x1xf32> to vector<32x32xf32>
      %271 = arith.subf %261, %270 : vector<32x32xf32>
      %272 = arith.mulf %271, %271 : vector<32x32xf32>
      %cst_144 = arith.constant dense<0.000000e+00> : vector<32xf32>
      %273 = vector.multi_reduction <add>, %272, %cst_144 [1] : vector<32x32xf32> to vector<32xf32>
      %274 = vector.shape_cast %273 : vector<32xf32> to vector<32x1xf32>
      %cst_145 = arith.constant 3.200000e+01 : f32
      %275 = vector.broadcast %cst_145 : f32 to vector<32x1xf32>
      %276 = arith.divf %274, %275 : vector<32x1xf32>
      %277 = vector.broadcast %269 : vector<32x1xf32> to vector<32x32xf32>
      %278 = arith.subf %261, %277 : vector<32x32xf32>
      %cst_146 = arith.constant 9.99999997E-7 : f32
      %279 = vector.broadcast %cst_146 : f32 to vector<32x1xf32>
      %280 = arith.addf %276, %279 : vector<32x1xf32>
      %281 = math.rsqrt %280 : vector<32x1xf32>
      %282 = vector.broadcast %281 : vector<32x1xf32> to vector<32x32xf32>
      %283 = arith.mulf %278, %282 : vector<32x32xf32>
      %284 = vector.broadcast %263 : vector<1x32xf32> to vector<32x32xf32>
      %285 = arith.mulf %283, %284 : vector<32x32xf32>
      %286 = vector.broadcast %265 : vector<1x32xf32> to vector<32x32xf32>
      %287 = arith.addf %285, %286 : vector<32x32xf32>
      %288 = arith.truncf %287 : vector<32x32xf32> to vector<32x32xbf16>
      %c0_147 = arith.constant 0 : index
      %c0_148 = arith.constant 0 : index
      %289 = vector.load %arg21[%c0_147, %c0_148] : memref<32x32xbf16, #tpu.memory_space<vmem>>, vector<32x32xbf16>
      tpu.vector_store %arg21[%c0_147, %c0_148], %288 {strides = array<i32>} : memref<32x32xbf16, #tpu.memory_space<vmem>>, vector<32x32xbf16>,
    } else {
    }
    %c0 = arith.constant 0 : index
    %c0_1 = arith.constant 0 : index
    %3 = vector.load %arg21[%c0, %c0_1] : memref<32x32xbf16, #tpu.memory_space<vmem>>, vector<32x32xbf16>
    %c0_2 = arith.constant 0 : index
    %c0_3 = arith.constant 0 : index
    %4 = vector.load %arg18[%c0_2, %c0_3] : memref<32x128xbf16, #tpu.memory_space<vmem>>, vector<32x128xbf16>
    %cst = arith.constant dense<0.000000e+00> : vector<32x128xf32>
    %5 = tpu.matmul %3, %4, %cst {dimension_numbers = #tpu.dot_dimension_numbers<[1], [0], [0], [1], [0, 0, 1, 1], [], []>} : vector<32x32xbf16>, vector<32x128xbf16>, vector<32x128xf32> -> vector<32x128xf32>
    %c0_4 = arith.constant 0 : index
    %c0_5 = arith.constant 0 : index
    %6 = vector.load %arg19[%c0_4, %c0_5] : memref<1x128xf32, #tpu.memory_space<vmem>>, vector<1x128xf32>
    %7 = vector.broadcast %6 : vector<1x128xf32> to vector<32x128xf32>
    %8 = arith.addf %5, %7 : vector<32x128xf32>
    %9 = vector.shape_cast %8 : vector<32x128xf32> to vector<4x8x128xf32>
    %c0_6 = arith.constant 0 : index
    %c0_7 = arith.constant 0 : index
    %c0_8 = arith.constant 0 : index
    %10 = vector.load %arg20[%c0_6, %c0_7, %c0_8] : memref<4x8x128xf32, #tpu.memory_space<vmem>>, vector<4x8x128xf32>
    tpu.vector_store %arg20[%c0_6, %c0_7, %c0_8], %9 {strides = array<i32>} : memref<4x8x128xf32, #tpu.memory_space<vmem>>, vector<4x8x128xf32>,
    return
  }
  func.func @transform_0(%arg0: i32, %arg1: i32) -> (i32, i32, i32) {
    %c0_i32 = arith.constant 0 : i32
    %c0_i32_0 = arith.constant 0 : i32
    %c0_i32_1 = arith.constant 0 : i32
    return %arg0, %c0_i32, %c0_i32_0 : i32, i32, i32
  }
  func.func @transform_1(%arg0: i32, %arg1: i32) -> (i32, i32, i32) {
    %c0_i32 = arith.constant 0 : i32
    %c0_i32_0 = arith.constant 0 : i32
    %c0_i32_1 = arith.constant 0 : i32
    return %arg0, %c0_i32, %c0_i32_0 : i32, i32, i32
  }
  func.func @transform_2(%arg0: i32, %arg1: i32) -> (i32, i32) {
    %c0_i32 = arith.constant 0 : i32
    %c0_i32_0 = arith.constant 0 : i32
    %c0_i32_1 = arith.constant 0 : i32
    return %c0_i32, %c0_i32_0 : i32, i32
  }
  func.func @transform_3(%arg0: i32, %arg1: i32) -> (i32, i32) {
    %c0_i32 = arith.constant 0 : i32
    %c0_i32_0 = arith.constant 0 : i32
    %c0_i32_1 = arith.constant 0 : i32
    return %c0_i32, %c0_i32_0 : i32, i32
  }
  func.func @transform_4(%arg0: i32, %arg1: i32) -> (i32, i32, i32) {
    %c0_i32 = arith.constant 0 : i32
    %c0_i32_0 = arith.constant 0 : i32
    %c0_i32_1 = arith.constant 0 : i32
    %c0_i32_2 = arith.constant 0 : i32
    return %c0_i32, %c0_i32_0, %c0_i32_1 : i32, i32, i32
  }
  func.func @transform_5(%arg0: i32, %arg1: i32) -> (i32, i32, i32) {
    %c0_i32 = arith.constant 0 : i32
    %c0_i32_0 = arith.constant 0 : i32
    %c0_i32_1 = arith.constant 0 : i32
    %c0_i32_2 = arith.constant 0 : i32
    return %c0_i32, %c0_i32_0, %c0_i32_1 : i32, i32, i32
  }
  func.func @transform_6(%arg0: i32, %arg1: i32) -> (i32, i32, i32) {
    %c0_i32 = arith.constant 0 : i32
    %c0_i32_0 = arith.constant 0 : i32
    %c0_i32_1 = arith.constant 0 : i32
    %c0_i32_2 = arith.constant 0 : i32
    return %c0_i32, %c0_i32_0, %c0_i32_1 : i32, i32, i32
  }
  func.func @transform_7(%arg0: i32, %arg1: i32) -> (i32, i32, i32) {
    %c0_i32 = arith.constant 0 : i32
    %c0_i32_0 = arith.constant 0 : i32
    %c0_i32_1 = arith.constant 0 : i32
    %c0_i32_2 = arith.constant 0 : i32
    return %c0_i32, %c0_i32_0, %c0_i32_1 : i32, i32, i32
  }
  func.func @transform_8(%arg0: i32, %arg1: i32) -> (i32, i32, i32) {
    %c0_i32 = arith.constant 0 : i32
    %c0_i32_0 = arith.constant 0 : i32
    %c0_i32_1 = arith.constant 0 : i32
    %c0_i32_2 = arith.constant 0 : i32
    return %c0_i32, %c0_i32_0, %c0_i32_1 : i32, i32, i32
  }
  func.func @transform_9(%arg0: i32, %arg1: i32) -> (i32, i32, i32) {
    %c0_i32 = arith.constant 0 : i32
    %c0_i32_0 = arith.constant 0 : i32
    %c0_i32_1 = arith.constant 0 : i32
    %c0_i32_2 = arith.constant 0 : i32
    return %c0_i32, %c0_i32_0, %c0_i32_1 : i32, i32, i32
  }
  func.func @transform_10(%arg0: i32, %arg1: i32) -> (i32, i32, i32) {
    %c0_i32 = arith.constant 0 : i32
    %c0_i32_0 = arith.constant 0 : i32
    %c0_i32_1 = arith.constant 0 : i32
    %c0_i32_2 = arith.constant 0 : i32
    return %c0_i32, %c0_i32_0, %c0_i32_1 : i32, i32, i32
  }
  func.func @transform_11(%arg0: i32, %arg1: i32) -> (i32, i32, i32) {
    %c0_i32 = arith.constant 0 : i32
    %c0_i32_0 = arith.constant 0 : i32
    %c0_i32_1 = arith.constant 0 : i32
    %c0_i32_2 = arith.constant 0 : i32
    return %c0_i32, %c0_i32_0, %c0_i32_1 : i32, i32, i32
  }
  func.func @transform_12(%arg0: i32, %arg1: i32) -> (i32, i32, i32) {
    %c0_i32 = arith.constant 0 : i32
    %c0_i32_0 = arith.constant 0 : i32
    %c0_i32_1 = arith.constant 0 : i32
    %c0_i32_2 = arith.constant 0 : i32
    return %c0_i32, %c0_i32_0, %c0_i32_1 : i32, i32, i32
  }
  func.func @transform_13(%arg0: i32, %arg1: i32) -> (i32, i32, i32) {
    %c0_i32 = arith.constant 0 : i32
    %c0_i32_0 = arith.constant 0 : i32
    %c0_i32_1 = arith.constant 0 : i32
    %c0_i32_2 = arith.constant 0 : i32
    return %c0_i32, %c0_i32_0, %c0_i32_1 : i32, i32, i32
  }
  func.func @transform_14(%arg0: i32, %arg1: i32) -> (i32, i32, i32) {
    %c0_i32 = arith.constant 0 : i32
    %c0_i32_0 = arith.constant 0 : i32
    %c0_i32_1 = arith.constant 0 : i32
    %c0_i32_2 = arith.constant 0 : i32
    return %c0_i32, %c0_i32_0, %c0_i32_1 : i32, i32, i32
  }
  func.func @transform_15(%arg0: i32, %arg1: i32) -> (i32, i32, i32) {
    %c0_i32 = arith.constant 0 : i32
    %c0_i32_0 = arith.constant 0 : i32
    %c0_i32_1 = arith.constant 0 : i32
    %c0_i32_2 = arith.constant 0 : i32
    return %c0_i32, %c0_i32_0, %c0_i32_1 : i32, i32, i32
  }
  func.func @transform_16(%arg0: i32, %arg1: i32) -> (i32, i32) {
    %c0_i32 = arith.constant 0 : i32
    %c0_i32_0 = arith.constant 0 : i32
    return %c0_i32, %arg1 : i32, i32
  }
  func.func @transform_17(%arg0: i32, %arg1: i32) -> (i32, i32) {
    %c0_i32 = arith.constant 0 : i32
    %c0_i32_0 = arith.constant 0 : i32
    return %c0_i32, %arg1 : i32, i32
  }
  func.func @transform_18(%arg0: i32, %arg1: i32) -> (i32, i32, i32) {
    %c0_i32 = arith.constant 0 : i32
    %c0_i32_0 = arith.constant 0 : i32
    return %arg0, %c0_i32, %arg1 : i32, i32, i32
  }
}

</mosaic_0001>

<bundles_post_ra>
// kernel: tpu_custom_call.1
= control target key start
LH: loop header
LB: loop body
LE: loop exit
PB: predicated region body
PF: predicated region fallthrough
CT: control target
= control target key end

     0   :  { %s6562_s0 = inlined_call_operand.hbm [shape: f32[8,8,32], index: 0, kind: input, shape index: {}]   ;;  %s6563_s1 = inlined_call_operand.hbm [shape: f32[8,1,8], index: 1, kind: input, shape index: {}]   ;;  %s6564_s2 = inlined_call_operand.hbm [shape: f32[1,32], index: 2, kind: input, shape index: {}]   ;;  %s6565_s3 = inlined_call_operand.hbm [shape: f32[1,32], index: 3, kind: input, shape index: {}]   ;;  %s6566_s4 = inlined_call_operand.hbm [shape: bf16[2,32,32], index: 4, kind: input, shape index: {}]   ;;  %s6567_s5 = inlined_call_operand.hbm [shape: bf16[2,32,32], index: 5, kind: input, shape index: {}]   ;;  %s6568_s6 = inlined_call_operand.hbm [shape: bf16[2,32,32], index: 6, kind: input, shape index: {}]   ;;  %s6569_s7 = inlined_call_operand.hbm [shape: bf16[2,32,32], index: 7, kind: input, shape index: {}]   ;;  %s6570_s8 = inlined_call_operand.hbm [shape: f32[2,1,32], index: 8, kind: input, shape index: {}]   ;;  %s6571_s9 = inlined_call_operand.hbm [shape: f32[2,1,32], index: 9, kind: input, shape index: {}]   ;;  %s6572_s10 = inlined_call_operand.hbm [shape: bf16[2,32,128], index: 10, kind: input, shape index: {}]   ;;  %s6573_s11 = inlined_call_operand.hbm [shape: f32[2,1,128], index: 11, kind: input, shape index: {}]   ;;  %s6574_s12 = inlined_call_operand.hbm [shape: bf16[2,128,32], index: 12, kind: input, shape index: {}]   ;;  %s6575_s13 = inlined_call_operand.hbm [shape: f32[2,1,32], index: 13, kind: input, shape index: {}]   ;;  %s6576_s14 = inlined_call_operand.hbm [shape: f32[2,1,32], index: 14, kind: input, shape index: {}]   ;;  %s6577_s15 = inlined_call_operand.hbm [shape: f32[2,1,32], index: 15, kind: input, shape index: {}]   ;;  %s6578_s16 = inlined_call_operand.hbm [shape: bf16[32,256], index: 16, kind: input, shape index: {}]   ;;  %s6579_s17 = inlined_call_operand.hbm [shape: f32[1,256], index: 17, kind: input, shape index: {}]   ;;  %s6580_s18 = inlined_call_operand.hbm [shape: f32[8,8,256], index: 18, kind: output, shape index: {}]  }
   0x1   :  { %6634 = sst [smem:[#allocation60_spill]] %s6562_s0 }
   0x2   :  { %6635 = sst [smem:[#allocation61_spill]] %s6563_s1 }
   0x3   :  { %6636 = sst [smem:[#allocation62_spill]] %s6564_s2 }
   0x4   :  { %6637 = sst [smem:[#allocation63_spill]] %s6565_s3 }
   0x5   :  { %6638 = sst [smem:[#allocation64_spill]] %s6566_s4 }
   0x6   :  { %6639 = sst [smem:[#allocation65_spill]] %s6567_s5 }
   0x7   :  { %6640 = sst [smem:[#allocation66_spill]] %s6568_s6 }
   0x8   :  { %6641 = sst [smem:[#allocation67_spill]] %s6569_s7 }
   0x9   :  { %6642 = sst [smem:[#allocation68_spill]] %s6570_s8 }
   0xa   :  { %6643 = sst [smem:[#allocation69_spill]] %s6571_s9 }
   0xb   :  { %6644 = sst [smem:[#allocation70_spill]] %s6572_s10 }
   0xc   :  { %6645 = sst [smem:[#allocation71_spill]] %s6573_s11 }
   0xd   :  { %6646 = sst [smem:[#allocation72_spill]] %s6574_s12 }
   0xe   :  { %6647 = sst [smem:[#allocation73_spill]] %s6575_s13 }
   0xf   :  { %6648 = sst [smem:[#allocation74_spill]] %s6576_s14 }
  0x10   :  { %6649 = sst [smem:[#allocation75_spill]] %s6577_s15 }
  0x11   :  { %6650 = sst [smem:[#allocation76_spill]] %s6578_s16 }
  0x12   :  { %6651 = sst [smem:[#allocation77_spill]] %s6579_s17 }
  0x13   :  { %6652 = sst [smem:[#allocation78_spill]] %s6580_s18 }
  0x14   :  { %23 = vsyncpa [#allocation4], 0 }
  0x15   :  { %25 = vsyncpa [#allocation4 + $0x1], 0 }
  0x16   :  { %26 = vsyncpa [#allocation7], 0 }
  0x17   :  { %28 = vsyncpa [#allocation7 + $0x1], 0 }
  0x18   :  { %29 = vsyncpa [#allocation10], 0 }
  0x19   :  { %30 = vsyncpa [#allocation13], 0 }
  0x1a   :  { %31 = vsyncpa [#allocation16], 0 }
  0x1b   :  { %32 = vsyncpa [#allocation19], 0 }
  0x1c   :  { %33 = vsyncpa [#allocation22], 0 }
  0x1d   :  { %34 = vsyncpa [#allocation25], 0 }
  0x1e   :  { %35 = vsyncpa [#allocation28], 0 }
  0x1f   :  { %36 = vsyncpa [#allocation5], 0 }
  0x20   :  { %38 = vsyncpa [#allocation5 + $0x1], 0  ;;  %s5483_s27 = smov 0   ;;  %s5485_s28 = smov 0  }
  0x21   :  { %s5487_s29 = smov 0   ;;  %s5489_s30 = smov 0  }
  0x22   :  { %s5491_s0 = smov 0   ;;  %s5493_s19 = smov 0  }
  0x23   :  { %s5495_s1 = smov 0   ;;  %s5497_s20 = smov 0  }
  0x24   :  { %s5499_s21 = smov 0   ;;  %s5501_s22 = smov 0  }
  0x25   :  { %s5503_s2 = smov 0   ;;  %s5505_s23 = smov 0  }
  0x26   :  { %s5507_s24 = smov 0   ;;  %s5509_s25 = smov 0  }
  0x27 LB: > { %6653 = sst [smem:[#allocation45_spill]] %s5304_s27  ;;  %s5554_s26 = sadd.s32 4294967295, %s5356_s25   ;;  %s5356_s25 = sphi %s5509_s25, %s44_s25   ;;  %s5352_s24 = sphi %s5507_s24, %s6763_s24   ;;  %s5348_s23 = sphi %s5505_s23, %s6762_s23   ;;  %s5344_s2 = sphi %s5503_s2, %s6751_s2   ;;  %s5340_s22 = sphi %s5501_s22, %s6761_s22   ;;  %s5336_s21 = sphi %s5499_s21, %s6750_s21   ;;  %s5332_s20 = sphi %s5497_s20, %s6760_s20   ;;  %s5328_s1 = sphi %s5495_s1, %s6759_s1   ;;  %s5324_s19 = sphi %s5493_s19, %s6758_s19   ;;  %s5320_s0 = sphi %s5491_s0, %s6757_s0   ;;  %s5316_s30 = sphi %s5489_s30, %s6747_s30   ;;  %s5312_s29 = sphi %s5487_s29, %s6746_s29   ;;  %s5308_s28 = sphi %s5485_s28, %s6756_s28   ;;  %s5304_s27 = sphi %s5483_s27, %s6755_s27  }
  0x28   : > { %6654 = sst [smem:[#allocation46_spill]] %s5312_s29  ;;  %p3722_p0 = scmp.ge.s32.totalorder %s5356_s25, 1 }
  0x29   : > { %6655 = sst [smem:[#allocation47_spill]] %s5316_s30  ;;  %p6595_p1 = scmp.eq.s32.totalorder %s5554_s26, 0 }
  0x2a   : > { %6656 = sst [smem:[#allocation48_spill]] %s5320_s0  ;;  %p487_p2 = scmp.lt.s32.totalorder %s5356_s25, 5 }
  0x2b   : > { %6657 = sst [smem:[#allocation49_spill]] %s5324_s19  ;;  %s5359_s17 = smov [#allocation9]  }
  0x2c   : > { %6658 = sst [smem:[#allocation50_spill]] %s5336_s21  ;;  %p5559_p3 = pnand %p3722_p0, %p487_p2 }
  0x2d   : > { %6659 = sst [smem:[#allocation51_spill]] %s5340_s22  ;;  %s511_s16 = sshll.u32 %s5359_s17, 4  ;;  %s5571_s16 = int_to_ptr.vmem [resolvable:$true] %s511_s16 }
  0x2e   : > { %6660 = sst [smem:[#allocation52_spill]] %s5344_s2  ;;  %s5358_s2 = smov [#allocation8]  }
  0x2f   : > { %6661 = sst [smem:[#allocation53_spill]] %s5352_s24  ;;  %s500_s22 = sshll.u32 %s5358_s2, 4  ;;  %s501_s22 = int_to_ptr.vmem [resolvable:$true] %s500_s22 }
  0x30   : > { %s6662_s18 = scalar_select %p5559_p3, 1, 0 }
  0x31   : > { %p4301_p4 = pneg %p5559_p3  ;;  %s5360_s0 = smov [#allocation12]  }
  0x32   : > { %6663 = sst [smem:[#allocation54_spill]] %s6662_s18  ;;  %s5573_s19 = sshll.u32 %s5360_s0, 4  ;;  %s535_s19 = int_to_ptr.vmem [resolvable:$true] %s5573_s19 }
  0x33   : > { %p5567_p5 = pnand %p4301_p4, %p6595_p1  ;;  %s6665_s12 = sld [smem:[#allocation62_spill]] }
  0x35   : > { %s6664_s30 = scalar_select %p5567_p5, 1, 0 }
  0x36   : > { %p5583_p7 = pneg %p5567_p5 }
  0x39   : > { %s4654_s2 = scalar_lea.hbm %s6665_s12, 16 }
  0x3a   : > { %p4655_p6 = scmp.ne.s32.totalorder %s6665_s12, %s4654_s2  ;;  %p4661_p10 = scmp.lt.u32.totalorder %s4654_s2, %s6665_s12 }
  0x3c   : > { %p4657_p8 = pnand %p5583_p7, %p4655_p6 }
  0x3e   : > { %p4658_p9 = pneg %p4657_p8 }
  0x40   : > { %p4663_p11 = pnand %p4661_p10, %p4658_p9 }
  0x42   : > { %4666 = shalt.err (!%p4663_p11)
}
  0x43   : > { %s4667_s14 = scalar_lea.vmem %s501_s22, 16  ;;  %s4674_s10 = scalar_lea.vmem %s501_s22, 32 }
  0x44   : > { %p4668_p12 = scmp.ne.s32.totalorder %s501_s22, %s4667_s14  ;;  %p4675_p2 = scmp.lt.s32.totalorder %s501_s22, %s501_s22 }
  0x45   : > { %p4676_p4 = scmp.lt.s32.totalorder %s4674_s10, %s4667_s14 }
  0x46   : > { %p4670_p13 = pnand %p4668_p12, %p5583_p7 }
  0x47   : > { %p4677_p1 = por %p4676_p4, %p4675_p2 }
  0x48   : > { %p4671_p0 = pneg %p4670_p13 }
  0x4a   : > { %p4678_p3 = pnand %p4677_p1, %p4671_p0 }
  0x4c   : > { %4681 = shalt.err (!%p4678_p3)
}
  0x4d   : > { %4304 = dma.hbm_to_vmem [thread:$0]  (!%p5567_p5), %s6665_s12, 16, %s501_s22, [#allocation7]  }
  0x4e   : > { %s6667_s3 = sld [smem:[#allocation63_spill]] }
  0x54   : > { %s4682_s0 = scalar_lea.hbm %s6667_s3, 16 }
  0x55   : > { %p4683_p6 = scmp.ne.s32.totalorder %s6667_s3, %s4682_s0  ;;  %p4689_p1 = scmp.lt.u32.totalorder %s4682_s0, %s6667_s3 }
  0x57   : > { %p4685_p8 = pnand %p4683_p6, %p5583_p7 }
  0x59   : > { %p4686_p9 = pneg %p4685_p8 }
  0x5b   : > { %p4691_p3 = pnand %p4689_p1, %p4686_p9 }
  0x5d   : > { %4694 = shalt.err (!%p4691_p3)
}
  0x5e   : > { %s4695_s22 = scalar_lea.vmem %s5571_s16, 16  ;;  %s4702_s4 = scalar_lea.vmem %s5571_s16, 32 }
  0x5f   : > { %p4696_p10 = scmp.ne.s32.totalorder %s5571_s16, %s4695_s22  ;;  %p4703_p13 = scmp.lt.s32.totalorder %s5571_s16, %s5571_s16 }
  0x60   : > { %p4704_p0 = scmp.lt.s32.totalorder %s4702_s4, %s4695_s22 }
  0x61   : > { %p4698_p11 = pnand %p4696_p10, %p5583_p7 }
  0x62   : > { %p4705_p2 = por %p4704_p0, %p4703_p13 }
  0x63   : > { %p4699_p12 = pneg %p4698_p11 }
  0x65   : > { %p4706_p4 = pnand %p4705_p2, %p4699_p12 }
  0x67   : > { %4709 = shalt.err (!%p4706_p4)
}
  0x68   : > { %4307 = dma.hbm_to_vmem [thread:$0]  (!%p5567_p5), %s6667_s3, 16, %s5571_s16, [#allocation10]  }
  0x69   : > { %s6668_s5 = sld [smem:[#allocation65_spill]] }
  0x6f   : > { %s4710_s2 = scalar_lea.hbm %s6668_s5, 512 }
  0x70   : > { %p4711_p6 = scmp.ne.s32.totalorder %s6668_s5, %s4710_s2  ;;  %p4717_p1 = scmp.lt.u32.totalorder %s4710_s2, %s6668_s5 }
  0x72   : > { %p4713_p8 = pnand %p4711_p6, %p5583_p7 }
  0x74   : > { %p4714_p9 = pneg %p4713_p8 }
  0x76   : > { %p4719_p3 = pnand %p4717_p1, %p4714_p9 }
  0x78   : > { %4722 = shalt.err (!%p4719_p3)
}
  0x79   : > { %s4723_s4 = scalar_lea.vmem %s535_s19, 512  ;;  %p4731_p13 = scmp.lt.s32.totalorder %s535_s19, %s535_s19 }
  0x7a   : > { %p4724_p10 = scmp.ne.s32.totalorder %s535_s19, %s4723_s4  ;;  %p4732_p0 = scmp.lt.s32.totalorder %s4723_s4, %s4723_s4 }
  0x7c   : > { %p4726_p11 = pnand %p4724_p10, %p5583_p7  ;;  %p4733_p2 = por %p4732_p0, %p4731_p13 }
  0x7e   : > { %p4727_p12 = pneg %p4726_p11 }
  0x80   : > { %p4734_p4 = pnand %p4733_p2, %p4727_p12 }
  0x82   : > { %4737 = shalt.err (!%p4734_p4)
}
  0x83   : > { %s6600_s16 = smov 64   ;;  %s6602_s6 = smov 4  }
  0x84   : > { %4313 = dma.hbm_to_vmem [thread:$0]  (!%p5567_p5), %s6668_s5, 512, %s535_s19, [#allocation13], %s6600_s16, %s6600_s16, %s6602_s6  }
  0x85   : > { %s5363_s8 = smov [#allocation15]   ;;  %s6669_s7 = sld [smem:[#allocation67_spill]] }
  0x86   : > { %s560_s2 = sshll.u32 %s5363_s8, 4  ;;  %s561_s2 = int_to_ptr.vmem [resolvable:$true] %s560_s2 }
  0x8b   : > { %s4738_s10 = scalar_lea.hbm %s6669_s7, 512 }
  0x8c   : > { %p4739_p6 = scmp.ne.s32.totalorder %s6669_s7, %s4738_s10  ;;  %p4745_p1 = scmp.lt.u32.totalorder %s4738_s10, %s6669_s7 }
  0x8e   : > { %p4741_p8 = pnand %p4739_p6, %p5583_p7 }
  0x90   : > { %p4742_p9 = pneg %p4741_p8 }
  0x92   : > { %p4747_p3 = pnand %p4745_p1, %p4742_p9 }
  0x94   : > { %4750 = shalt.err (!%p4747_p3)
}
  0x95   : > { %s4751_s19 = scalar_lea.vmem %s561_s2, 512  ;;  %p4759_p13 = scmp.lt.s32.totalorder %s561_s2, %s561_s2 }
  0x96   : > { %p4752_p10 = scmp.ne.s32.totalorder %s561_s2, %s4751_s19  ;;  %p4760_p0 = scmp.lt.s32.totalorder %s4751_s19, %s4751_s19 }
  0x98   : > { %p4754_p11 = pnand %p4752_p10, %p5583_p7  ;;  %p4761_p2 = por %p4760_p0, %p4759_p13 }
  0x9a   : > { %p4755_p12 = pneg %p4754_p11 }
  0x9c   : > { %p4762_p4 = pnand %p4761_p2, %p4755_p12 }
  0x9e   : > { %4765 = shalt.err (!%p4762_p4)
}
  0x9f   : > { %4319 = dma.hbm_to_vmem [thread:$0]  (!%p5567_p5), %s6669_s7, 512, %s561_s2, [#allocation16], %s6600_s16, %s6600_s16, %s6602_s6  }
  0xa0   : > { %s5364_s15 = smov [#allocation18]   ;;  %s5365_s8 = smov [#allocation21]  }
  0xa1   : > { %s586_s18 = sshll.u32 %s5364_s15, 4  ;;  %s612_s0 = sshll.u32 %s5365_s8, 4  ;;  %s587_s18 = int_to_ptr.vmem [resolvable:$true] %s586_s18  ;;  %s5666_s0 = int_to_ptr.vmem [resolvable:$true] %s612_s0 }
  0xa2   : > { %s6670_s9 = sld [smem:[#allocation69_spill]] }
  0xa8   : > { %s4766_s22 = scalar_lea.hbm %s6670_s9, 32 }
  0xa9   : > { %p4767_p6 = scmp.ne.s32.totalorder %s6670_s9, %s4766_s22  ;;  %p4773_p1 = scmp.lt.u32.totalorder %s4766_s22, %s6670_s9 }
  0xab   : > { %p4769_p8 = pnand %p4767_p6, %p5583_p7 }
  0xad   : > { %p4770_p9 = pneg %p4769_p8 }
  0xaf   : > { %p4775_p3 = pnand %p4773_p1, %p4770_p9 }
  0xb1   : > { %4778 = shalt.err (!%p4775_p3)
}
  0xb2   : > { %s4779_s12 = scalar_lea.vmem %s587_s18, 32  ;;  %p4787_p13 = scmp.lt.s32.totalorder %s587_s18, %s587_s18 }
  0xb3   : > { %p4780_p10 = scmp.ne.s32.totalorder %s587_s18, %s4779_s12  ;;  %p4788_p0 = scmp.lt.s32.totalorder %s4779_s12, %s4779_s12 }
  0xb5   : > { %p4782_p11 = pnand %p4780_p10, %p5583_p7  ;;  %p4789_p2 = por %p4788_p0, %p4787_p13 }
  0xb7   : > { %p4783_p12 = pneg %p4782_p11 }
  0xb9   : > { %p4790_p4 = pnand %p4789_p2, %p4783_p12 }
  0xbb   : > { %4793 = shalt.err (!%p4790_p4)
}
  0xbc   : > { %s6604_s15 = smov 16   ;;  %s6607_s8 = smov 1  }
  0xbd   : > { %4325 = dma.hbm_to_vmem [thread:$0]  (!%p5567_p5), %s6670_s9, 32, %s587_s18, [#allocation19], %s6604_s15, %s6604_s15, %s6607_s8  }
  0xbe   : > { %s6671_s11 = sld [smem:[#allocation71_spill]] }
  0xc4   : > { %s4794_s19 = scalar_lea.hbm %s6671_s11, 32 }
  0xc5   : > { %p4795_p6 = scmp.ne.s32.totalorder %s6671_s11, %s4794_s19  ;;  %p4801_p1 = scmp.lt.u32.totalorder %s4794_s19, %s6671_s11 }
  0xc7   : > { %p4797_p8 = pnand %p4795_p6, %p5583_p7 }
  0xc9   : > { %p4798_p9 = pneg %p4797_p8 }
  0xcb   : > { %p4803_p3 = pnand %p4801_p1, %p4798_p9 }
  0xcd   : > { %4806 = shalt.err (!%p4803_p3)
}
  0xce   : > { %s4807_s18 = scalar_lea.vmem %s5666_s0, 32  ;;  %p4815_p13 = scmp.lt.s32.totalorder %s5666_s0, %s5666_s0 }
  0xcf   : > { %p4808_p10 = scmp.ne.s32.totalorder %s5666_s0, %s4807_s18  ;;  %p4816_p0 = scmp.lt.s32.totalorder %s4807_s18, %s4807_s18 }
  0xd1   : > { %p4810_p11 = pnand %p4808_p10, %p5583_p7  ;;  %p4817_p2 = por %p4816_p0, %p4815_p13 }
  0xd3   : > { %p4811_p12 = pneg %p4810_p11 }
  0xd5   : > { %p4818_p4 = pnand %p4817_p2, %p4811_p12 }
  0xd7   : > { %4821 = shalt.err (!%p4818_p4)
}
  0xd8   : > { %4331 = dma.hbm_to_vmem [thread:$0]  (!%p5567_p5), %s6671_s11, 32, %s5666_s0, [#allocation22], %s6604_s15, %s6604_s15, %s6607_s8  }
  0xd9   : > { %s5368_s10 = smov [#allocation24]   ;;  %s6672_s13 = sld [smem:[#allocation73_spill]] }
  0xda   : > { %s638_s22 = sshll.u32 %s5368_s10, 4  ;;  %s639_s22 = int_to_ptr.vmem [resolvable:$true] %s638_s22 }
  0xdf   : > { %s4822_s3 = scalar_lea.hbm %s6672_s13, 32 }
  0xe0   : > { %p4823_p6 = scmp.ne.s32.totalorder %s6672_s13, %s4822_s3  ;;  %p4829_p1 = scmp.lt.u32.totalorder %s4822_s3, %s6672_s13 }
  0xe2   : > { %p4825_p8 = pnand %p4823_p6, %p5583_p7 }
  0xe4   : > { %p4826_p9 = pneg %p4825_p8 }
  0xe6   : > { %p4831_p3 = pnand %p4829_p1, %p4826_p9 }
  0xe8   : > { %4834 = shalt.err (!%p4831_p3)
}
  0xe9   : > { %s4835_s0 = scalar_lea.vmem %s639_s22, 32  ;;  %p4843_p13 = scmp.lt.s32.totalorder %s639_s22, %s639_s22 }
  0xea   : > { %p4836_p10 = scmp.ne.s32.totalorder %s639_s22, %s4835_s0  ;;  %p4844_p0 = scmp.lt.s32.totalorder %s4835_s0, %s4835_s0 }
  0xec   : > { %p4838_p11 = pnand %p4836_p10, %p5583_p7  ;;  %p4845_p2 = por %p4844_p0, %p4843_p13 }
  0xee   : > { %p4839_p12 = pneg %p4838_p11 }
  0xf0   : > { %p4846_p4 = pnand %p4845_p2, %p4839_p12 }
  0xf2   : > { %4849 = shalt.err (!%p4846_p4)
}
  0xf3   : > { %4337 = dma.hbm_to_vmem [thread:$0]  (!%p5567_p5), %s6672_s13, 32, %s639_s22, [#allocation25], %s6604_s15, %s6604_s15, %s6607_s8  }
  0xf4   : > { %s3721_s14 = sadd.s32 4294967294, %s5356_s25   ;;  %s53_s10 = sadd.s32 1, %s5348_s23 }
  0xf5   : > { %s56_s4 = sadd.s32 1, %s5352_s24  ;;  %p54_p6 = scmp.ge.s32.totalorder %s53_s10, 2 }
  0xf6   : > { %s63_s19 = sadd.s32 1, %s5336_s21  ;;  %p70_p8 = scmp.ne.s32.totalorder %s5336_s21, %s5332_s20 }
  0xf7   : > { %p6606_p9 = scmp.eq.s32.totalorder %s5356_s25, 0  ;;  %s6765_s10 = smov (%p54_p6, %s53_s10), 0 }
  0xf8   : > { %6673 = sst [smem:[#allocation55_spill]] %s6765_s10  ;;  %s6767_s4 = smov (!%p54_p6, %s56_s4), %s5352_s24 }
  0xf9   : > { %p5748_p1 = por %p6606_p9, %p70_p8  ;;  %p76_p3 = scmp.ne.s32.totalorder %s5332_s20, %s5328_s1 }
  0xfa   : > { %p58_p10 = scmp.ge.s32.totalorder %s6767_s4, 2  ;;  %s5756_s3 = ssub.s32 %s5348_s23, %s6765_s10 }
  0xfb   : > { %p6675_p11 = scmp.eq.s32.totalorder %s5554_s26, 0  ;;  %s463_s1 = sadd.s32 1, %s5312_s29 }
  0xfc   : > { %s6769_s4 = smov (%p58_p10, %s6767_s4), 0  ;;  %p473_p0 = scmp.ne.s32.totalorder %s5312_s29, %s5308_s28 }
  0xfd   : > { %p5760_p12 = por %p6675_p11, %p76_p3  ;;  %6677 = sst [smem:[#allocation56_spill]] %s6769_s4 }
  0xfe   : > { %s60_s12 = ssub.s32 %s5352_s24, %s6769_s4  ;;  %p474_p2 = scmp.eq.s32.totalorder %s5554_s26, 3 }
  0xff   : > { %s6676_s2 = scalar_select %p5760_p12, 1, 0 }
 0x100   : > { %p61_p4 = scmp.eq.s32.totalorder %s60_s12, 0  ;;  %s460_s18 = sor.u32 %s5756_s3, %s60_s12 }
 0x101   : > { %p461_p6 = scmp.eq.s32.totalorder %s460_s18, 0  ;;  %p5774_p8 = por %p474_p2, %p473_p0 }
 0x102   : > { %s5779_s6 = scalar_select %p61_p4, %s5336_s21, %s63_s19  }
 0x103   : > { %s6678_s0 = scalar_select %p5774_p8, 1, 0 }
 0x104   : > { %6679 = sst [smem:[#allocation57_spill]] %s5779_s6  ;;  %p479_p3 = scmp.ne.s32.totalorder %s5308_s28, %s5304_s27 }
 0x105   : > { %s5782_s16 = scalar_select %p461_p6, %s5312_s29, %s463_s1  }
 0x106   : > { %p480_p10 = scmp.eq.s32.totalorder %s3721_s14, 3  ;;  %p6611_p11 = scmp.lt.s32.totalorder %s5356_s25, 4 }
 0x107   : > { %6680 = sst [smem:[#allocation58_spill]] %s5782_s16  ;;  %s6616_s15 = sand.u32 1, %s5356_s25  }
 0x108   : > { %p5788_p9 = por %p480_p10, %p479_p3  ;;  %s6609_s5 = sand.u32 1, %s5336_s21  }
 0x109   : > { %s3888_s12 = sshll.u32 %s5352_s24, 9  ;;  %s3738_s18 = sshll.u32 %s6609_s5, 5 }
 0x10a   : > { %s6681_s8 = scalar_select %p5788_p9, 1, 0 }
 0x10b   : > { %s6683_s11 = sld [smem:[#allocation60_spill]]  ;;  %p5805_p0 = pnand %p6611_p11, %p5748_p1 }
 0x10c   : > { %6682 = sst [smem:[#allocation59_spill]] %s6681_s8  ;;  %s682_s19 = scalar_lea.vmem [#allocation3], %s3738_s18 }
 0x10d   : > { %s689_s1 = sshll.u32 %s682_s19, 4  ;;  %s5813_s7 = scalar_lea.sflag [#allocation4], %s6616_s15  ;;  %s5809_s1 = int_to_ptr.vmem [resolvable:$true] %s689_s1 }
 0x10e   : > { %p4852_p4 = pneg %p5805_p0 }
 0x111   : > { %s5799_s13 = scalar_lea.hbm %s6683_s11, %s3888_s12  ;;  %s4855_s5 = scalar_lea.hbm %s6683_s11, 1024 }
 0x112   : > { %s4850_s9 = scalar_lea.hbm %s5799_s13, 512  ;;  %p4856_p3 = scmp.lt.u32.totalorder %s5799_s13, %s6683_s11 }
 0x113   : > { %p4851_p2 = scmp.ne.s32.totalorder %s5799_s13, %s4850_s9  ;;  %p4857_p10 = scmp.lt.u32.totalorder %s4855_s5, %s4850_s9 }
 0x114   : > { %p4859_p13 = scmp.lt.u32.totalorder %s4850_s9, %s5799_s13 }
 0x115   : > { %p4853_p6 = pnand %p4852_p4, %p4851_p2  ;;  %p4858_p11 = por %p4857_p10, %p4856_p3 }
 0x117   : > { %p4854_p1 = pneg %p4853_p6  ;;  %p4860_p9 = por %p4859_p13, %p4858_p11 }
 0x119   : > { %p4861_p8 = pnand %p4860_p9, %p4854_p1 }
 0x11b   : > { %4864 = shalt.err (!%p4861_p8)
}
 0x11c   : > { %s4865_s19 = scalar_lea.vmem %s5809_s1, 512  ;;  %s5369_s22 = smov [#allocation3]  }
 0x11d   : > { %p4866_p2 = scmp.ne.s32.totalorder %s5809_s1, %s4865_s19  ;;  %s4870_s12 = sshll.u32 %s5369_s22, 4  ;;  %s4871_s12 = int_to_ptr.vmem [resolvable:$false] %s4870_s12 }
 0x11e   : > { %s4872_s4 = scalar_lea.vmem %s4871_s12, 1024  ;;  %p4873_p5 = scmp.lt.s32.totalorder %s5809_s1, %s4871_s12 }
 0x11f   : > { %p4868_p6 = pnand %p4866_p2, %p4852_p4  ;;  %p4874_p3 = scmp.lt.s32.totalorder %s4872_s4, %s4865_s19 }
 0x121   : > { %p4869_p12 = pneg %p4868_p6  ;;  %p4875_p10 = por %p4874_p3, %p4873_p5 }
 0x123   : > { %p4876_p13 = pnand %p4875_p10, %p4869_p12 }
 0x125   : > { %4879 = shalt.err (!%p4876_p13)
}
 0x126   : > { %s6620_s5 = smov 128   ;;  %s5371_s9 = smov 8  }
 0x127   : > { %4347 = dma.hbm_to_vmem [thread:$0]  (!%p5805_p0), %s5799_s13, 512, %s5809_s1, %s5813_s7, %s6620_s5, %s6620_s5, %s5371_s9  }
 0x128   : > { %s6685_s18 = sand.u32 1, %s5336_s21   ;;  %s3889_s19 = sshll.u32 %s5352_s24, 6 }
 0x129   : > { %s3741_s22 = sshll.u32 %s6685_s18, 2  ;;  %s6686_s15 = sld [smem:[#allocation61_spill]] }
 0x12a   : > { %s703_s10 = scalar_lea.vmem [#allocation6], %s3741_s22  ;;  %s5372_s16 = smov [#allocation11]  }
 0x12b   : > { %s710_s6 = sshll.u32 %s703_s10, 4  ;;  %s5853_s29 = sshll.u32 %s5372_s16, 4  ;;  %s5851_s6 = int_to_ptr.vmem [resolvable:$true] %s710_s6  ;;  %s522_s29 = int_to_ptr.vmem [resolvable:$true] %s5853_s29 }
 0x12c   : > { %s6687_s13 = sand.u32 1, %s5356_s25  }
 0x12d   : > { %s5857_s1 = scalar_lea.sflag [#allocation7], %s6687_s13 }
 0x12f   : > { %s5849_s11 = scalar_lea.hbm %s6686_s15, %s3889_s19  ;;  %s4885_s12 = scalar_lea.hbm %s6686_s15, 128 }
 0x130   : > { %s4880_s9 = scalar_lea.hbm %s5849_s11, 64  ;;  %p4886_p8 = scmp.lt.u32.totalorder %s5849_s11, %s6686_s15 }
 0x131   : > { %p4881_p5 = scmp.ne.s32.totalorder %s5849_s11, %s4880_s9  ;;  %p4887_p11 = scmp.lt.u32.totalorder %s4885_s12, %s4880_s9 }
 0x132   : > { %p4889_p2 = scmp.lt.u32.totalorder %s4880_s9, %s5849_s11 }
 0x133   : > { %p4883_p9 = pnand %p4881_p5, %p4852_p4  ;;  %p4888_p1 = por %p4887_p11, %p4886_p8 }
 0x135   : > { %p4884_p12 = pneg %p4883_p9  ;;  %p4890_p6 = por %p4889_p2, %p4888_p1 }
 0x137   : > { %p4891_p3 = pnand %p4890_p6, %p4884_p12 }
 0x139   : > { %4894 = shalt.err (!%p4891_p3)
}
 0x13a   : > { %s4895_s16 = scalar_lea.vmem %s5851_s6, 64  ;;  %s5373_s4 = smov [#allocation6]  }
 0x13b   : > { %p4896_p10 = scmp.ne.s32.totalorder %s5851_s6, %s4895_s16  ;;  %s4900_s13 = sshll.u32 %s5373_s4, 4  ;;  %s4901_s13 = int_to_ptr.vmem [resolvable:$false] %s4900_s13 }
 0x13c   : > { %s4902_s18 = scalar_lea.vmem %s4901_s13, 128  ;;  %p4903_p9 = scmp.lt.s32.totalorder %s5851_s6, %s4901_s13 }
 0x13d   : > { %p4898_p13 = pnand %p4896_p10, %p4852_p4  ;;  %p4904_p8 = scmp.lt.s32.totalorder %s4902_s18, %s4895_s16 }
 0x13f   : > { %p4899_p5 = pneg %p4898_p13  ;;  %p4905_p11 = por %p4904_p8, %p4903_p9 }
 0x141   : > { %p4906_p1 = pnand %p4905_p11, %p4899_p5 }
 0x143   : > { %4909 = shalt.err (!%p4906_p1)
}
 0x144   : > { %s6688_s9 = smov 1   ;;  %s6689_s19 = smov 16  }
 0x145   : > { %4350 = dma.hbm_to_vmem [thread:$0]  (!%p5805_p0), %s5849_s11, 64, %s5851_s6, %s5857_s1, %s6689_s19, %s6689_s19, %s6688_s9  }
 0x146   : > { %s6690_s10 = sld [smem:[#allocation64_spill]] }
 0x14c   : > { %s4910_s4 = scalar_lea.hbm %s6690_s10, 512 }
 0x14d   : > { %p4911_p4 = scmp.ne.s32.totalorder %s6690_s10, %s4910_s4  ;;  %p4917_p6 = scmp.lt.u32.totalorder %s4910_s4, %s6690_s10 }
 0x14f   : > { %p4913_p12 = pnand %p4911_p4, %p5583_p7 }
 0x151   : > { %p4914_p2 = pneg %p4913_p12 }
 0x153   : > { %p4919_p3 = pnand %p4917_p6, %p4914_p2 }
 0x155   : > { %4922 = shalt.err (!%p4919_p3)
}
 0x156   : > { %s4923_s5 = scalar_lea.vmem %s522_s29, 512  ;;  %p4931_p5 = scmp.lt.s32.totalorder %s522_s29, %s522_s29 }
 0x157   : > { %p4924_p0 = scmp.ne.s32.totalorder %s522_s29, %s4923_s5  ;;  %p4932_p9 = scmp.lt.s32.totalorder %s4923_s5, %s4923_s5 }
 0x159   : > { %p4926_p10 = pnand %p4924_p0, %p5583_p7  ;;  %p4933_p8 = por %p4932_p9, %p4931_p5 }
 0x15b   : > { %p4927_p13 = pneg %p4926_p10 }
 0x15d   : > { %p4934_p11 = pnand %p4933_p8, %p4927_p13 }
 0x15f   : > { %4937 = shalt.err (!%p4934_p11)
}
 0x160   : > { %p6691_p1 = scmp.ne.s32.totalorder %s6664_s30, 0  ;;  %s6692_s11 = smov 4  }
 0x161   : > { %s6693_s6 = smov 64   ;;  %s5374_s4 = smov [#allocation14]  }
 0x162   : > { %4310 = dma.hbm_to_vmem [thread:$0]  (!%p6691_p1), %s6690_s10, 512, %s522_s29, [#allocation10], %s6693_s6, %s6693_s6, %s6692_s11  }
 0x163   : > { %s547_s16 = sshll.u32 %s5374_s4, 4  ;;  %s5375_s13 = smov [#allocation17]   ;;  %s548_s16 = int_to_ptr.vmem [resolvable:$true] %s547_s16 }
 0x164   : > { %s573_s14 = sshll.u32 %s5375_s13, 4  ;;  %s6694_s15 = sld [smem:[#allocation66_spill]]  ;;  %s574_s14 = int_to_ptr.vmem [resolvable:$true] %s573_s14 }
 0x16a   : > { %s4938_s24 = scalar_lea.hbm %s6694_s15, 512 }
 0x16b   : > { %p4939_p4 = scmp.ne.s32.totalorder %s6694_s15, %s4938_s24  ;;  %p4945_p6 = scmp.lt.u32.totalorder %s4938_s24, %s6694_s15 }
 0x16d   : > { %p4941_p12 = pnand %p4939_p4, %p5583_p7 }
 0x16f   : > { %p4942_p2 = pneg %p4941_p12 }
 0x171   : > { %p4947_p3 = pnand %p4945_p6, %p4942_p2 }
 0x173   : > { %4950 = shalt.err (!%p4947_p3)
}
 0x174   : > { %s4951_s29 = scalar_lea.vmem %s548_s16, 512  ;;  %p4959_p5 = scmp.lt.s32.totalorder %s548_s16, %s548_s16 }
 0x175   : > { %p4952_p0 = scmp.ne.s32.totalorder %s548_s16, %s4951_s29  ;;  %p4960_p9 = scmp.lt.s32.totalorder %s4951_s29, %s4951_s29 }
 0x177   : > { %p4954_p10 = pnand %p4952_p0, %p5583_p7  ;;  %p4961_p8 = por %p4960_p9, %p4959_p5 }
 0x179   : > { %p4955_p13 = pneg %p4954_p10 }
 0x17b   : > { %p4962_p11 = pnand %p4961_p8, %p4955_p13 }
 0x17d   : > { %4965 = shalt.err (!%p4962_p11)
}
 0x17e   : > { %4316 = dma.hbm_to_vmem [thread:$0]  (!%p6691_p1), %s6694_s15, 512, %s548_s16, [#allocation13], %s6693_s6, %s6693_s6, %s6692_s11  }
 0x17f   : > { %s6695_s22 = sld [smem:[#allocation68_spill]] }
 0x185   : > { %s6696_s4 = smov %s6695_s22  ;;  %s4966_s13 = scalar_lea.hbm %s6695_s22, 32 }
 0x186   : > { %p4967_p4 = scmp.ne.s32.totalorder %s6696_s4, %s4966_s13  ;;  %p4973_p6 = scmp.lt.u32.totalorder %s4966_s13, %s6696_s4 }
 0x188   : > { %p4969_p12 = pnand %p4967_p4, %p5583_p7 }
 0x18a   : > { %p4970_p2 = pneg %p4969_p12 }
 0x18c   : > { %p4975_p3 = pnand %p4973_p6, %p4970_p2 }
 0x18e   : > { %4978 = shalt.err (!%p4975_p3)
}
 0x18f   : > { %s4979_s27 = scalar_lea.vmem %s574_s14, 32  ;;  %p4987_p5 = scmp.lt.s32.totalorder %s574_s14, %s574_s14 }
 0x190   : > { %p4980_p0 = scmp.ne.s32.totalorder %s574_s14, %s4979_s27  ;;  %p4988_p9 = scmp.lt.s32.totalorder %s4979_s27, %s4979_s27 }
 0x192   : > { %p4982_p10 = pnand %p4980_p0, %p5583_p7  ;;  %p4989_p8 = por %p4988_p9, %p4987_p5 }
 0x194   : > { %p4983_p13 = pneg %p4982_p10 }
 0x196   : > { %p4990_p11 = pnand %p4989_p8, %p4983_p13 }
 0x198   : > { %4993 = shalt.err (!%p4990_p11)
}
 0x199   : > { %4322 = dma.hbm_to_vmem [thread:$0]  (!%p6691_p1), %s6696_s4, 32, %s574_s14, [#allocation16], %s6689_s19, %s6689_s19, %s6688_s9  }
 0x19a   : > { %s5376_s24 = smov [#allocation20]   ;;  %s5377_s22 = smov [#allocation23]  }
 0x19b   : > { %s599_s8 = sshll.u32 %s5376_s24, 4  ;;  %s625_s13 = sshll.u32 %s5377_s22, 4  ;;  %s600_s8 = int_to_ptr.vmem [resolvable:$true] %s599_s8  ;;  %s626_s13 = int_to_ptr.vmem [resolvable:$true] %s625_s13 }
 0x19c   : > { %s6697_s12 = sld [smem:[#allocation70_spill]] }
 0x1a2   : > { %s4994_s29 = scalar_lea.hbm %s6697_s12, 512 }
 0x1a3   : > { %p4995_p4 = scmp.ne.s32.totalorder %s6697_s12, %s4994_s29  ;;  %p5001_p6 = scmp.lt.u32.totalorder %s4994_s29, %s6697_s12 }
 0x1a5   : > { %p4997_p12 = pnand %p4995_p4, %p5583_p7 }
 0x1a7   : > { %p4998_p2 = pneg %p4997_p12 }
 0x1a9   : > { %p5003_p3 = pnand %p5001_p6, %p4998_p2 }
 0x1ab   : > { %5006 = shalt.err (!%p5003_p3)
}
 0x1ac   : > { %s5007_s14 = scalar_lea.vmem %s600_s8, 512  ;;  %p5015_p5 = scmp.lt.s32.totalorder %s600_s8, %s600_s8 }
 0x1ad   : > { %p5008_p0 = scmp.ne.s32.totalorder %s600_s8, %s5007_s14  ;;  %p5016_p9 = scmp.lt.s32.totalorder %s5007_s14, %s5007_s14 }
 0x1af   : > { %p5010_p10 = pnand %p5008_p0, %p5583_p7  ;;  %p5017_p8 = por %p5016_p9, %p5015_p5 }
 0x1b1   : > { %p5011_p13 = pneg %p5010_p10 }
 0x1b3   : > { %p5018_p11 = pnand %p5017_p8, %p5011_p13 }
 0x1b5   : > { %5021 = shalt.err (!%p5018_p11)
}
 0x1b6   : > { %4328 = dma.hbm_to_vmem [thread:$0]  (!%p6691_p1), %s6697_s12, 512, %s600_s8, [#allocation19], %s6693_s6, %s6693_s6, %s6692_s11  }
 0x1b7   : > { %s6698_s22 = sld [smem:[#allocation72_spill]] }
 0x1bd   : > { %s6699_s18 = smov %s6698_s22  ;;  %s5022_s5 = scalar_lea.hbm %s6698_s22, 2048 }
 0x1be   : > { %p5023_p4 = scmp.ne.s32.totalorder %s6699_s18, %s5022_s5  ;;  %p5029_p6 = scmp.lt.u32.totalorder %s5022_s5, %s6699_s18 }
 0x1c0   : > { %p5025_p12 = pnand %p5023_p4, %p5583_p7 }
 0x1c2   : > { %p5026_p2 = pneg %p5025_p12 }
 0x1c4   : > { %p5031_p3 = pnand %p5029_p6, %p5026_p2 }
 0x1c6   : > { %5034 = shalt.err (!%p5031_p3)
}
 0x1c7   : > { %s5035_s15 = scalar_lea.vmem %s626_s13, 2048  ;;  %p5043_p5 = scmp.lt.s32.totalorder %s626_s13, %s626_s13 }
 0x1c8   : > { %p5036_p0 = scmp.ne.s32.totalorder %s626_s13, %s5035_s15  ;;  %p5044_p9 = scmp.lt.s32.totalorder %s5035_s15, %s5035_s15 }
 0x1ca   : > { %p5038_p10 = pnand %p5036_p0, %p5583_p7  ;;  %p5045_p8 = por %p5044_p9, %p5043_p5 }
 0x1cc   : > { %p5039_p13 = pneg %p5038_p10 }
 0x1ce   : > { %p5046_p11 = pnand %p5045_p8, %p5039_p13 }
 0x1d0   : > { %5049 = shalt.err (!%p5046_p11)
}
 0x1d1   : > { %4334 = dma.hbm_to_vmem [thread:$0]  (!%p6691_p1), %s6699_s18, 2048, %s626_s13, [#allocation22], %s6693_s6, %s6693_s6, %s6692_s11  }
 0x1d2   : > { %s5378_s21 = smov [#allocation26]   ;;  %s5379_s22 = smov [#allocation27]  }
 0x1d3   : > { %s651_s24 = sshll.u32 %s5378_s21, 4  ;;  %s664_s5 = sshll.u32 %s5379_s22, 4  ;;  %s652_s24 = int_to_ptr.vmem [resolvable:$true] %s651_s24  ;;  %s665_s5 = int_to_ptr.vmem [resolvable:$true] %s664_s5 }
 0x1d4   : > { %s6700_s16 = sld [smem:[#allocation74_spill]] }
 0x1da   : > { %s5050_s14 = scalar_lea.hbm %s6700_s16, 32 }
 0x1db   : > { %p5051_p4 = scmp.ne.s32.totalorder %s6700_s16, %s5050_s14  ;;  %p5057_p6 = scmp.lt.u32.totalorder %s5050_s14, %s6700_s16 }
 0x1dd   : > { %p5053_p12 = pnand %p5051_p4, %p5583_p7 }
 0x1df   : > { %p5054_p2 = pneg %p5053_p12 }
 0x1e1   : > { %p5059_p3 = pnand %p5057_p6, %p5054_p2 }
 0x1e3   : > { %5062 = shalt.err (!%p5059_p3)
}
 0x1e4   : > { %s5063_s13 = scalar_lea.vmem %s652_s24, 32  ;;  %p5071_p5 = scmp.lt.s32.totalorder %s652_s24, %s652_s24 }
 0x1e5   : > { %p5064_p0 = scmp.ne.s32.totalorder %s652_s24, %s5063_s13  ;;  %p5072_p9 = scmp.lt.s32.totalorder %s5063_s13, %s5063_s13 }
 0x1e7   : > { %p5066_p10 = pnand %p5064_p0, %p5583_p7  ;;  %p5073_p8 = por %p5072_p9, %p5071_p5 }
 0x1e9   : > { %p5067_p13 = pneg %p5066_p10 }
 0x1eb   : > { %p5074_p11 = pnand %p5073_p8, %p5067_p13 }
 0x1ed   : > { %5077 = shalt.err (!%p5074_p11)
}
 0x1ee   : > { %4340 = dma.hbm_to_vmem [thread:$0]  (!%p6691_p1), %s6700_s16, 32, %s652_s24, [#allocation25], %s6689_s19, %s6689_s19, %s6688_s9  }
 0x1ef   : > { %s6701_s22 = sld [smem:[#allocation75_spill]] }
 0x1f5   : > { %s6702_s14 = smov %s6701_s22  ;;  %s5078_s29 = scalar_lea.hbm %s6701_s22, 32 }
 0x1f6   : > { %p5079_p4 = scmp.ne.s32.totalorder %s6702_s14, %s5078_s29  ;;  %p5085_p6 = scmp.lt.u32.totalorder %s5078_s29, %s6702_s14 }
 0x1f8   : > { %p5081_p12 = pnand %p5079_p4, %p5583_p7 }
 0x1fa   : > { %p5082_p2 = pneg %p5081_p12 }
 0x1fc   : > { %p5087_p3 = pnand %p5085_p6, %p5082_p2 }
 0x1fe   : > { %5090 = shalt.err (!%p5087_p3)
}
 0x1ff   : > { %s5091_s4 = scalar_lea.vmem %s665_s5, 32  ;;  %p5099_p5 = scmp.lt.s32.totalorder %s665_s5, %s665_s5 }
 0x200   : > { %p5092_p0 = scmp.ne.s32.totalorder %s665_s5, %s5091_s4  ;;  %p5100_p9 = scmp.lt.s32.totalorder %s5091_s4, %s5091_s4 }
 0x202   : > { %p5094_p10 = pnand %p5092_p0, %p5583_p7  ;;  %p5101_p8 = por %p5100_p9, %p5099_p5 }
 0x204   : > { %p5095_p13 = pneg %p5094_p10 }
 0x206   : > { %p5102_p11 = pnand %p5101_p8, %p5095_p13 }
 0x208   : > { %5105 = shalt.err (!%p5102_p11)
}
 0x209   : > { %s6703_s10 = sld [smem:[#allocation49_spill]]  ;;  %s6704_s21 = sld [smem:[#allocation48_spill]] }
 0x20a   : > { %s6705_s17 = sld [smem:[#allocation47_spill]]  ;;  %p6706_p7 = scmp.eq.s32.totalorder %s5756_s3, 0 }
 0x20b   : > { %4343 = dma.hbm_to_vmem [thread:$0]  (!%p6691_p1), %s6702_s14, 32, %s665_s5, [#allocation28], %s6689_s19, %s6689_s19, %s6688_s9  }
 0x20c   : > { %s3745_s27 = sshll.u32 %s5348_s23, 6  ;;  %p6707_p2 = scmp.eq.s32.totalorder %s5356_s25, 0 }
 0x20d   : > { %p6708_p3 = scmp.eq.s32.totalorder %s5554_s26, 0  ;;  %s6710_s9 = sld [smem:[#allocation76_spill]] }
 0x20e   : > { %p6711_p1 = scmp.lt.s32.totalorder %s5356_s25, 4 }
 0x20f   : > { %s409_s30 = sadd.s32 1, %s6703_s10  ;;  %p416_p4 = scmp.ne.s32.totalorder %s6703_s10, %s6704_s21 }
 0x210   : > { %s6038_s22 = scalar_select %p6706_p7, %s6703_s10, %s409_s30  }
 0x211   : > { %p422_p12 = scmp.ne.s32.totalorder %s6704_s21, %s6705_s17  ;;  %s722_s29 = sand.u32 1, %s6703_s10  }
 0x212   : > { %p418_p6 = por %p416_p4, %p6707_p2  ;;  %s3744_s8 = sshll.u32 %s722_s29, 4 }
 0x213   : > { %p6050_p0 = por %p422_p12, %p6708_p3  ;;  %s6059_s19 = scalar_lea.hbm %s6710_s9, %s3745_s27 }
 0x214   : > { %p6063_p10 = pnand %p6711_p1, %p418_p6  ;;  %s724_s5 = scalar_lea.vmem [#allocation29], %s3744_s8 }
 0x215   : > { %s6709_s15 = scalar_select %p6050_p0, 1, 0 }
 0x216   : > { %s730_s24 = sshll.u32 %s724_s5, 4  ;;  %s5106_s12 = scalar_lea.hbm %s6059_s19, 256  ;;  %s6067_s24 = int_to_ptr.vmem [resolvable:$true] %s730_s24 }
 0x217   : > { %p5107_p13 = scmp.ne.s32.totalorder %s6059_s19, %s5106_s12  ;;  %p5108_p5 = pneg %p6063_p10 }
 0x218   : > { %s5111_s30 = scalar_lea.hbm %s6710_s9, 512  ;;  %p5112_p11 = scmp.lt.u32.totalorder %s6059_s19, %s6710_s9 }
 0x219   : > { %p5109_p9 = pnand %p5108_p5, %p5107_p13  ;;  %p5113_p7 = scmp.lt.u32.totalorder %s5111_s30, %s5106_s12 }
 0x21a   : > { %p5115_p12 = scmp.lt.u32.totalorder %s5106_s12, %s6059_s19 }
 0x21b   : > { %p5110_p8 = pneg %p5109_p9  ;;  %p5114_p4 = por %p5113_p7, %p5112_p11 }
 0x21d   : > { %p5116_p2 = por %p5115_p12, %p5114_p4 }
 0x21f   : > { %p5117_p6 = pnand %p5116_p2, %p5110_p8 }
 0x221   : > { %5120 = shalt.err (!%p5117_p6)
}
 0x222   : > { %s5121_s8 = scalar_lea.vmem %s6067_s24, 256  ;;  %s5380_s4 = smov [#allocation29]  }
 0x223   : > { %p5122_p3 = scmp.ne.s32.totalorder %s6067_s24, %s5121_s8  ;;  %s5126_s5 = sshll.u32 %s5380_s4, 4  ;;  %s5127_s5 = int_to_ptr.vmem [resolvable:$false] %s5126_s5 }
 0x224   : > { %s5128_s21 = scalar_lea.vmem %s5127_s5, 512  ;;  %p5129_p9 = scmp.lt.s32.totalorder %s6067_s24, %s5127_s5 }
 0x225   : > { %p5124_p1 = pnand %p5122_p3, %p5108_p5  ;;  %p5130_p11 = scmp.lt.s32.totalorder %s5128_s21, %s5121_s8 }
 0x227   : > { %p5125_p13 = pneg %p5124_p1  ;;  %p5131_p7 = por %p5130_p11, %p5129_p9 }
 0x229   : > { %p5132_p4 = pnand %p5131_p7, %p5125_p13 }
 0x22b   : > { %5135 = shalt.err (!%p5132_p4)
}
 0x22c   : > { %s6713_s12 = smov 128   ;;  %s3746_s17 = sshll.u32 %s5348_s23, 4 }
 0x22d   : > { %4353 = dma.hbm_to_vmem [thread:$0]  (!%p6063_p10), %s6059_s19, 256, %s6067_s24, %s5813_s7, %s6713_s12, %s6693_s6, %s6692_s11  }
 0x22e   : > { %s743_s30 = scalar_lea.vmem [#allocation30], %s722_s29  ;;  %s6714_s4 = sld [smem:[#allocation77_spill]] }
 0x22f   : > { %s750_s27 = sshll.u32 %s743_s30, 4  ;;  %s751_s27 = int_to_ptr.vmem [resolvable:$true] %s750_s27 }
 0x234   : > { %s748_s5 = scalar_lea.hbm %s6714_s4, %s3746_s17  ;;  %s5141_s16 = scalar_lea.hbm %s6714_s4, 32 }
 0x235   : > { %s5136_s21 = scalar_lea.hbm %s748_s5, 16  ;;  %p5142_p6 = scmp.lt.u32.totalorder %s748_s5, %s6714_s4 }
 0x236   : > { %p5137_p8 = scmp.ne.s32.totalorder %s748_s5, %s5136_s21  ;;  %p5143_p3 = scmp.lt.u32.totalorder %s5141_s16, %s5136_s21 }
 0x237   : > { %p5145_p13 = scmp.lt.u32.totalorder %s5136_s21, %s748_s5 }
 0x238   : > { %p5139_p12 = pnand %p5137_p8, %p5108_p5  ;;  %p5144_p1 = por %p5143_p3, %p5142_p6 }
 0x23a   : > { %p5140_p2 = pneg %p5139_p12  ;;  %p5146_p9 = por %p5145_p13, %p5144_p1 }
 0x23c   : > { %p5147_p11 = pnand %p5146_p9, %p5140_p2 }
 0x23e   : > { %5150 = shalt.err (!%p5147_p11)
}
 0x23f   : > { %s5151_s6 = scalar_lea.vmem %s751_s27, 16  ;;  %s5381_s10 = smov [#allocation30]  }
 0x240   : > { %p5152_p7 = scmp.ne.s32.totalorder %s751_s27, %s5151_s6  ;;  %s5156_s14 = sshll.u32 %s5381_s10, 4  ;;  %s5157_s14 = int_to_ptr.vmem [resolvable:$false] %s5156_s14 }
 0x241   : > { %s5158_s29 = scalar_lea.vmem %s5157_s14, 32  ;;  %p5159_p12 = scmp.lt.s32.totalorder %s751_s27, %s5157_s14 }
 0x242   : > { %p5154_p4 = pnand %p5152_p7, %p5108_p5  ;;  %p5160_p0 = scmp.lt.s32.totalorder %s5158_s29, %s5151_s6 }
 0x244   : > { %p5155_p8 = pneg %p5154_p4  ;;  %p5161_p3 = por %p5160_p0, %p5159_p12 }
 0x246   : > { %p5162_p6 = pnand %p5161_p3, %p5155_p8 }
 0x248   : > { %5165 = shalt.err (!%p5162_p6)
}
 0x249   : > { %4356 = dma.hbm_to_vmem [thread:$0]  (!%p6063_p10), %s748_s5, 16, %s751_s27, %s5857_s1  }
 0x24a   : > { %s6715_s16 = sld [smem:[#allocation54_spill]] }
 0x250   : > { %p6716_p2 = scmp.ne.s32.totalorder %s6715_s16, 0 }
 0x251   : > { %s761_s9 = sand.u32 (!%p6716_p2), 1, %s5554_s26   ;;  %s763_s19 = sand.u32 (!%p6716_p2), 1, %s5332_s20  }
 0x252   : > { %759 = sbr.rel (%p6716_p2) target bundleno = 5827 (0x16c3), region = 92  ;;  %s3748_s24 = sshll.u32 (!%p6716_p2), %s763_s19, 5 }
 0x253   : > { %s762_s12 = scalar_lea.sflag (!%p6716_p2), [#allocation4], %s761_s9  ;;  %s6123_s17 = scalar_lea.vmem (!%p6716_p2), [#allocation3], %s3748_s24 }
 0x254   : > { %p6717_p5 = scmp.ne.s32.totalorder (!%p6716_p2), %s6676_s2, 0 }
 0x259   : > { %5251 = dma.done.wait (%p6717_p5), %s762_s12, 512  }
 0x25a   : > { %5253 = vsyncadd (%p6717_p5), %s762_s12, 4294966784  ;;  %s3749_s3 = sshll.u32 %s763_s19, 2  ;;  %s771_s1 = scalar_lea.sflag [#allocation7], %s761_s9 }
 0x25b   : > { %s6129_s30 = scalar_lea.vmem [#allocation6], %s3749_s3 }
 0x25c   : > { %5255 = dma.done.wait (%p6717_p5), %s771_s1, 64  }
 0x25d   : > { %5257 = vsyncadd (%p6717_p5), %s771_s1, 4294967232  ;;  %p6718_p0 = scmp.eq.s32.totalorder %s5554_s26, 0 }
 0x25f   : > { %5259 = dma.done.wait (%p6718_p0), [#allocation7], 16   ;;  %p6719_p10 = pmov %p6718_p0 }
 0x260   : > { %p6720_p1 = pmov %p6718_p0 }
 0x261   : > { %5261 = vsyncadd (%p6719_p10), [#allocation7], 4294967280 }
 0x262   : > { %5263 = dma.done.wait (%p6720_p1), [#allocation10], 528   ;;  %p6721_p13 = pmov %p6718_p0 }
 0x263   : > { %p6722_p9 = pmov %p6718_p0 }
 0x264   : > { %5265 = vsyncadd (%p6721_p13), [#allocation10], 4294966768 }
 0x265   : > { %5267 = dma.done.wait (%p6722_p9), [#allocation13], 1024   ;;  %p6723_p11 = pmov %p6718_p0 }
 0x266   : > { %p6724_p7 = pmov %p6718_p0 }
 0x267   : > { %5269 = vsyncadd (%p6723_p11), [#allocation13], 4294966272 }
 0x268   : > { %5271 = dma.done.wait (%p6724_p7), [#allocation16], 544   ;;  %p6725_p4 = pmov %p6718_p0 }
 0x269   : > { %p6726_p8 = pmov %p6718_p0 }
 0x26a   : > { %5273 = vsyncadd (%p6725_p4), [#allocation16], 4294966752 }
 0x26b   : > { %5275 = dma.done.wait (%p6726_p8), [#allocation19], 544   ;;  %p6727_p12 = pmov %p6718_p0 }
 0x26c   : > { %p6728_p3 = pmov %p6718_p0 }
 0x26d   : > { %5277 = vsyncadd (%p6727_p12), [#allocation19], 4294966752 }
 0x26e   : > { %5279 = dma.done.wait (%p6728_p3), [#allocation22], 2080   ;;  %p6729_p6 = pmov %p6718_p0 }
 0x26f   : > { %p6730_p2 = pmov %p6718_p0 }
 0x270   : > { %5281 = vsyncadd (%p6729_p6), [#allocation22], 4294965216 }
 0x271   : > { %5283 = dma.done.wait (%p6730_p2), [#allocation25], 64   ;;  %p6731_p5 = pmov %p6718_p0 }
 0x273   : > { %5285 = vsyncadd (%p6731_p5), [#allocation25], 4294967232 }
 0x274   : > { %5287 = dma.done.wait (%p6718_p0), [#allocation28], 32   ;;  %p6732_p10 = pmov %p6718_p0 }
 0x275   : > { %s6733_s2 = sld [smem:[#allocation48_spill]]  ;;  %p6734_p1 = scmp.ne.s32.totalorder %s6709_s15, 0 }
 0x276   : > { %5289 = vsyncadd (%p6732_p10), [#allocation28], 4294967264 }
 0x27b   : > { %s837_s27 = sand.u32 1, %s6733_s2  }
 0x27c   : > { %s6168_s13 = sshll.u32 %s837_s27, 4 }
 0x27d   : > { %s839_s8 = scalar_lea.vmem [#allocation29], %s6168_s13 }
 0x27e   : > { %5291 = dma.done.wait (%p6734_p1), %s762_s12, 256  }
 0x27f   : > { %5293 = vsyncadd (%p6734_p1), %s762_s12, 4294967040  ;;  %s6175_s5 = scalar_lea.vmem [#allocation30], %s837_s27 }
 0x280   : > { %5295 = dma.done.wait (%p6734_p1), %s771_s1, 16  }
 0x281   : > { %5297 = vsyncadd (%p6734_p1), %s771_s1, 4294967280  ;;  %s911_s26 = sand.u32 1, %s5308_s28   ;;  %s6735_s11 = sld [smem:[#allocation51_spill]] }
 0x282   : > { %s3765_s21 = sshll.u32 %s911_s26, 5 }
 0x283   : > { %s6184_s7 = scalar_lea.vmem [#allocation31], %s3765_s21 }
 0x287   : > { %p3766_p13 = scmp.ne.s32.totalorder %s6735_s11, 0 }
 0x288   : > { %v922_v0 = vld [vmem:[%s6123_s17] sm:$0xff] (!%p3766_p13)  ;;  %vm940_vm0 = vcmask (!%p3766_p13), 261120   ;;  %v924_v1 = vld [vmem:[%s6123_s17 + $0x10] sm:$0xff] (!%p3766_p13)  ;;  %v923_v2 = vld [vmem:[%s6123_s17 + $0x8] sm:$0xff] (!%p3766_p13)  ;;  %vm5383_vm1 = vmmov (!%p3766_p13), 0   ;;  %vm1549_vm2 = vcmask (!%p3766_p13), 1043456  }
 0x289   : > { %921 = sbr.rel (%p3766_p13) target bundleno = 5585 (0x15d1), region = 168  ;;  %v941_v3 = vsel (!%p3766_p13), %vm940_vm0, %v922_v0, 0.0  ;;  %v947_v4 = vsel (!%p3766_p13), %vm940_vm0, %v924_v1, 0.0  ;;  %v925_v5 = vld [vmem:[%s6123_s17 + $0x18] sm:$0xff] (!%p3766_p13)  ;;  %v944_v6 = vsel (!%p3766_p13), %vm940_vm0, %v923_v2, 0.0  ;;  %v4528_v28 = vld [vmem:[#allocation11] sm:$0xff] (!%p3766_p13)  }
 0x28a   : > { %942 = vadd.xlane.f32.xlu0 (!%p3766_p13), %v941_v3  ;;  %948 = vadd.xlane.f32.xlu1 (!%p3766_p13), %v947_v4  ;;  %v950_v7 = vsel (!%p3766_p13), %vm940_vm0, %v925_v5, 0.0  ;;  %v4529_v29 = vld [vmem:[#allocation11 + $0x8] sm:$0xff] (!%p3766_p13)   ;;  %v4530_v30 = vld [vmem:[#allocation12] sm:$0xff] (!%p3766_p13)   ;;  %v3767_v45 = vld [vmem:[#allocation8] ss:$0 sm:$0xff] (!%p3766_p13)  ;;  %vm1497_vm3 = vcmask (!%p3766_p13), 64512  }
 0x28b   : > { %4011 = vmatprep.subr.bf16.mxu1 (!%p3766_p13), %v4528_v28  ;;  %v3768_v51 = vld [vmem:[#allocation9] ss:$0 sm:$0xff] (!%p3766_p13)  ;;  %v4531_v63 = vld [vmem:[#allocation12 + $0x8] sm:$0xff] (!%p3766_p13)  }
 0x28c   : > { %4012 = vmatpush3.bf16.msra.mxu1 (!%p3766_p13), %v4528_v28 }
 0x28d   : > { %4013 = vmatprep.subr.bf16.mxu1 (!%p3766_p13), %v4529_v29 }
 0x28e   : > { %945 = vadd.xlane.f32.xlu0 (!%p3766_p13), %v944_v6  ;;  %951 = vadd.xlane.f32.xlu1 (!%p3766_p13), %v950_v7 }
 0x290   : > { %4014 = vmatpush3.bf16.msra.mxu1 %v4529_v29 }
 0x291   : > { %4019 = vmatprep.subr.bf16.mxu1 %v4530_v30 }
 0x317   : > { %v943_v8 = vpop.xlane.xlu0 %942  ;;  %v949_v9 = vpop.xlane.xlu1 %948 }
 0x318   : > { %v954_v10 = vmul.f32 0.03125, %v943_v8  ;;  %v956_v11 = vmul.f32 0.03125, %v949_v9 }
 0x31a   : > { %v958_v12 = vsub.f32 %v922_v0, %v954_v10  ;;  %v960_v13 = vsub.f32 %v924_v1, %v956_v11  ;;  %v4532_v0 = vld [vmem:[#allocation14] sm:$0xff]   ;;  %v4533_v1 = vld [vmem:[#allocation14 + $0x8] sm:$0xff]  }
 0x31b   : > { %v946_v14 = vpop.xlane.xlu0 %945  ;;  %v952_v15 = vpop.xlane.xlu1 %951 }
 0x31c   : > { %v955_v16 = vmul.f32 0.03125, %v946_v14  ;;  %v957_v17 = vmul.f32 0.03125, %v952_v15  ;;  %v962_v18 = vmul.f32 %v958_v12, %v958_v12  ;;  %v964_v19 = vmul.f32 %v960_v13, %v960_v13 }
 0x31e   : > { %v959_v20 = vsub.f32 %v923_v2, %v955_v16  ;;  %v961_v21 = vsub.f32 %v925_v5, %v957_v17  ;;  %v966_v22 = vsel %vm940_vm0, %v962_v18, 0.0  ;;  %v972_v23 = vsel %vm940_vm0, %v964_v19, 0.0 }
 0x31f   : > { %967 = vadd.xlane.f32.xlu0 %v966_v22  ;;  %v5382_v2 = vmov 0.0  }
 0x320   : > { %v963_v24 = vmul.f32 %v959_v20, %v959_v20  ;;  %v965_v25 = vmul.f32 %v961_v21, %v961_v21  ;;  %4041 = vmatprep.subr.bf16.mxu0 %v5382_v2  ;;  %4043 = vmatprep.mubr.msk.bf16.mxu0 %vm5383_vm1, %v5382_v2 }
 0x322   : > { %v969_v26 = vsel %vm940_vm0, %v963_v24, 0.0  ;;  %v975_v27 = vsel %vm940_vm0, %v965_v25, 0.0 }
 0x323   : > { %973 = vadd.xlane.f32.xlu0 %v972_v23  ;;  %970 = vadd.xlane.f32.xlu1 %v969_v26 }
 0x327   : > { %976 = vadd.xlane.f32.xlu1 %v975_v27 }
 0x3ac   : > { %v968_v31 = vpop.xlane.xlu0 %967 }
 0x3ad   : > { %v978_v32 = vmul.f32 0.03125, %v968_v31 }
 0x3af   : > { %v982_v33 = vadd.f32 1e-06, %v978_v32 }
 0x3b0   : > { %v971_v34 = vpop.xlane.xlu1 %970  ;;  %v974_v35 = vpop.xlane.xlu0 %973 }
 0x3b1   : > { %4564 = vrsqrt.f32 %v982_v33  ;;  %v979_v36 = vmul.f32 0.03125, %v971_v34  ;;  %v980_v37 = vmul.f32 0.03125, %v974_v35  ;;  %v1445_v35 = vlaneseq }
 0x3b3   : > { %v983_v38 = vadd.f32 1e-06, %v979_v36  ;;  %v984_v39 = vadd.f32 1e-06, %v980_v37  ;;  %v926_v36 = vld [vmem:[%s6129_s30] sm:$0x1] }
 0x3b4   : > { %v977_v40 = vpop.xlane.xlu1 %976  ;;  %v1446_v37 = vshrl.u32 %v1445_v35, 7 }
 0x3b5   : > { %4566 = vrsqrt.f32 %v983_v38  ;;  %v981_v41 = vmul.f32 0.03125, %v977_v40  ;;  %v927_v38 = vld [vmem:[%s6129_s30 + $0x1] sm:$0x1] }
 0x3b6   : > { %4568 = vrsqrt.f32 %v984_v39  ;;  %v930_v39 = vsub.f32 1.0, %v926_v36  ;;  %v1447_v40 = vsub.s32 0, %v1446_v37 }
 0x3b7   : > { %v985_v42 = vadd.f32 1e-06, %v981_v41  ;;  %v931_v41 = vsub.f32 1.0, %v927_v38 }
 0x3b9   : > { %4570 = vrsqrt.f32 %v985_v42  ;;  %v934_v42 = vmul.f32 -1e+09, %v930_v39 }
 0x3bb   : > { %v4565_v43 = vpop.eup %4564 }
 0x3bc   : > { %v990_v44 = vmul.f32 %v4565_v43, %v958_v12  ;;  %v928_v43 = vld [vmem:[%s6129_s30 + $0x2] sm:$0x1] }
 0x3be   : > { %v1000_v49 = vmul.f32 %v3767_v45, %v990_v44  ;;  %v6254_v44 = vrot.slane %v926_v36, %v1447_v40 }
 0x3bf   : > { %v4567_v46 = vpop.eup %4566 }
 0x3c0   : > { %v4569_v47 = vpop.eup %4568  ;;  %v991_v48 = vmul.f32 %v4567_v46, %v959_v20  ;;  %v6199_v55 = vadd.f32 %v3768_v51, %v1000_v49  ;;  %v929_v46 = vld [vmem:[%s6129_s30 + $0x3] sm:$0x1]  ;;  %v932_v49 = vsub.f32 1.0, %v928_v43 }
 0x3c1   : > { %v992_v50 = vmul.f32 %v4569_v47, %v960_v13  ;;  %v6257_v47 = vrot.slane %v927_v38, %v1447_v40 }
 0x3c2   : > { %v1001_v52 = vmul.f32 %v3767_v45, %v991_v48  ;;  %v6259_v48 = vrot.slane %v934_v42, %v1447_v40 }
 0x3c3   : > { %v4571_v53 = vpop.eup %4570  ;;  %v1002_v57 = vmul.f32 %v3767_v45, %v992_v50 }
 0x3c4   : > { %v993_v54 = vmul.f32 %v4571_v53, %v961_v21  ;;  %v6201_v56 = vadd.f32 %v3768_v51, %v1001_v52 }
 0x3c5   : > { %v6206_v60 = vadd.f32 %v3768_v51, %v1002_v57 }
 0x3c6   : > { %v1014_v58 = vpack.c.bf16 %v6201_v56, %v6199_v55  ;;  %v1003_v59 = vmul.f32 %v3767_v45, %v993_v54  ;;  %v935_v45 = vmul.f32 -1e+09, %v931_v41  ;;  %v933_v54 = vsub.f32 1.0, %v929_v46 }
 0x3c8   : > { %4015 = vmatprep.mubr.msk.bf16.mxu1 %vm940_vm0, %v1014_v58  ;;  %v6208_v61 = vadd.f32 %v3768_v51, %v1003_v59  ;;  %v6262_v53 = vrot.slane %v935_v45, %v1447_v40 }
 0x3ca   : > { %v1015_v62 = vpack.c.bf16 %v6208_v61, %v6206_v60 }
 0x3cc   : > { %4016 = vmatmul.mubr.msk.bf16.vlgmr.msra.gmra.mrb[0].mxu1 %vm940_vm0, %v1015_v62 }
 0x3cd   : > { %4020 = vmatpush3.bf16.msra.mxu1 %v4530_v30  ;;  %4023 = vmatprep.mubr.msk.bf16.mxu1 %vm940_vm0, %v1014_v58 }
 0x3ce   : > { %4021 = vmatprep.subr.bf16.mxu1 %v4531_v63 }
 0x3d1   : > { %4022 = vmatpush3.bf16.msra.mxu1 %v4531_v63 }
 0x3d2   : > { %4027 = vmatprep.subr.bf16.mxu1 %v4532_v0 }
 0x3d4   : > { %4024 = vmatmul.mubr.msk.bf16.vlgmr.msra.gmra.mrb[4].mxu1 %vm940_vm0, %v1015_v62 }
 0x3d5   : > { %4028 = vmatpush3.bf16.msra.mxu1 %v4532_v0  ;;  %4031 = vmatprep.mubr.msk.bf16.mxu1 %vm940_vm0, %v1014_v58 }
 0x3d6   : > { %4029 = vmatprep.subr.bf16.mxu1 %v4533_v1 }
 0x3d9   : > { %4030 = vmatpush3.bf16.msra.mxu1 %v4533_v1  ;;  %v936_v1 = vmul.f32 -1e+09, %v932_v49 }
 0x3da   : > { %4035 = vmatprep.subr.bf16.mxu1 %v5382_v2 }
 0x3dc   : > { %4032 = vmatmul.mubr.msk.bf16.vlgmr.msra.gmra.mrb[8].mxu1 %vm940_vm0, %v1015_v62 }
 0x3dd   : > { %4037 = vmatprep.mubr.msk.bf16.mxu1 %vm5383_vm1, %v5382_v2 }
 0x49f   : > { %v4017_v3 = vpop.f32.mrb[0].mxu1 }
 0x4a0   : > { %v1072_v4 = vpop.f32.mrb[1].mxu1  ;;  %v1219_v26 = vmul.f32 0.17677669, %v4017_v3 }
 0x4a1   : > { %v4018_v5 = vpop.f32.mrb[2].mxu1  ;;  %v1217_v14 = vmul.f32 0.17677669, %v1072_v4 }
 0x4a2   : > { %v1075_v6 = vpop.f32.mrb[3].mxu1  ;;  %v1220_v28 = vmul.f32 0.17677669, %v4018_v5  ;;  %v3892_v30 = vpack.c.bf16 %v1219_v26, %v1219_v26 }
 0x4a3   : > { %v1218_v16 = vmul.f32 0.17677669, %v1075_v6  ;;  %v3890_v20 = vpack.c.bf16 %v1217_v14, %v1217_v14 }
 0x4a4   : > { %v3893_v32 = vpack.c.bf16 %v1220_v28, %v1220_v28 }
 0x4a5   : > { %v3891_v24 = vpack.c.bf16 %v1218_v16, %v1218_v16 }
 0x4a7   : > { %v4025_v7 = vpop.f32.mrb[4].mxu1 }
 0x4a8   : > { %v1137_v8 = vpop.f32.mrb[5].mxu1  ;;  %v3896_v17 = vpack.c.bf16 %v4025_v7, %v4025_v7  ;;  %v6268_v7 = vrot.slane %v928_v43, %v1447_v40 }
 0x4a9   : > { %v3894_v9 = vpack.c.bf16 %v1137_v8, %v1137_v8  ;;  %v4026_v10 = vpop.f32.mrb[6].mxu1  ;;  %v937_v8 = vmul.f32 -1e+09, %v933_v54 }
 0x4aa   : > { %v1140_v11 = vpop.f32.mrb[7].mxu1  ;;  %v3897_v21 = vpack.c.bf16 %v4026_v10, %v4026_v10  ;;  %v1353_v25 = vsel %vm940_vm0, %v3896_v17, 0  ;;  %v6271_v10 = vrot.slane %v929_v46, %v1447_v40 }
 0x4ab   : > { %v1261_v12 = vsel %vm940_vm0, %v3894_v9, 0  ;;  %v3895_v13 = vpack.c.bf16 %v1140_v11, %v1140_v11  ;;  %v6273_v11 = vrot.slane %v936_v1, %v1447_v40 }
 0x4ac   : > { %4036 = vmatpush3.bf16.xpose.msra.mxu1 %v1261_v12  ;;  %v1399_v27 = vsel %vm940_vm0, %v3897_v21, 0 }
 0x4ad   : > { %v1307_v15 = vsel %vm940_vm0, %v3895_v13, 0  ;;  %4047 = vmatprep.subr.bf16.mxu1 %v5382_v2 }
 0x4ae   : > { %4042 = vmatpush3.bf16.xpose.msra.mxu0 %v1307_v15  ;;  %v6276_v15 = vrot.slane %v937_v8, %v1447_v40 }
 0x4af   : > { %v6226_v18 = vpop.f32.mrb[8].mxu1  ;;  %4053 = vmatprep.subr.bf16.mxu0 %v5382_v2 }
 0x4b0   : > { %v1202_v19 = vpop.f32.mrb[9].mxu1 }
 0x4b1   : > { %v6229_v22 = vpop.f32.mrb[10].mxu1  ;;  %v3898_v29 = vpack.c.bf16 %v1202_v19, %v1202_v19 }
 0x4b2   : > { %v1205_v23 = vpop.f32.mrb[11].mxu1  ;;  %v3901_v1 = vpack.c.bf16 %v6229_v22, %v6229_v22 }
 0x4b3   : > { %4038 = vmatmul.mubr.msk.bf16.vlgmr.msra.gmra.mrb[12].mxu1 %vm940_vm0, %v3890_v20  ;;  %v3899_v31 = vpack.c.bf16 %v1205_v23, %v1205_v23  ;;  %v1551_v33 = vsel %vm1549_vm2, %v3898_v29, 0 }
 0x4b4   : > { %4048 = vmatpush3.bf16.xpose.msra.mxu1 %v1353_v25  ;;  %4049 = vmatprep.mubr.msk.bf16.mxu1 %vm5383_vm1, %v5382_v2  ;;  %v1689_v8 = vsel %vm1549_vm2, %v3901_v1, 0 }
 0x4b5   : > { %4044 = vmatmul.mubr.msk.bf16.vlgmr.msra.gmra.mrb[0].mxu0 %vm940_vm0, %v3891_v24  ;;  %4059 = vmatprep.subr.bf16.mxu1 %v5382_v2  ;;  %v1597_v34 = vsel %vm1549_vm2, %v3899_v31, 0 }
 0x4b6   : > { %4054 = vmatpush3.bf16.xpose.msra.mxu0 %v1399_v27  ;;  %4055 = vmatprep.mubr.msk.bf16.mxu0 %vm5383_vm1, %v5382_v2 }
 0x4b7   : > { %4065 = vmatprep.subr.bf16.mxu0 %v5382_v2 }
 0x4bb   : > { %4050 = vmatmul.mubr.msk.bf16.vlgmr.msra.gmra.mrb[16].mxu1 %vm940_vm0, %v3892_v30 }
 0x4bc   : > { %4060 = vmatpush3.bf16.msra.mxu1 %v1551_v33  ;;  %4061 = vmatprep.mubr.msk.bf16.mxu1 %vm5383_vm1, %v5382_v2 }
 0x4bd   : > { %4056 = vmatmul.mubr.msk.bf16.vlgmr.msra.gmra.mrb[4].mxu0 %vm940_vm0, %v3893_v32  ;;  %4071 = vmatprep.subr.bf16.mxu1 %v5382_v2 }
 0x4be   : > { %4066 = vmatpush3.bf16.msra.mxu0 %v1597_v34  ;;  %4067 = vmatprep.mubr.msk.bf16.mxu0 %vm5383_vm1, %v5382_v2 }
 0x4bf   : > { %4077 = vmatprep.subr.bf16.mxu0 %v5382_v2 }
 0x586   : > { %v1297_v50 = vpop.f32.mrb[12].mxu1 }
 0x587   : > { %v1465_v51 = vmul.f32 %v6254_v44, %v1297_v50  ;;  %v4039_v52 = vpop.f32.mrb[13].mxu1 }
 0x588   : > { %v1300_v57 = vpop.f32.mrb[14].mxu1  ;;  %v1343_v58 = vpop.f32.mrb[0].mxu0 }
 0x589   : > { %v1466_v59 = vmul.f32 %v6257_v47, %v1343_v58  ;;  %v4040_v62 = vpop.f32.mrb[15].mxu1  ;;  %v4045_v63 = vpop.f32.mrb[1].mxu0  ;;  %v1493_v0 = vadd.f32 %v6259_v48, %v1465_v51 }
 0x58a   : > { %v1346_v3 = vpop.f32.mrb[2].mxu0  ;;  %v3900_v62 = vpack.c.bf16 %v6226_v18, %v6226_v18 }
 0x58b   : > { %v4046_v4 = vpop.f32.mrb[3].mxu0  ;;  %v1498_v5 = vsel %vm1497_vm3, %v1493_v0, -inf  ;;  %v1494_v6 = vadd.f32 %v6262_v53, %v1466_v59 }
 0x58c   : > { %1499 = vmax.xlane.f32.xlu0 %v1498_v5  ;;  %v1643_v5 = vsel %vm1549_vm2, %v3900_v62, 0 }
 0x58d   : > { %v1501_v9 = vsel %vm1497_vm3, %v1494_v6, -inf }
 0x58e   : > { %1502 = vmax.xlane.f32.xlu1 %v1501_v9  ;;  %v1389_v12 = vpop.f32.mrb[16].mxu1 }
 0x58f   : > { %v1467_v13 = vmul.f32 %v6268_v7, %v1389_v12  ;;  %v4051_v14 = vpop.f32.mrb[17].mxu1 }
 0x590   : > { %v1392_v16 = vpop.f32.mrb[18].mxu1  ;;  %v1435_v17 = vpop.f32.mrb[4].mxu0 }
 0x591   : > { %v1468_v19 = vmul.f32 %v6271_v10, %v1435_v17  ;;  %v4052_v20 = vpop.f32.mrb[19].mxu1  ;;  %v4057_v21 = vpop.f32.mrb[5].mxu0  ;;  %v1495_v23 = vadd.f32 %v6273_v11, %v1467_v13  ;;  %v4534_v16 = vld [vmem:[#allocation15] sm:$0xff]   ;;  %v4535_v17 = vld [vmem:[#allocation15 + $0x8] sm:$0xff]  }
 0x592   : > { %v1438_v24 = vpop.f32.mrb[6].mxu0 }
 0x593   : > { %v4058_v25 = vpop.f32.mrb[7].mxu0  ;;  %v1504_v26 = vsel %vm1497_vm3, %v1495_v23, -inf  ;;  %v1496_v27 = vadd.f32 %v6276_v15, %v1468_v19 }
 0x594   : > { %1505 = vmax.xlane.f32.xlu0 %v1504_v26 }
 0x595   : > { %v1507_v28 = vsel %vm1497_vm3, %v1496_v27, -inf }
 0x596   : > { %1508 = vmax.xlane.f32.xlu1 %v1507_v28 }
 0x619   : > { %v1500_v29 = vpop.xlane.xlu0 %1499 }
 0x61a   : > { %v1510_v30 = vsub.f32 %v1493_v0, %v1500_v29 }
 0x61b   : > { %v1503_v31 = vpop.xlane.xlu1 %1502 }
 0x61c   : > { %v1514_v32 = vmul.f32 1.442695, %v1510_v30  ;;  %v1511_v33 = vsub.f32 %v1494_v6, %v1503_v31 }
 0x61e   : > { %4572 = vpow2.f32 %v1514_v32  ;;  %v1516_v34 = vmul.f32 1.442695, %v1511_v33 }
 0x620   : > { %4574 = vpow2.f32 %v1516_v34 }
 0x621   : > { %v1506_v35 = vpop.xlane.xlu0 %1505 }
 0x622   : > { %v1512_v36 = vsub.f32 %v1495_v23, %v1506_v35 }
 0x623   : > { %v1509_v37 = vpop.xlane.xlu1 %1508 }
 0x624   : > { %v1518_v38 = vmul.f32 1.442695, %v1512_v36  ;;  %v1513_v39 = vsub.f32 %v1496_v27, %v1509_v37 }
 0x626   : > { %4576 = vpow2.f32 %v1518_v38  ;;  %v1520_v40 = vmul.f32 1.442695, %v1513_v39 }
 0x628   : > { %v4573_v41 = vpop.eup %4572  ;;  %4578 = vpow2.f32 %v1520_v40 }
 0x629   : > { %v1522_v42 = vsel %vm1497_vm3, %v4573_v41, 0.0 }
 0x62a   : > { %v4575_v43 = vpop.eup %4574  ;;  %1523 = vadd.xlane.f32.xlu0 %v1522_v42 }
 0x62b   : > { %v1525_v45 = vsel %vm1497_vm3, %v4575_v43, 0.0 }
 0x62c   : > { %1526 = vadd.xlane.f32.xlu1 %v1525_v45 }
 0x630   : > { %v4577_v46 = vpop.eup %4576 }
 0x631   : > { %v1528_v49 = vsel %vm1497_vm3, %v4577_v46, 0.0 }
 0x632   : > { %v4579_v50 = vpop.eup %4578  ;;  %1529 = vadd.xlane.f32.xlu0 %v1528_v49 }
 0x633   : > { %v1531_v51 = vsel %vm1497_vm3, %v4579_v50, 0.0 }
 0x634   : > { %1532 = vadd.xlane.f32.xlu1 %v1531_v51 }
 0x6b7   : > { %v1524_v52 = vpop.xlane.xlu0 %1523 }
 0x6b8   : > { %4580 = vrcp.f32 %v1524_v52 }
 0x6b9   : > { %v1527_v54 = vpop.xlane.xlu1 %1526 }
 0x6ba   : > { %4582 = vrcp.f32 %v1527_v54 }
 0x6bf   : > { %v1530_v57 = vpop.xlane.xlu0 %1529 }
 0x6c0   : > { %4584 = vrcp.f32 %v1530_v57 }
 0x6c1   : > { %v1533_v58 = vpop.xlane.xlu1 %1532 }
 0x6c2   : > { %v4581_v59 = vpop.eup %4580  ;;  %4586 = vrcp.f32 %v1533_v58 }
 0x6c3   : > { %v1538_v63 = vmul.f32 %v4581_v59, %v4573_v41 }
 0x6c4   : > { %v4583_v0 = vpop.eup %4582 }
 0x6c5   : > { %v1539_v3 = vmul.f32 %v4583_v0, %v4575_v43  ;;  %v1542_v4 = vpack.c.bf16 %v1538_v63, %v1538_v63 }
 0x6c7   : > { %4062 = vmatmul.mubr.msk.bf16.vlgmr.msra.gmra.mrb[20].mxu1 %vm1497_vm3, %v1542_v4  ;;  %v1543_v6 = vpack.c.bf16 %v1539_v3, %v1539_v3 }
 0x6c8   : > { %4072 = vmatpush3.bf16.msra.mxu1 %v1643_v5  ;;  %4073 = vmatprep.mubr.msk.bf16.mxu1 %vm5383_vm1, %v5382_v2 }
 0x6c9   : > { %4068 = vmatmul.mubr.msk.bf16.vlgmr.msra.gmra.mrb[8].mxu0 %vm1497_vm3, %v1543_v6  ;;  %4083 = vmatprep.subr.bf16.mxu1 %v4534_v16 }
 0x6ca   : > { %v4585_v18 = vpop.eup %4584  ;;  %4078 = vmatpush3.bf16.msra.mxu0 %v1689_v8  ;;  %4079 = vmatprep.mubr.msk.bf16.mxu0 %vm5383_vm1, %v5382_v2 }
 0x6cb   : > { %v1540_v22 = vmul.f32 %v4585_v18, %v4577_v46 }
 0x6cc   : > { %v4587_v9 = vpop.eup %4586 }
 0x6cd   : > { %v1541_v12 = vmul.f32 %v4587_v9, %v4579_v50  ;;  %v1544_v13 = vpack.c.bf16 %v1540_v22, %v1540_v22 }
 0x6cf   : > { %4074 = vmatmul.mubr.msk.bf16.vlgmr.msra.gmra.mrb[24].mxu1 %vm1497_vm3, %v1544_v13  ;;  %v1545_v14 = vpack.c.bf16 %v1541_v12, %v1541_v12  ;;  %v4536_v12 = vld [vmem:[#allocation20] sm:$0xff]   ;;  %v4537_v13 = vld [vmem:[#allocation20 + $0x8] sm:$0xff]  }
 0x6d0   : > { %4084 = vmatpush3.bf16.msra.mxu1 %v4534_v16  ;;  %4091 = vmatprep.subr.bf16.mxu0 %v4536_v12 }
 0x6d1   : > { %4080 = vmatmul.mubr.msk.bf16.vlgmr.msra.gmra.mrb[12].mxu0 %vm1497_vm3, %v1545_v14  ;;  %4085 = vmatprep.subr.bf16.mxu1 %v4535_v17 }
 0x6d2   : > { %4092 = vmatpush3.bf16.msra.mxu0 %v4536_v12 }
 0x6d3   : > { %4093 = vmatprep.subr.bf16.mxu0 %v4537_v13 }
 0x6d4   : > { %4086 = vmatpush3.bf16.msra.mxu1 %v4535_v17 }
 0x6d6   : > { %4094 = vmatpush3.bf16.msra.mxu0 %v4537_v13 }
 0x79a   : > { %v1587_v19 = vpop.f32.mrb[20].mxu1 }
 0x79b   : > { %v4063_v20 = vpop.f32.mrb[21].mxu1 }
 0x79c   : > { %v1590_v21 = vpop.f32.mrb[22].mxu1  ;;  %v1633_v23 = vpop.f32.mrb[8].mxu0 }
 0x79d   : > { %v1731_v24 = vpack.c.bf16 %v1633_v23, %v1587_v19  ;;  %v4064_v25 = vpop.f32.mrb[23].mxu1  ;;  %v4069_v26 = vpop.f32.mrb[9].mxu0 }
 0x79e   : > { %v1636_v27 = vpop.f32.mrb[10].mxu0 }
 0x79f   : > { %v4070_v28 = vpop.f32.mrb[11].mxu0  ;;  %4087 = vmatprep.mubr.msk.bf16.mxu1 %vm940_vm0, %v1731_v24 }
 0x7a2   : > { %v1679_v29 = vpop.f32.mrb[24].mxu1 }
 0x7a3   : > { %v4075_v30 = vpop.f32.mrb[25].mxu1 }
 0x7a4   : > { %v1682_v31 = vpop.f32.mrb[26].mxu1  ;;  %v1725_v32 = vpop.f32.mrb[12].mxu0  ;;  %v3805_v30 = vld [vmem:[#allocation17] ss:$0 sm:$0xff] }
 0x7a5   : > { %v1732_v33 = vpack.c.bf16 %v1725_v32, %v1679_v29  ;;  %v4076_v34 = vpop.f32.mrb[27].mxu1  ;;  %v4081_v35 = vpop.f32.mrb[13].mxu0 }
 0x7a6   : > { %v1728_v36 = vpop.f32.mrb[14].mxu0 }
 0x7a7   : > { %v4082_v37 = vpop.f32.mrb[15].mxu0  ;;  %4088 = vmatmul.mubr.msk.bf16.vlgmr.msra.gmra.mrb[28].mxu1 %vm940_vm0, %v1732_v33  ;;  %v3806_v36 = vld [vmem:[#allocation18] ss:$0 sm:$0xff] }
 0x87a   : > { %v4089_v38 = vpop.f32.mrb[28].mxu1 }
 0x87b   : > { %v1789_v39 = vpop.f32.mrb[29].mxu1  ;;  %v1798_v43 = vadd.f32 %v4089_v38, %v6206_v60 }
 0x87c   : > { %v1790_v40 = vadd.f32 %v1789_v39, %v6199_v55  ;;  %v4090_v41 = vpop.f32.mrb[30].mxu1 }
 0x87d   : > { %v1792_v42 = vpop.f32.mrb[31].mxu1  ;;  %v1801_v49 = vadd.f32 %v4090_v41, %v6208_v61  ;;  %v1812_v51 = vsel %vm940_vm0, %v1798_v43, 0.0 }
 0x87e   : > { %v1793_v45 = vadd.f32 %v1792_v42, %v6201_v56  ;;  %v1806_v46 = vsel %vm940_vm0, %v1790_v40, 0.0 }
 0x87f   : > { %1807 = vadd.xlane.f32.xlu0 %v1806_v46  ;;  %v1815_v52 = vsel %vm940_vm0, %v1801_v49, 0.0 }
 0x880   : > { %v1809_v50 = vsel %vm940_vm0, %v1793_v45, 0.0 }
 0x881   : > { %1810 = vadd.xlane.f32.xlu1 %v1809_v50 }
 0x883   : > { %1813 = vadd.xlane.f32.xlu0 %v1812_v51 }
 0x885   : > { %1816 = vadd.xlane.f32.xlu1 %v1815_v52  ;;  %v4538_v52 = vld [vmem:[#allocation23] sm:$0xff]  }
 0x886   : > { %4099 = vmatprep.subr.bf16.mxu1 %v4538_v52 }
 0x887   : > { %4100 = vmatpush3.bf16.msra.mxu1 %v4538_v52 }
 0x90c   : > { %v1808_v55 = vpop.xlane.xlu0 %1807 }
 0x90d   : > { %v1818_v54 = vmul.f32 0.03125, %v1808_v55  ;;  %v4539_v55 = vld [vmem:[#allocation23 + $0x8] sm:$0xff]  }
 0x90e   : > { %v1811_v57 = vpop.xlane.xlu1 %1810  ;;  %4101 = vmatprep.subr.bf16.mxu1 %v4539_v55 }
 0x90f   : > { %v1822_v60 = vsub.f32 %v1790_v40, %v1818_v54  ;;  %v1819_v58 = vmul.f32 0.03125, %v1811_v57  ;;  %4102 = vmatpush3.bf16.msra.mxu1 %v4539_v55  ;;  %v4540_v54 = vld [vmem:[#allocation23 + $0x10] sm:$0xff]   ;;  %v4541_v57 = vld [vmem:[#allocation23 + $0x18] sm:$0xff]  }
 0x910   : > { %v1814_v56 = vpop.xlane.xlu0 %1813  ;;  %4103 = vmatprep.subr.bf16.mxu1 %v4540_v54 }
 0x911   : > { %v1823_v59 = vsub.f32 %v1793_v45, %v1819_v58  ;;  %v1820_v62 = vmul.f32 0.03125, %v1814_v56  ;;  %v1826_v63 = vmul.f32 %v1822_v60, %v1822_v60  ;;  %v4543_v58 = vld [vmem:[#allocation23 + $0x28] sm:$0xff]   ;;  %v4544_v56 = vld [vmem:[#allocation23 + $0x30] sm:$0xff]  }
 0x912   : > { %v1817_v0 = vpop.xlane.xlu1 %1816 }
 0x913   : > { %v1824_v61 = vsub.f32 %v1798_v43, %v1820_v62  ;;  %v1821_v1 = vmul.f32 0.03125, %v1817_v0  ;;  %v1830_v3 = vsel %vm940_vm0, %v1826_v63, 0.0  ;;  %v1827_v4 = vmul.f32 %v1823_v59, %v1823_v59  ;;  %4104 = vmatpush3.bf16.msra.mxu1 %v4540_v54  ;;  %v3807_v62 = vld [vmem:[#allocation21] ss:$0 sm:$0xff] }
 0x914   : > { %1831 = vadd.xlane.f32.xlu0 %v1830_v3  ;;  %4105 = vmatprep.subr.bf16.mxu1 %v4541_v57 }
 0x915   : > { %v1825_v5 = vsub.f32 %v1801_v49, %v1821_v1  ;;  %v1833_v6 = vsel %vm940_vm0, %v1827_v4, 0.0  ;;  %v1828_v8 = vmul.f32 %v1824_v61, %v1824_v61 }
 0x916   : > { %1834 = vadd.xlane.f32.xlu1 %v1833_v6 }
 0x917   : > { %v1836_v18 = vsel %vm940_vm0, %v1828_v8, 0.0  ;;  %v1829_v22 = vmul.f32 %v1825_v5, %v1825_v5  ;;  %4106 = vmatpush3.bf16.msra.mxu1 %v4541_v57 }
 0x918   : > { %1837 = vadd.xlane.f32.xlu0 %v1836_v18 }
 0x919   : > { %v1839_v9 = vsel %vm940_vm0, %v1829_v22, 0.0 }
 0x91a   : > { %1840 = vadd.xlane.f32.xlu1 %v1839_v9 }
 0x9a1   : > { %v1832_v14 = vpop.xlane.xlu0 %1831 }
 0x9a2   : > { %v1842_v16 = vmul.f32 0.03125, %v1832_v14 }
 0x9a3   : > { %v1835_v17 = vpop.xlane.xlu1 %1834 }
 0x9a4   : > { %v1846_v19 = vadd.f32 1e-06, %v1842_v16  ;;  %v1843_v20 = vmul.f32 0.03125, %v1835_v17 }
 0x9a5   : > { %v1838_v21 = vpop.xlane.xlu0 %1837 }
 0x9a6   : > { %4588 = vrsqrt.f32 %v1846_v19  ;;  %v1847_v23 = vadd.f32 1e-06, %v1843_v20  ;;  %v1844_v24 = vmul.f32 0.03125, %v1838_v21 }
 0x9a7   : > { %v1841_v25 = vpop.xlane.xlu1 %1840 }
 0x9a8   : > { %4590 = vrsqrt.f32 %v1847_v23  ;;  %v1848_v26 = vadd.f32 1e-06, %v1844_v24  ;;  %v1845_v27 = vmul.f32 0.03125, %v1841_v25 }
 0x9aa   : > { %4592 = vrsqrt.f32 %v1848_v26  ;;  %v1849_v28 = vadd.f32 1e-06, %v1845_v27 }
 0x9ac   : > { %4594 = vrsqrt.f32 %v1849_v28 }
 0x9b0   : > { %v4589_v29 = vpop.eup %4588 }
 0x9b1   : > { %v1854_v31 = vmul.f32 %v4589_v29, %v1822_v60  ;;  %v4542_v60 = vld [vmem:[#allocation23 + $0x20] sm:$0xff]  }
 0x9b2   : > { %v4591_v32 = vpop.eup %4590  ;;  %4107 = vmatprep.subr.bf16.mxu1 %v4542_v60 }
 0x9b3   : > { %v1855_v33 = vmul.f32 %v4591_v32, %v1823_v59  ;;  %v1864_v34 = vmul.f32 %v3805_v30, %v1854_v31  ;;  %4108 = vmatpush3.bf16.msra.mxu1 %v4542_v60  ;;  %v4545_v59 = vld [vmem:[#allocation23 + $0x38] sm:$0xff]   ;;  %v3812_v60 = vld [vmem:[#allocation24] ss:$0 sm:$0xff] }
 0x9b4   : > { %v4593_v35 = vpop.eup %4592  ;;  %4109 = vmatprep.subr.bf16.mxu1 %v4543_v58 }
 0x9b5   : > { %v1856_v37 = vmul.f32 %v4593_v35, %v1824_v61  ;;  %v1865_v38 = vmul.f32 %v3805_v30, %v1855_v33  ;;  %v6315_v42 = vadd.f32 %v3806_v36, %v1864_v34 }
 0x9b6   : > { %v4595_v39 = vpop.eup %4594 }
 0x9b7   : > { %v1866_v40 = vmul.f32 %v3805_v30, %v1856_v37  ;;  %v1857_v41 = vmul.f32 %v4595_v39, %v1825_v5  ;;  %v6317_v43 = vadd.f32 %v3806_v36, %v1865_v38  ;;  %4110 = vmatpush3.bf16.msra.mxu1 %v4543_v58 }
 0x9b8   : > { %4111 = vmatprep.subr.bf16.mxu1 %v4544_v56 }
 0x9b9   : > { %v1867_v45 = vmul.f32 %v3805_v30, %v1857_v41  ;;  %v1878_v46 = vpack.c.bf16 %v6317_v43, %v6315_v42  ;;  %v6322_v49 = vadd.f32 %v3806_v36, %v1866_v40 }
 0x9bb   : > { %4095 = vmatprep.mubr.msk.bf16.mxu0 %vm940_vm0, %v1878_v46  ;;  %v6324_v50 = vadd.f32 %v3806_v36, %v1867_v45  ;;  %4112 = vmatpush3.bf16.msra.mxu1 %v4544_v56 }
 0x9bc   : > { %4113 = vmatprep.subr.bf16.mxu1 %v4545_v59 }
 0x9bd   : > { %v1879_v51 = vpack.c.bf16 %v6324_v50, %v6322_v49 }
 0x9bf   : > { %4096 = vmatmul.mubr.msk.bf16.vlgmr.msra.gmra.mrb[16].mxu0 %vm940_vm0, %v1879_v51  ;;  %4114 = vmatpush3.bf16.msra.mxu1 %v4545_v59 }
 0x9c0   : > { %4149 = vmatprep.subr.bf16.mxu1 %v5382_v2 }
 0xa92   : > { %v4097_v63 = vpop.f32.mrb[16].mxu0 }
 0xa93   : > { %v1952_v0 = vadd.f32 %v4097_v63, %v3807_v62  ;;  %v1943_v61 = vpop.f32.mrb[17].mxu0 }
 0xa94   : > { %v1944_v1 = vadd.f32 %v3807_v62, %v1943_v61  ;;  %v4098_v3 = vpop.f32.mrb[18].mxu0 }
 0xa95   : > { %v1964_v4 = vmul.f32 0.044715, %v1952_v0  ;;  %v1955_v5 = vadd.f32 %v4098_v3, %v3807_v62  ;;  %v1946_v6 = vpop.f32.mrb[19].mxu0  ;;  %v1960_v37 = vmul.f32 0.5, %v1952_v0 }
 0xa96   : > { %v1962_v8 = vmul.f32 0.044715, %v1944_v1  ;;  %v1947_v18 = vadd.f32 %v3807_v62, %v1946_v6  ;;  %v1958_v40 = vmul.f32 0.5, %v1944_v1 }
 0xa97   : > { %v1968_v22 = vmul.f32 %v1964_v4, %v1952_v0  ;;  %v1965_v9 = vmul.f32 0.044715, %v1955_v5  ;;  %v1961_v38 = vmul.f32 0.5, %v1955_v5 }
 0xa98   : > { %v1966_v12 = vmul.f32 %v1962_v8, %v1944_v1  ;;  %v1963_v13 = vmul.f32 0.044715, %v1947_v18  ;;  %v1959_v41 = vmul.f32 0.5, %v1947_v18 }
 0xa99   : > { %v1972_v14 = vmul.f32 %v1968_v22, %v1952_v0  ;;  %v1969_v16 = vmul.f32 %v1965_v9, %v1955_v5 }
 0xa9a   : > { %v1970_v17 = vmul.f32 %v1966_v12, %v1944_v1  ;;  %v1967_v19 = vmul.f32 %v1963_v13, %v1947_v18 }
 0xa9b   : > { %v1976_v20 = vadd.f32 %v1972_v14, %v1952_v0  ;;  %v1973_v21 = vmul.f32 %v1969_v16, %v1955_v5 }
 0xa9c   : > { %v1971_v23 = vmul.f32 %v1967_v19, %v1947_v18  ;;  %v1974_v24 = vadd.f32 %v1970_v17, %v1944_v1 }
 0xa9d   : > { %v1980_v25 = vmul.f32 0.7978846, %v1976_v20  ;;  %v1977_v26 = vadd.f32 %v1973_v21, %v1955_v5 }
 0xa9e   : > { %v1975_v27 = vadd.f32 %v1971_v23, %v1947_v18  ;;  %v1978_v28 = vmul.f32 0.7978846, %v1974_v24 }
 0xa9f   : > { %4596 = vtanh.f32 %v1980_v25  ;;  %v1981_v29 = vmul.f32 0.7978846, %v1977_v26 }
 0xaa0   : > { %v1979_v30 = vmul.f32 0.7978846, %v1975_v27  ;;  %4598 = vtanh.f32 %v1978_v28 }
 0xaa1   : > { %4600 = vtanh.f32 %v1981_v29 }
 0xaa2   : > { %4602 = vtanh.f32 %v1979_v30 }
 0xaa9   : > { %v4597_v31 = vpop.eup %4596 }
 0xaaa   : > { %v4599_v32 = vpop.eup %4598  ;;  %v1988_v33 = vadd.f32 1.0, %v4597_v31  ;;  %v4546_v31 = vld [vmem:[#allocation11 + $0x10] sm:$0xff]  }
 0xaab   : > { %v4601_v34 = vpop.eup %4600  ;;  %v1986_v35 = vadd.f32 1.0, %v4599_v32  ;;  %4119 = vmatprep.subr.bf16.mxu0 %v4546_v31  ;;  %v4547_v32 = vld [vmem:[#allocation11 + $0x18] sm:$0xff]  }
 0xaac   : > { %v4603_v36 = vpop.eup %4602  ;;  %v1989_v39 = vadd.f32 1.0, %v4601_v34  ;;  %v1992_v46 = vmul.f32 %v1988_v33, %v1960_v37  ;;  %4120 = vmatpush3.bf16.msra.mxu0 %v4546_v31  ;;  %v4548_v33 = vld [vmem:[#allocation12 + $0x10] sm:$0xff]  }
 0xaad   : > { %v1987_v45 = vadd.f32 1.0, %v4603_v36  ;;  %v1990_v52 = vmul.f32 %v1986_v35, %v1958_v40  ;;  %4121 = vmatprep.subr.bf16.mxu0 %v4547_v32 }
 0xaae   : > { %v1993_v51 = vmul.f32 %v1989_v39, %v1961_v38 }
 0xaaf   : > { %v1991_v55 = vmul.f32 %v1987_v45, %v1959_v41 }
 0xab0   : > { %v1995_v54 = vpack.c.bf16 %v1993_v51, %v1992_v46  ;;  %4122 = vmatpush3.bf16.msra.mxu0 %v4547_v32 }
 0xab1   : > { %v1994_v57 = vpack.c.bf16 %v1991_v55, %v1990_v52  ;;  %4127 = vmatprep.subr.bf16.mxu0 %v4548_v33 }
 0xab3   : > { %4115 = vmatprep.mubr.bf16.mxu1 %v1994_v57 }
 0xab4   : > { %4116 = vmatmul.mubr.bf16.vlgmr.msra.gmra.mrb[32].mxu1 %v1995_v54  ;;  %v3821_v54 = vld [vmem:[#allocation26] ss:$0 sm:$0xff] }
 0xab5   : > { %4151 = vmatprep.mubr.msk.bf16.mxu1 %vm5383_vm1, %v5382_v2 }
 0xb87   : > { %v4117_v58 = vpop.f32.mrb[32].mxu1 }
 0xb88   : > { %v2101_v56 = vpop.f32.mrb[33].mxu1  ;;  %v2110_v59 = vadd.f32 %v4117_v58, %v3812_v60 }
 0xb89   : > { %v2102_v62 = vadd.f32 %v3812_v60, %v2101_v56  ;;  %v4118_v63 = vpop.f32.mrb[34].mxu1 }
 0xb8a   : > { %v2104_v0 = vpop.f32.mrb[35].mxu1  ;;  %v2113_v61 = vadd.f32 %v4118_v63, %v3812_v60  ;;  %v2118_v6 = vadd.f32 %v2110_v59, %v6322_v49 }
 0xb8b   : > { %v2105_v1 = vadd.f32 %v3812_v60, %v2104_v0  ;;  %v2116_v3 = vadd.f32 %v2102_v62, %v6315_v42  ;;  %v3822_v62 = vld [vmem:[#allocation27] ss:$0 sm:$0xff] }
 0xb8c   : > { %v2119_v18 = vadd.f32 %v2113_v61, %v6324_v50  ;;  %v2128_v22 = vsel %vm940_vm0, %v2118_v6, 0.0 }
 0xb8d   : > { %v2122_v4 = vsel %vm940_vm0, %v2116_v3, 0.0  ;;  %v2117_v5 = vadd.f32 %v2105_v1, %v6317_v43 }
 0xb8e   : > { %2123 = vadd.xlane.f32.xlu0 %v2122_v4  ;;  %v2131_v9 = vsel %vm940_vm0, %v2119_v18, 0.0 }
 0xb8f   : > { %v2125_v8 = vsel %vm940_vm0, %v2117_v5, 0.0 }
 0xb90   : > { %2126 = vadd.xlane.f32.xlu1 %v2125_v8 }
 0xb92   : > { %2129 = vadd.xlane.f32.xlu0 %v2128_v22 }
 0xb94   : > { %2132 = vadd.xlane.f32.xlu1 %v2131_v9 }
 0xc1b   : > { %v2124_v12 = vpop.xlane.xlu0 %2123 }
 0xc1c   : > { %v2134_v42 = vmul.f32 0.03125, %v2124_v12  ;;  %v4549_v12 = vld [vmem:[#allocation12 + $0x18] sm:$0xff]  }
 0xc1d   : > { %v2127_v13 = vpop.xlane.xlu1 %2126 }
 0xc1e   : > { %v2138_v14 = vsub.f32 %v2116_v3, %v2134_v42  ;;  %v2135_v16 = vmul.f32 0.03125, %v2127_v13  ;;  %v4550_v42 = vld [vmem:[#allocation14 + $0x10] sm:$0xff]   ;;  %v4551_v13 = vld [vmem:[#allocation14 + $0x18] sm:$0xff]  }
 0xc1f   : > { %v2130_v43 = vpop.xlane.xlu0 %2129 }
 0xc20   : > { %v2139_v17 = vsub.f32 %v2117_v5, %v2135_v16  ;;  %v2136_v49 = vmul.f32 0.03125, %v2130_v43  ;;  %v2142_v19 = vmul.f32 %v2138_v14, %v2138_v14 }
 0xc21   : > { %v2133_v20 = vpop.xlane.xlu1 %2132 }
 0xc22   : > { %v2140_v21 = vsub.f32 %v2118_v6, %v2136_v49  ;;  %v2137_v23 = vmul.f32 0.03125, %v2133_v20  ;;  %v2146_v50 = vsel %vm940_vm0, %v2142_v19, 0.0  ;;  %v2143_v24 = vmul.f32 %v2139_v17, %v2139_v17 }
 0xc23   : > { %2147 = vadd.xlane.f32.xlu0 %v2146_v50 }
 0xc24   : > { %v2141_v25 = vsub.f32 %v2119_v18, %v2137_v23  ;;  %v2149_v26 = vsel %vm940_vm0, %v2143_v24, 0.0  ;;  %v2144_v27 = vmul.f32 %v2140_v21, %v2140_v21 }
 0xc25   : > { %2150 = vadd.xlane.f32.xlu1 %v2149_v26 }
 0xc26   : > { %v2152_v28 = vsel %vm940_vm0, %v2144_v27, 0.0  ;;  %v2145_v29 = vmul.f32 %v2141_v25, %v2141_v25 }
 0xc27   : > { %2153 = vadd.xlane.f32.xlu0 %v2152_v28 }
 0xc28   : > { %v2155_v30 = vsel %vm940_vm0, %v2145_v29, 0.0 }
 0xc29   : > { %2156 = vadd.xlane.f32.xlu1 %v2155_v30 }
 0xcb0   : > { %v2148_v34 = vpop.xlane.xlu0 %2147 }
 0xcb1   : > { %v2158_v35 = vmul.f32 0.03125, %v2148_v34 }
 0xcb2   : > { %v2151_v36 = vpop.xlane.xlu1 %2150 }
 0xcb3   : > { %v2162_v37 = vadd.f32 1e-06, %v2158_v35  ;;  %v2159_v38 = vmul.f32 0.03125, %v2151_v36 }
 0xcb4   : > { %v2154_v39 = vpop.xlane.xlu0 %2153 }
 0xcb5   : > { %4604 = vrsqrt.f32 %v2162_v37  ;;  %v2163_v40 = vadd.f32 1e-06, %v2159_v38  ;;  %v2160_v41 = vmul.f32 0.03125, %v2154_v39 }
 0xcb6   : > { %v2157_v45 = vpop.xlane.xlu1 %2156 }
 0xcb7   : > { %4606 = vrsqrt.f32 %v2163_v40  ;;  %v2164_v46 = vadd.f32 1e-06, %v2160_v41  ;;  %v2161_v51 = vmul.f32 0.03125, %v2157_v45 }
 0xcb9   : > { %4608 = vrsqrt.f32 %v2164_v46  ;;  %v2165_v52 = vadd.f32 1e-06, %v2161_v51 }
 0xcbb   : > { %4610 = vrsqrt.f32 %v2165_v52 }
 0xcbf   : > { %v4605_v55 = vpop.eup %4604 }
 0xcc0   : > { %v2170_v57 = vmul.f32 %v4605_v55, %v2138_v14 }
 0xcc1   : > { %v4607_v60 = vpop.eup %4606 }
 0xcc2   : > { %v2171_v58 = vmul.f32 %v4607_v60, %v2139_v17  ;;  %v2180_v56 = vmul.f32 %v3821_v54, %v2170_v57 }
 0xcc3   : > { %v4609_v59 = vpop.eup %4608 }
 0xcc4   : > { %v2172_v63 = vmul.f32 %v4609_v59, %v2140_v21  ;;  %v2181_v0 = vmul.f32 %v3821_v54, %v2171_v58  ;;  %v6344_v4 = vadd.f32 %v3822_v62, %v2180_v56 }
 0xcc5   : > { %v4611_v61 = vpop.eup %4610 }
 0xcc6   : > { %v2182_v1 = vmul.f32 %v3821_v54, %v2172_v63  ;;  %v2173_v3 = vmul.f32 %v4611_v61, %v2141_v25  ;;  %v6346_v5 = vadd.f32 %v3822_v62, %v2181_v0 }
 0xcc8   : > { %v2183_v6 = vmul.f32 %v3821_v54, %v2173_v3  ;;  %v2194_v8 = vpack.c.bf16 %v6346_v5, %v6344_v4  ;;  %v6351_v18 = vadd.f32 %v3822_v62, %v2182_v1 }
 0xcca   : > { %4123 = vmatprep.mubr.msk.bf16.mxu0 %vm940_vm0, %v2194_v8  ;;  %v6353_v22 = vadd.f32 %v3822_v62, %v2183_v6 }
 0xccc   : > { %v2195_v9 = vpack.c.bf16 %v6353_v22, %v6351_v18 }
 0xcce   : > { %4124 = vmatmul.mubr.msk.bf16.vlgmr.msra.gmra.mrb[20].mxu0 %vm940_vm0, %v2195_v9 }
 0xccf   : > { %4128 = vmatpush3.bf16.msra.mxu0 %v4548_v33  ;;  %4131 = vmatprep.mubr.msk.bf16.mxu0 %vm940_vm0, %v2194_v8 }
 0xcd0   : > { %4129 = vmatprep.subr.bf16.mxu0 %v4549_v12 }
 0xcd3   : > { %4130 = vmatpush3.bf16.msra.mxu0 %v4549_v12 }
 0xcd4   : > { %4135 = vmatprep.subr.bf16.mxu0 %v4550_v42 }
 0xcd6   : > { %4132 = vmatmul.mubr.msk.bf16.vlgmr.msra.gmra.mrb[24].mxu0 %vm940_vm0, %v2195_v9 }
 0xcd7   : > { %4136 = vmatpush3.bf16.msra.mxu0 %v4550_v42  ;;  %4139 = vmatprep.mubr.msk.bf16.mxu0 %vm940_vm0, %v2194_v8 }
 0xcd8   : > { %4137 = vmatprep.subr.bf16.mxu0 %v4551_v13 }
 0xcdb   : > { %4138 = vmatpush3.bf16.msra.mxu0 %v4551_v13 }
 0xcdc   : > { %4143 = vmatprep.subr.bf16.mxu0 %v5382_v2 }
 0xcde   : > { %4140 = vmatmul.mubr.msk.bf16.vlgmr.msra.gmra.mrb[28].mxu0 %vm940_vm0, %v2195_v9 }
 0xcdf   : > { %4145 = vmatprep.mubr.msk.bf16.mxu0 %vm5383_vm1, %v5382_v2 }
 0xda1   : > { %v4125_v14 = vpop.f32.mrb[20].mxu0 }
 0xda2   : > { %v2253_v16 = vpop.f32.mrb[21].mxu0  ;;  %v2402_v37 = vmul.f32 0.17677669, %v4125_v14 }
 0xda3   : > { %v4126_v43 = vpop.f32.mrb[22].mxu0  ;;  %v2400_v25 = vmul.f32 0.17677669, %v2253_v16 }
 0xda4   : > { %v2256_v17 = vpop.f32.mrb[23].mxu0  ;;  %v2403_v39 = vmul.f32 0.17677669, %v4126_v43  ;;  %v3904_v41 = vpack.c.bf16 %v2402_v37, %v2402_v37 }
 0xda5   : > { %v2401_v27 = vmul.f32 0.17677669, %v2256_v17  ;;  %v3902_v31 = vpack.c.bf16 %v2400_v25, %v2400_v25 }
 0xda6   : > { %v3905_v46 = vpack.c.bf16 %v2403_v39, %v2403_v39 }
 0xda7   : > { %v3903_v35 = vpack.c.bf16 %v2401_v27, %v2401_v27 }
 0xda9   : > { %v4133_v49 = vpop.f32.mrb[24].mxu0 }
 0xdaa   : > { %v2319_v19 = vpop.f32.mrb[25].mxu0  ;;  %v3908_v28 = vpack.c.bf16 %v4133_v49, %v4133_v49 }
 0xdab   : > { %v3906_v20 = vpack.c.bf16 %v2319_v19, %v2319_v19  ;;  %v4134_v21 = vpop.f32.mrb[26].mxu0 }
 0xdac   : > { %v2322_v23 = vpop.f32.mrb[27].mxu0  ;;  %v3909_v32 = vpack.c.bf16 %v4134_v21, %v4134_v21  ;;  %v2536_v36 = vsel %vm940_vm0, %v3908_v28, 0 }
 0xdad   : > { %v2444_v50 = vsel %vm940_vm0, %v3906_v20, 0  ;;  %v3907_v24 = vpack.c.bf16 %v2322_v23, %v2322_v23 }
 0xdae   : > { %4144 = vmatpush3.bf16.xpose.msra.mxu0 %v2444_v50  ;;  %v2582_v38 = vsel %vm940_vm0, %v3909_v32, 0 }
 0xdaf   : > { %v2490_v26 = vsel %vm940_vm0, %v3907_v24, 0  ;;  %4155 = vmatprep.subr.bf16.mxu0 %v5382_v2 }
 0xdb0   : > { %4150 = vmatpush3.bf16.xpose.msra.mxu1 %v2490_v26 }
 0xdb1   : > { %v6368_v29 = vpop.f32.mrb[28].mxu0  ;;  %4161 = vmatprep.subr.bf16.mxu1 %v5382_v2 }
 0xdb2   : > { %v2385_v30 = vpop.f32.mrb[29].mxu0 }
 0xdb3   : > { %v6371_v33 = vpop.f32.mrb[30].mxu0  ;;  %v3910_v40 = vpack.c.bf16 %v2385_v30, %v2385_v30 }
 0xdb4   : > { %v2388_v34 = vpop.f32.mrb[31].mxu0 }
 0xdb5   : > { %4146 = vmatmul.mubr.msk.bf16.vlgmr.msra.gmra.mrb[32].mxu0 %vm940_vm0, %v3902_v31  ;;  %v3911_v45 = vpack.c.bf16 %v2388_v34, %v2388_v34  ;;  %v2684_v51 = vsel %vm1549_vm2, %v3910_v40, 0 }
 0xdb6   : > { %4156 = vmatpush3.bf16.xpose.msra.mxu0 %v2536_v36  ;;  %4157 = vmatprep.mubr.msk.bf16.mxu0 %vm5383_vm1, %v5382_v2 }
 0xdb7   : > { %4152 = vmatmul.mubr.msk.bf16.vlgmr.msra.gmra.mrb[36].mxu1 %vm940_vm0, %v3903_v35  ;;  %4167 = vmatprep.subr.bf16.mxu0 %v5382_v2  ;;  %v2730_v52 = vsel %vm1549_vm2, %v3911_v45, 0  ;;  %v3912_v45 = vpack.c.bf16 %v6368_v29, %v6368_v29 }
 0xdb8   : > { %4162 = vmatpush3.bf16.xpose.msra.mxu1 %v2582_v38  ;;  %4163 = vmatprep.mubr.msk.bf16.mxu1 %vm5383_vm1, %v5382_v2 }
 0xdb9   : > { %4173 = vmatprep.subr.bf16.mxu1 %v5382_v2 }
 0xdbd   : > { %4158 = vmatmul.mubr.msk.bf16.vlgmr.msra.gmra.mrb[36].mxu0 %vm940_vm0, %v3904_v41 }
 0xdbe   : > { %4168 = vmatpush3.bf16.msra.mxu0 %v2684_v51  ;;  %4169 = vmatprep.mubr.msk.bf16.mxu0 %vm5383_vm1, %v5382_v2 }
 0xdbf   : > { %4164 = vmatmul.mubr.msk.bf16.vlgmr.msra.gmra.mrb[40].mxu1 %vm940_vm0, %v3905_v46  ;;  %4179 = vmatprep.subr.bf16.mxu0 %v5382_v2 }
 0xdc0   : > { %4174 = vmatpush3.bf16.msra.mxu1 %v2730_v52  ;;  %4175 = vmatprep.mubr.msk.bf16.mxu1 %vm5383_vm1, %v5382_v2  ;;  %v3913_v52 = vpack.c.bf16 %v6371_v33, %v6371_v33 }
 0xdc1   : > { %4185 = vmatprep.subr.bf16.mxu1 %v5382_v2 }
 0xe88   : > { %v2480_v55 = vpop.f32.mrb[32].mxu0 }
 0xe89   : > { %v2624_v54 = vmul.f32 %v2480_v55, %v6254_v44  ;;  %v4147_v57 = vpop.f32.mrb[33].mxu0 }
 0xe8a   : > { %v2483_v60 = vpop.f32.mrb[34].mxu0  ;;  %v2526_v58 = vpop.f32.mrb[36].mxu1  ;;  %v2776_v57 = vsel %vm1549_vm2, %v3912_v45, 0 }
 0xe8b   : > { %v2625_v56 = vmul.f32 %v2526_v58, %v6257_v47  ;;  %v4148_v59 = vpop.f32.mrb[35].mxu0  ;;  %v4153_v62 = vpop.f32.mrb[37].mxu1  ;;  %v2628_v63 = vadd.f32 %v2624_v54, %v6259_v48  ;;  %v2822_v58 = vsel %vm1549_vm2, %v3913_v52, 0  ;;  %v4554_v52 = vld [vmem:[#allocation20 + $0x10] sm:$0xff]  }
 0xe8c   : > { %v2529_v0 = vpop.f32.mrb[38].mxu1 }
 0xe8d   : > { %v4154_v61 = vpop.f32.mrb[39].mxu1  ;;  %v2632_v1 = vsel %vm1497_vm3, %v2628_v63, -inf  ;;  %v2629_v3 = vadd.f32 %v2625_v56, %v6262_v53  ;;  %v4552_v0 = vld [vmem:[#allocation15 + $0x10] sm:$0xff]  }
 0xe8e   : > { %2633 = vmax.xlane.f32.xlu0 %v2632_v1  ;;  %v4553_v61 = vld [vmem:[#allocation15 + $0x18] sm:$0xff]  }
 0xe8f   : > { %v2635_v6 = vsel %vm1497_vm3, %v2629_v3, -inf }
 0xe90   : > { %2636 = vmax.xlane.f32.xlu1 %v2635_v6  ;;  %v2572_v44 = vpop.f32.mrb[36].mxu0 }
 0xe91   : > { %v2626_v8 = vmul.f32 %v2572_v44, %v6268_v7  ;;  %v4159_v9 = vpop.f32.mrb[37].mxu0 }
 0xe92   : > { %v2575_v12 = vpop.f32.mrb[38].mxu0  ;;  %v2618_v47 = vpop.f32.mrb[40].mxu1 }
 0xe93   : > { %v2627_v42 = vmul.f32 %v2618_v47, %v6271_v10  ;;  %v4160_v13 = vpop.f32.mrb[39].mxu0  ;;  %v4165_v48 = vpop.f32.mrb[41].mxu1  ;;  %v2630_v14 = vadd.f32 %v2626_v8, %v6273_v11 }
 0xe94   : > { %v2621_v16 = vpop.f32.mrb[42].mxu1 }
 0xe95   : > { %v4166_v43 = vpop.f32.mrb[43].mxu1  ;;  %v2638_v53 = vsel %vm1497_vm3, %v2630_v14, -inf  ;;  %v2631_v17 = vadd.f32 %v2627_v42, %v6276_v15 }
 0xe96   : > { %2639 = vmax.xlane.f32.xlu0 %v2638_v53 }
 0xe97   : > { %v2641_v49 = vsel %vm1497_vm3, %v2631_v17, -inf }
 0xe98   : > { %2642 = vmax.xlane.f32.xlu1 %v2641_v49 }
 0xf1b   : > { %v2634_v7 = vpop.xlane.xlu0 %2633 }
 0xf1c   : > { %v2644_v19 = vsub.f32 %v2628_v63, %v2634_v7 }
 0xf1d   : > { %v2637_v20 = vpop.xlane.xlu1 %2636 }
 0xf1e   : > { %v2648_v21 = vmul.f32 1.442695, %v2644_v19  ;;  %v2645_v23 = vsub.f32 %v2629_v3, %v2637_v20 }
 0xf20   : > { %4612 = vpow2.f32 %v2648_v21  ;;  %v2650_v10 = vmul.f32 1.442695, %v2645_v23 }
 0xf22   : > { %4614 = vpow2.f32 %v2650_v10 }
 0xf23   : > { %v2640_v50 = vpop.xlane.xlu0 %2639 }
 0xf24   : > { %v2646_v11 = vsub.f32 %v2630_v14, %v2640_v50 }
 0xf25   : > { %v2643_v24 = vpop.xlane.xlu1 %2642 }
 0xf26   : > { %v2652_v25 = vmul.f32 1.442695, %v2646_v11  ;;  %v2647_v26 = vsub.f32 %v2631_v17, %v2643_v24 }
 0xf28   : > { %4616 = vpow2.f32 %v2652_v25  ;;  %v2654_v27 = vmul.f32 1.442695, %v2647_v26 }
 0xf2a   : > { %v4613_v15 = vpop.eup %4612  ;;  %4618 = vpow2.f32 %v2654_v27 }
 0xf2b   : > { %v2656_v28 = vsel %vm1497_vm3, %v4613_v15, 0.0 }
 0xf2c   : > { %v4615_v30 = vpop.eup %4614  ;;  %2657 = vadd.xlane.f32.xlu0 %v2656_v28 }
 0xf2d   : > { %v2659_v31 = vsel %vm1497_vm3, %v4615_v30, 0.0 }
 0xf2e   : > { %2660 = vadd.xlane.f32.xlu1 %v2659_v31 }
 0xf32   : > { %v4617_v32 = vpop.eup %4616 }
 0xf33   : > { %v2662_v34 = vsel %vm1497_vm3, %v4617_v32, 0.0 }
 0xf34   : > { %v4619_v35 = vpop.eup %4618  ;;  %2663 = vadd.xlane.f32.xlu0 %v2662_v34 }
 0xf35   : > { %v2665_v36 = vsel %vm1497_vm3, %v4619_v35, 0.0 }
 0xf36   : > { %2666 = vadd.xlane.f32.xlu1 %v2665_v36 }
 0xfb9   : > { %v2658_v37 = vpop.xlane.xlu0 %2657 }
 0xfba   : > { %4620 = vrcp.f32 %v2658_v37 }
 0xfbb   : > { %v2661_v38 = vpop.xlane.xlu1 %2660 }
 0xfbc   : > { %4622 = vrcp.f32 %v2661_v38 }
 0xfc1   : > { %v2664_v39 = vpop.xlane.xlu0 %2663 }
 0xfc2   : > { %4624 = vrcp.f32 %v2664_v39 }
 0xfc3   : > { %v2667_v40 = vpop.xlane.xlu1 %2666 }
 0xfc4   : > { %v4621_v41 = vpop.eup %4620  ;;  %4626 = vrcp.f32 %v2667_v40 }
 0xfc5   : > { %v2672_v46 = vmul.f32 %v4621_v41, %v4613_v15 }
 0xfc6   : > { %v4623_v51 = vpop.eup %4622 }
 0xfc7   : > { %v2673_v55 = vmul.f32 %v4623_v51, %v4615_v30  ;;  %v2676_v54 = vpack.c.bf16 %v2672_v46, %v2672_v46 }
 0xfc9   : > { %4170 = vmatmul.mubr.msk.bf16.vlgmr.msra.gmra.mrb[40].mxu0 %vm1497_vm3, %v2676_v54  ;;  %v2677_v60 = vpack.c.bf16 %v2673_v55, %v2673_v55  ;;  %v4555_v55 = vld [vmem:[#allocation20 + $0x18] sm:$0xff]  }
 0xfca   : > { %4180 = vmatpush3.bf16.msra.mxu0 %v2776_v57  ;;  %4181 = vmatprep.mubr.msk.bf16.mxu0 %vm5383_vm1, %v5382_v2 }
 0xfcb   : > { %4176 = vmatmul.mubr.msk.bf16.vlgmr.msra.gmra.mrb[44].mxu1 %vm1497_vm3, %v2677_v60  ;;  %4191 = vmatprep.subr.bf16.mxu0 %v4552_v0 }
 0xfcc   : > { %v4625_v29 = vpop.eup %4624  ;;  %4186 = vmatpush3.bf16.msra.mxu1 %v2822_v58  ;;  %4187 = vmatprep.mubr.msk.bf16.mxu1 %vm5383_vm1, %v5382_v2 }
 0xfcd   : > { %v2674_v33 = vmul.f32 %v4625_v29, %v4617_v32  ;;  %4199 = vmatprep.subr.bf16.mxu1 %v4554_v52 }
 0xfce   : > { %v4627_v56 = vpop.eup %4626 }
 0xfcf   : > { %v2675_v59 = vmul.f32 %v4627_v56, %v4619_v35  ;;  %v2678_v62 = vpack.c.bf16 %v2674_v33, %v2674_v33 }
 0xfd1   : > { %4182 = vmatmul.mubr.msk.bf16.vlgmr.msra.gmra.mrb[44].mxu0 %vm1497_vm3, %v2678_v62  ;;  %v2679_v63 = vpack.c.bf16 %v2675_v59, %v2675_v59 }
 0xfd2   : > { %4192 = vmatpush3.bf16.msra.mxu0 %v4552_v0 }
 0xfd3   : > { %4188 = vmatmul.mubr.msk.bf16.vlgmr.msra.gmra.mrb[48].mxu1 %vm1497_vm3, %v2679_v63  ;;  %4193 = vmatprep.subr.bf16.mxu0 %v4553_v61 }
 0xfd4   : > { %4200 = vmatpush3.bf16.msra.mxu1 %v4554_v52 }
 0xfd5   : > { %4201 = vmatprep.subr.bf16.mxu1 %v4555_v55 }
 0xfd6   : > { %4194 = vmatpush3.bf16.msra.mxu0 %v4553_v61 }
 0xfd8   : > { %4202 = vmatpush3.bf16.msra.mxu1 %v4555_v55 }
0x109c   : > { %v2720_v1 = vpop.f32.mrb[40].mxu0 }
0x109d   : > { %v4171_v3 = vpop.f32.mrb[41].mxu0 }
0x109e   : > { %v2723_v6 = vpop.f32.mrb[42].mxu0  ;;  %v2766_v44 = vpop.f32.mrb[44].mxu1  ;;  %v3859_v3 = vld [vmem:[#allocation17 + $0x1] ss:$0 sm:$0xff] }
0x109f   : > { %v2864_v2 = vpack.c.bf16 %v2766_v44, %v2720_v1  ;;  %v4172_v8 = vpop.f32.mrb[43].mxu0  ;;  %v4177_v9 = vpop.f32.mrb[45].mxu1 }
0x10a0   : > { %v2769_v12 = vpop.f32.mrb[46].mxu1 }
0x10a1   : > { %v4178_v47 = vpop.f32.mrb[47].mxu1  ;;  %4195 = vmatprep.mubr.msk.bf16.mxu0 %vm940_vm0, %v2864_v2  ;;  %v3860_v12 = vld [vmem:[#allocation18 + $0x1] ss:$0 sm:$0xff] }
0x10a4   : > { %v2812_v42 = vpop.f32.mrb[44].mxu0 }
0x10a5   : > { %v4183_v13 = vpop.f32.mrb[45].mxu0 }
0x10a6   : > { %v2815_v48 = vpop.f32.mrb[46].mxu0  ;;  %v2858_v14 = vpop.f32.mrb[48].mxu1 }
0x10a7   : > { %v2865_v16 = vpack.c.bf16 %v2858_v14, %v2812_v42  ;;  %v4184_v43 = vpop.f32.mrb[47].mxu0  ;;  %v4189_v53 = vpop.f32.mrb[49].mxu1 }
0x10a8   : > { %v2861_v17 = vpop.f32.mrb[50].mxu1 }
0x10a9   : > { %v4190_v49 = vpop.f32.mrb[51].mxu1  ;;  %4196 = vmatmul.mubr.msk.bf16.vlgmr.msra.gmra.mrb[48].mxu0 %vm940_vm0, %v2865_v16 }
0x117c   : > { %v4197_v7 = vpop.f32.mrb[48].mxu0 }
0x117d   : > { %v2923_v19 = vpop.f32.mrb[49].mxu0  ;;  %v2932_v10 = vadd.f32 %v4197_v7, %v6351_v18 }
0x117e   : > { %v2924_v20 = vadd.f32 %v2923_v19, %v6344_v4  ;;  %v4198_v21 = vpop.f32.mrb[50].mxu0 }
0x117f   : > { %v2926_v23 = vpop.f32.mrb[51].mxu0  ;;  %v2935_v24 = vadd.f32 %v4198_v21, %v6353_v22  ;;  %v2948_v26 = vsel %vm940_vm0, %v2932_v10, 0.0  ;;  %v4557_v21 = vld [vmem:[#allocation23 + $0x48] sm:$0xff]  }
0x1180   : > { %v2927_v50 = vadd.f32 %v2926_v23, %v6346_v5  ;;  %v2942_v11 = vsel %vm940_vm0, %v2924_v20, 0.0  ;;  %v4558_v23 = vld [vmem:[#allocation23 + $0x50] sm:$0xff]  }
0x1181   : > { %2943 = vadd.xlane.f32.xlu0 %v2942_v11  ;;  %v2951_v27 = vsel %vm940_vm0, %v2935_v24, 0.0  ;;  %v4561_v11 = vld [vmem:[#allocation23 + $0x68] sm:$0xff]  }
0x1182   : > { %v2945_v25 = vsel %vm940_vm0, %v2927_v50, 0.0 }
0x1183   : > { %2946 = vadd.xlane.f32.xlu1 %v2945_v25  ;;  %v4563_v25 = vld [vmem:[#allocation23 + $0x78] sm:$0xff]  }
0x1185   : > { %2949 = vadd.xlane.f32.xlu0 %v2948_v26  ;;  %v3861_v26 = vld [vmem:[#allocation21 + $0x1] ss:$0 sm:$0xff] }
0x1187   : > { %2952 = vadd.xlane.f32.xlu1 %v2951_v27 }
0x120e   : > { %v2944_v4 = vpop.xlane.xlu0 %2943 }
0x120f   : > { %v2954_v15 = vmul.f32 0.03125, %v2944_v4 }
0x1210   : > { %v2947_v28 = vpop.xlane.xlu1 %2946 }
0x1211   : > { %v2958_v18 = vsub.f32 %v2924_v20, %v2954_v15  ;;  %v2955_v30 = vmul.f32 0.03125, %v2947_v28  ;;  %v4556_v20 = vld [vmem:[#allocation23 + $0x40] sm:$0xff]  }
0x1212   : > { %v2950_v5 = vpop.xlane.xlu0 %2949  ;;  %4207 = vmatprep.subr.bf16.mxu0 %v4556_v20 }
0x1213   : > { %v2959_v31 = vsub.f32 %v2927_v50, %v2955_v30  ;;  %v2956_v32 = vmul.f32 0.03125, %v2950_v5  ;;  %v2962_v34 = vmul.f32 %v2958_v18, %v2958_v18  ;;  %4208 = vmatpush3.bf16.msra.mxu0 %v4556_v20  ;;  %v4560_v50 = vld [vmem:[#allocation23 + $0x60] sm:$0xff]  }
0x1214   : > { %v2953_v35 = vpop.xlane.xlu1 %2952  ;;  %4209 = vmatprep.subr.bf16.mxu0 %v4557_v21 }
0x1215   : > { %v2960_v22 = vsub.f32 %v2932_v10, %v2956_v32  ;;  %v2957_v36 = vmul.f32 0.03125, %v2953_v35  ;;  %v2966_v37 = vsel %vm940_vm0, %v2962_v34, 0.0  ;;  %v2963_v38 = vmul.f32 %v2959_v31, %v2959_v31  ;;  %v4559_v10 = vld [vmem:[#allocation23 + $0x58] sm:$0xff]  }
0x1216   : > { %2967 = vadd.xlane.f32.xlu0 %v2966_v37 }
0x1217   : > { %v2961_v39 = vsub.f32 %v2935_v24, %v2957_v36  ;;  %v2969_v40 = vsel %vm940_vm0, %v2963_v38, 0.0  ;;  %v2964_v41 = vmul.f32 %v2960_v22, %v2960_v22  ;;  %4210 = vmatpush3.bf16.msra.mxu0 %v4557_v21  ;;  %v4562_v24 = vld [vmem:[#allocation23 + $0x70] sm:$0xff]  }
0x1218   : > { %2970 = vadd.xlane.f32.xlu1 %v2969_v40  ;;  %4211 = vmatprep.subr.bf16.mxu0 %v4558_v23 }
0x1219   : > { %v2972_v45 = vsel %vm940_vm0, %v2964_v41, 0.0  ;;  %v2965_v46 = vmul.f32 %v2961_v39, %v2961_v39 }
0x121a   : > { %2973 = vadd.xlane.f32.xlu0 %v2972_v45 }
0x121b   : > { %v2975_v51 = vsel %vm940_vm0, %v2965_v46, 0.0  ;;  %4212 = vmatpush3.bf16.msra.mxu0 %v4558_v23 }
0x121c   : > { %2976 = vadd.xlane.f32.xlu1 %v2975_v51  ;;  %4213 = vmatprep.subr.bf16.mxu0 %v4559_v10 }
0x121f   : > { %4214 = vmatpush3.bf16.msra.mxu0 %v4559_v10 }
0x1220   : > { %4215 = vmatprep.subr.bf16.mxu0 %v4560_v50 }
0x1223   : > { %4216 = vmatpush3.bf16.msra.mxu0 %v4560_v50 }
0x1224   : > { %4217 = vmatprep.subr.bf16.mxu0 %v4561_v11 }
0x1227   : > { %4218 = vmatpush3.bf16.msra.mxu0 %v4561_v11 }
0x1228   : > { %4219 = vmatprep.subr.bf16.mxu0 %v4562_v24 }
0x122b   : > { %4220 = vmatpush3.bf16.msra.mxu0 %v4562_v24 }
0x122c   : > { %4221 = vmatprep.subr.bf16.mxu0 %v4563_v25 }
0x122f   : > { %4222 = vmatpush3.bf16.msra.mxu0 %v4563_v25 }
0x12a3   : > { %v2968_v54 = vpop.xlane.xlu0 %2967 }
0x12a4   : > { %v2978_v57 = vmul.f32 0.03125, %v2968_v54 }
0x12a5   : > { %v2971_v60 = vpop.xlane.xlu1 %2970 }
0x12a6   : > { %v2982_v58 = vadd.f32 1e-06, %v2978_v57  ;;  %v2979_v29 = vmul.f32 0.03125, %v2971_v60 }
0x12a7   : > { %v2974_v33 = vpop.xlane.xlu0 %2973 }
0x12a8   : > { %4628 = vrsqrt.f32 %v2982_v58  ;;  %v2983_v56 = vadd.f32 1e-06, %v2979_v29  ;;  %v2980_v59 = vmul.f32 0.03125, %v2974_v33 }
0x12a9   : > { %v2977_v62 = vpop.xlane.xlu1 %2976 }
0x12aa   : > { %4630 = vrsqrt.f32 %v2983_v56  ;;  %v2984_v63 = vadd.f32 1e-06, %v2980_v59  ;;  %v2981_v0 = vmul.f32 0.03125, %v2977_v62 }
0x12ac   : > { %4632 = vrsqrt.f32 %v2984_v63  ;;  %v2985_v61 = vadd.f32 1e-06, %v2981_v0 }
0x12ae   : > { %4634 = vrsqrt.f32 %v2985_v61 }
0x12b2   : > { %v4629_v1 = vpop.eup %4628 }
0x12b3   : > { %v2990_v6 = vmul.f32 %v4629_v1, %v2958_v18 }
0x12b4   : > { %v4631_v44 = vpop.eup %4630 }
0x12b5   : > { %v2991_v2 = vmul.f32 %v4631_v44, %v2959_v31  ;;  %v3000_v8 = vmul.f32 %v3859_v3, %v2990_v6 }
0x12b6   : > { %v4633_v9 = vpop.eup %4632 }
0x12b7   : > { %v2992_v47 = vmul.f32 %v4633_v9, %v2960_v22  ;;  %v3001_v42 = vmul.f32 %v3859_v3, %v2991_v2  ;;  %v6437_v16 = vadd.f32 %v3860_v12, %v3000_v8 }
0x12b8   : > { %v4635_v13 = vpop.eup %4634 }
0x12b9   : > { %v3002_v48 = vmul.f32 %v3859_v3, %v2992_v47  ;;  %v2993_v14 = vmul.f32 %v4635_v13, %v2961_v39  ;;  %v6439_v43 = vadd.f32 %v3860_v12, %v3001_v42 }
0x12bb   : > { %v3003_v53 = vmul.f32 %v3859_v3, %v2993_v14  ;;  %v3014_v17 = vpack.c.bf16 %v6439_v43, %v6437_v16  ;;  %v6444_v49 = vadd.f32 %v3860_v12, %v3002_v48  ;;  %v3866_v48 = vld [vmem:[#allocation24 + $0x1] ss:$0 sm:$0xff] }
0x12bd   : > { %4203 = vmatprep.mubr.msk.bf16.mxu1 %vm940_vm0, %v3014_v17  ;;  %v6446_v7 = vadd.f32 %v3860_v12, %v3003_v53 }
0x12bf   : > { %v3015_v19 = vpack.c.bf16 %v6446_v7, %v6444_v49 }
0x12c1   : > { %4204 = vmatmul.mubr.msk.bf16.vlgmr.msra.gmra.mrb[52].mxu1 %vm940_vm0, %v3015_v19 }
0x1394   : > { %v4205_v27 = vpop.f32.mrb[52].mxu1 }
0x1395   : > { %v3090_v4 = vadd.f32 %v4205_v27, %v3861_v26  ;;  %v3081_v15 = vpop.f32.mrb[53].mxu1 }
0x1396   : > { %v3082_v28 = vadd.f32 %v3861_v26, %v3081_v15  ;;  %v4206_v18 = vpop.f32.mrb[54].mxu1 }
0x1397   : > { %v3102_v30 = vmul.f32 0.044715, %v3090_v4  ;;  %v3093_v5 = vadd.f32 %v4206_v18, %v3861_v26  ;;  %v3084_v31 = vpop.f32.mrb[55].mxu1  ;;  %v3098_v61 = vmul.f32 0.5, %v3090_v4 }
0x1398   : > { %v3100_v32 = vmul.f32 0.044715, %v3082_v28  ;;  %v3085_v34 = vadd.f32 %v3861_v26, %v3084_v31  ;;  %v3096_v6 = vmul.f32 0.5, %v3082_v28 }
0x1399   : > { %v3106_v35 = vmul.f32 %v3102_v30, %v3090_v4  ;;  %v3103_v22 = vmul.f32 0.044715, %v3093_v5  ;;  %v3099_v1 = vmul.f32 0.5, %v3093_v5 }
0x139a   : > { %v3104_v36 = vmul.f32 %v3100_v32, %v3082_v28  ;;  %v3101_v37 = vmul.f32 0.044715, %v3085_v34  ;;  %v3097_v44 = vmul.f32 0.5, %v3085_v34 }
0x139b   : > { %v3110_v38 = vmul.f32 %v3106_v35, %v3090_v4  ;;  %v3107_v39 = vmul.f32 %v3103_v22, %v3093_v5 }
0x139c   : > { %v3108_v40 = vmul.f32 %v3104_v36, %v3082_v28  ;;  %v3105_v41 = vmul.f32 %v3101_v37, %v3085_v34 }
0x139d   : > { %v3114_v45 = vadd.f32 %v3110_v38, %v3090_v4  ;;  %v3111_v46 = vmul.f32 %v3107_v39, %v3093_v5 }
0x139e   : > { %v3109_v51 = vmul.f32 %v3105_v41, %v3085_v34  ;;  %v3112_v52 = vadd.f32 %v3108_v40, %v3082_v28 }
0x139f   : > { %v3118_v55 = vmul.f32 0.7978846, %v3114_v45  ;;  %v3115_v54 = vadd.f32 %v3111_v46, %v3093_v5 }
0x13a0   : > { %v3113_v57 = vadd.f32 %v3109_v51, %v3085_v34  ;;  %v3116_v60 = vmul.f32 0.7978846, %v3112_v52 }
0x13a1   : > { %4636 = vtanh.f32 %v3118_v55  ;;  %v3119_v58 = vmul.f32 0.7978846, %v3115_v54 }
0x13a2   : > { %v3117_v29 = vmul.f32 0.7978846, %v3113_v57  ;;  %4638 = vtanh.f32 %v3116_v60 }
0x13a3   : > { %4640 = vtanh.f32 %v3119_v58 }
0x13a4   : > { %4642 = vtanh.f32 %v3117_v29 }
0x13ab   : > { %v4637_v33 = vpop.eup %4636 }
0x13ac   : > { %v4639_v56 = vpop.eup %4638  ;;  %v3126_v59 = vadd.f32 1.0, %v4637_v33 }
0x13ad   : > { %v4641_v62 = vpop.eup %4640  ;;  %v3124_v63 = vadd.f32 1.0, %v4639_v56 }
0x13ae   : > { %v4643_v0 = vpop.eup %4642  ;;  %v3127_v3 = vadd.f32 1.0, %v4641_v62  ;;  %v3130_v8 = vmul.f32 %v3126_v59, %v3098_v61 }
0x13af   : > { %v3125_v2 = vadd.f32 1.0, %v4643_v0  ;;  %v3128_v12 = vmul.f32 %v3124_v63, %v3096_v6  ;;  %v3875_v63 = vld [vmem:[#allocation26 + $0x1] ss:$0 sm:$0xff] }
0x13b0   : > { %v3131_v9 = vmul.f32 %v3127_v3, %v3099_v1 }
0x13b1   : > { %v3129_v47 = vmul.f32 %v3125_v2, %v3097_v44  ;;  %v3876_v44 = vld [vmem:[#allocation27 + $0x1] ss:$0 sm:$0xff] }
0x13b2   : > { %v3133_v42 = vpack.c.bf16 %v3131_v9, %v3130_v8 }
0x13b3   : > { %v3132_v13 = vpack.c.bf16 %v3129_v47, %v3128_v12 }
0x13b5   : > { %4223 = vmatprep.mubr.bf16.mxu0 %v3132_v13 }
0x13b6   : > { %4224 = vmatmul.mubr.bf16.vlgmr.msra.gmra.mrb[52].mxu0 %v3133_v42 }
0x1489   : > { %v4225_v14 = vpop.f32.mrb[52].mxu0 }
0x148a   : > { %v3241_v53 = vpop.f32.mrb[53].mxu0  ;;  %v3250_v17 = vadd.f32 %v4225_v14, %v3866_v48 }
0x148b   : > { %v3242_v19 = vadd.f32 %v3866_v48, %v3241_v53  ;;  %v4226_v20 = vpop.f32.mrb[54].mxu0 }
0x148c   : > { %v3244_v21 = vpop.f32.mrb[55].mxu0  ;;  %v3253_v23 = vadd.f32 %v4226_v20, %v3866_v48  ;;  %v3258_v25 = vadd.f32 %v3250_v17, %v6444_v49 }
0x148d   : > { %v3245_v10 = vadd.f32 %v3866_v48, %v3244_v21  ;;  %v3256_v50 = vadd.f32 %v3242_v19, %v6437_v16 }
0x148e   : > { %v3259_v27 = vadd.f32 %v3253_v23, %v6446_v7  ;;  %v3270_v4 = vsel %vm940_vm0, %v3258_v25, 0.0 }
0x148f   : > { %v3264_v11 = vsel %vm940_vm0, %v3256_v50, 0.0  ;;  %v3257_v24 = vadd.f32 %v3245_v10, %v6439_v43 }
0x1490   : > { %3265 = vadd.xlane.f32.xlu0 %v3264_v11  ;;  %v3273_v15 = vsel %vm940_vm0, %v3259_v27, 0.0 }
0x1491   : > { %v3267_v26 = vsel %vm940_vm0, %v3257_v24, 0.0 }
0x1492   : > { %3268 = vadd.xlane.f32.xlu1 %v3267_v26 }
0x1494   : > { %3271 = vadd.xlane.f32.xlu0 %v3270_v4 }
0x1496   : > { %3274 = vadd.xlane.f32.xlu1 %v3273_v15 }
0x151d   : > { %v3266_v28 = vpop.xlane.xlu0 %3265 }
0x151e   : > { %v3276_v16 = vmul.f32 0.03125, %v3266_v28 }
0x151f   : > { %v3269_v18 = vpop.xlane.xlu1 %3268 }
0x1520   : > { %v3280_v30 = vsub.f32 %v3256_v50, %v3276_v16  ;;  %v3277_v5 = vmul.f32 0.03125, %v3269_v18 }
0x1521   : > { %v3272_v43 = vpop.xlane.xlu0 %3271 }
0x1522   : > { %v3281_v31 = vsub.f32 %v3257_v24, %v3277_v5  ;;  %v3278_v49 = vmul.f32 0.03125, %v3272_v43  ;;  %v3284_v32 = vmul.f32 %v3280_v30, %v3280_v30 }
0x1523   : > { %v3275_v34 = vpop.xlane.xlu1 %3274 }
0x1524   : > { %v3282_v35 = vsub.f32 %v3258_v25, %v3278_v49  ;;  %v3279_v22 = vmul.f32 0.03125, %v3275_v34  ;;  %v3288_v7 = vsel %vm940_vm0, %v3284_v32, 0.0  ;;  %v3285_v36 = vmul.f32 %v3281_v31, %v3281_v31 }
0x1525   : > { %3289 = vadd.xlane.f32.xlu0 %v3288_v7 }
0x1526   : > { %v3283_v37 = vsub.f32 %v3259_v27, %v3279_v22  ;;  %v3291_v38 = vsel %vm940_vm0, %v3285_v36, 0.0  ;;  %v3286_v39 = vmul.f32 %v3282_v35, %v3282_v35 }
0x1527   : > { %3292 = vadd.xlane.f32.xlu1 %v3291_v38 }
0x1528   : > { %v3294_v40 = vsel %vm940_vm0, %v3286_v39, 0.0  ;;  %v3287_v41 = vmul.f32 %v3283_v37, %v3283_v37 }
0x1529   : > { %3295 = vadd.xlane.f32.xlu0 %v3294_v40 }
0x152a   : > { %v3297_v45 = vsel %vm940_vm0, %v3287_v41, 0.0 }
0x152b   : > { %3298 = vadd.xlane.f32.xlu1 %v3297_v45 }
0x15b2   : > { %v3290_v46 = vpop.xlane.xlu0 %3289 }
0x15b3   : > { %v3300_v51 = vmul.f32 0.03125, %v3290_v46 }
0x15b4   : > { %v3293_v52 = vpop.xlane.xlu1 %3292 }
0x15b5   : > { %v3304_v55 = vadd.f32 1e-06, %v3300_v51  ;;  %v3301_v54 = vmul.f32 0.03125, %v3293_v52 }
0x15b6   : > { %v3296_v57 = vpop.xlane.xlu0 %3295 }
0x15b7   : > { %4644 = vrsqrt.f32 %v3304_v55  ;;  %v3305_v60 = vadd.f32 1e-06, %v3301_v54  ;;  %v3302_v58 = vmul.f32 0.03125, %v3296_v57 }
0x15b8   : > { %v3299_v29 = vpop.xlane.xlu1 %3298 }
0x15b9   : > { %4646 = vrsqrt.f32 %v3305_v60  ;;  %v3306_v33 = vadd.f32 1e-06, %v3302_v58  ;;  %v3303_v56 = vmul.f32 0.03125, %v3299_v29 }
0x15bb   : > { %4648 = vrsqrt.f32 %v3306_v33  ;;  %v3307_v59 = vadd.f32 1e-06, %v3303_v56 }
0x15bd   : > { %4650 = vrsqrt.f32 %v3307_v59 }
0x15c1   : > { %v4645_v62 = vpop.eup %4644 }
0x15c2   : > { %v3312_v0 = vmul.f32 %v4645_v62, %v3280_v30 }
0x15c3   : > { %v4647_v61 = vpop.eup %4646 }
0x15c4   : > { %v3322_v1 = vmul.f32 %v3875_v63, %v3312_v0  ;;  %v3313_v3 = vmul.f32 %v4647_v61, %v3281_v31 }
0x15c5   : > { %v4649_v6 = vpop.eup %4648 }
0x15c6   : > { %v3323_v2 = vmul.f32 %v3875_v63, %v3313_v3  ;;  %v3314_v8 = vmul.f32 %v4649_v6, %v3282_v35  ;;  %v3332_v12 = vadd.f32 %v3876_v44, %v3322_v1 }
0x15c7   : > { %v4651_v9 = vpop.eup %4650 }
0x15c8   : > { %v3333_v47 = vadd.f32 %v3876_v44, %v3323_v2  ;;  %v3324_v42 = vmul.f32 %v3875_v63, %v3314_v8  ;;  %v3315_v13 = vmul.f32 %v4651_v9, %v3283_v37 }
0x15ca   : > { %v3336_v48 = vpack.c.bf16 %v3333_v47, %v3332_v12  ;;  %v3325_v14 = vmul.f32 %v3875_v63, %v3315_v13  ;;  %v3334_v53 = vadd.f32 %v3876_v44, %v3324_v42 }
0x15cc   : > { %3338 = vst.msk [vmem:[#allocation2] sm:$0xff] %vm940_vm0, %v3336_v48  ;;  %v3335_v17 = vadd.f32 %v3876_v44, %v3325_v14 }
0x15ce   : > { %v3337_v19 = vpack.c.bf16 %v3335_v17, %v3334_v53 }
0x15d0   : > { %3339 = vst.msk [vmem:[#allocation2 + $0x8] sm:$0xff] %vm940_vm0, %v3337_v19 }
0x15d1 PF: > { %s6736_s15 = sld [smem:[#allocation52_spill]]  ;;  %s6737_s6 = sld [smem:[#allocation51_spill]]  ;;  %v4652_v20 = vld [vmem:[%s839_s8] sm:$0xff]   ;;  %vm3365_vm4 = vcmask 261120   ;;  %v4653_v21 = vld [vmem:[%s839_s8 + $0x8] sm:$0xff]  }
0x15d2   : > { %4227 = vmatprep.subr.bf16.mxu0 %v4652_v20  ;;  %v3877_v50 = vld [vmem:[%s6175_s5] ss:$0 sm:$0xff]  ;;  %s3441_s16 = sshll.u32 %s6184_s7, 4  ;;  %s6738_s24 = sld [smem:[#allocation78_spill]]  ;;  %s6479_s16 = int_to_ptr.vmem [resolvable:$true] %s3441_s16 }
0x15d3   : > { %v3340_v23 = vld [vmem:[#allocation2] sm:$0xff]  ;;  %4228 = vmatpush3.bf16.msra.mxu0 %v4652_v20  ;;  %s6486_s3 = scalar_lea.sflag [#allocation5], %s911_s26  ;;  %s5166_s1 = scalar_lea.vmem %s6479_s16, 512 }
0x15d4   : > { %4231 = vmatprep.mubr.msk.bf16.mxu0 %vm3365_vm4, %v3340_v23  ;;  %4229 = vmatprep.subr.bf16.mxu0 %v4653_v21  ;;  %p5167_p9 = scmp.ne.s32.totalorder %s6479_s16, %s5166_s1  ;;  %p6740_p11 = scmp.ne.s32.totalorder %s6678_s0, 0 }
0x15d5   : > { %s5384_s30 = smov [#allocation31]  }
0x15d6   : > { %p5168_p7 = pnand %p5167_p9, %p6740_p11  ;;  %s5170_s2 = sshll.u32 %s5384_s30, 4  ;;  %s5171_s2 = int_to_ptr.vmem [resolvable:$false] %s5170_s2 }
0x15d7   : > { %4230 = vmatpush3.bf16.msra.mxu0 %v4653_v21  ;;  %v3341_v10 = vld [vmem:[#allocation2 + $0x8] sm:$0xff]  ;;  %s3914_s10 = sshll.u32 %s6736_s15, 3  ;;  %s5172_s27 = scalar_lea.vmem %s5171_s2, 1024 }
0x15d8   : > { %s3438_s14 = sadd.s32 %s6737_s6, %s3914_s10  ;;  %s6739_s12 = smov %s6738_s24 }
0x15d9   : > { %s3885_s29 = sshll.u32 %s3438_s14, 7  ;;  %p5169_p4 = pneg %p5168_p7 }
0x15da   : > { %4232 = vmatmul.mubr.msk.bf16.vlgmr.msra.gmra.mrb[0].mxu0 %vm3365_vm4, %v3341_v10  ;;  %s6476_s17 = scalar_lea.hbm %s6738_s24, %s3885_s29  ;;  %p5173_p8 = scmp.lt.s32.totalorder %s6479_s16, %s5171_s2 }
0x15db   : > { %p5174_p12 = scmp.lt.s32.totalorder %s5172_s27, %s5166_s1 }
0x15dd   : > { %p5175_p3 = por %p5174_p12, %p5173_p8 }
0x15df   : > { %p5176_p6 = pnand %p5175_p3, %p5169_p4 }
0x16ad   : > { %v4233_v11 = vpop.f32.mrb[0].mxu0 }
0x16ae   : > { %v3415_v24 = vadd.f32 %v4233_v11, %v3877_v50  ;;  %v3406_v25 = vpop.f32.mrb[1].mxu0 }
0x16af   : > { %v3407_v26 = vadd.f32 %v3877_v50, %v3406_v25  ;;  %v4234_v27 = vpop.f32.mrb[2].mxu0 }
0x16b0   : > { %3423 = vst [vmem:[%s6184_s7 + $0x10] sm:$0xff] %v3415_v24  ;;  %v3418_v4 = vadd.f32 %v4234_v27, %v3877_v50  ;;  %v3409_v15 = vpop.f32.mrb[3].mxu0 }
0x16b1   : > { %3421 = vst [vmem:[%s6184_s7] sm:$0xff] %v3407_v26  ;;  %v3410_v28 = vadd.f32 %v3877_v50, %v3409_v15 }
0x16b2   : > { %3424 = vst [vmem:[%s6184_s7 + $0x18] sm:$0xff] %v3418_v4 }
0x16b3   : > { %3422 = vst [vmem:[%s6184_s7 + $0x8] sm:$0xff] %v3410_v28 }
0x16b4   : > { %5179 = shalt.err (!%p5176_p6)
}
0x16b5   : > { %s5180_s13 = scalar_lea.hbm %s6476_s17, 512  ;;  %s5184_s26 = scalar_lea.hbm %s6739_s12, 2048 }
0x16b6   : > { %p5181_p2 = scmp.ne.s32.totalorder %s6476_s17, %s5180_s13  ;;  %p5185_p10 = scmp.lt.u32.totalorder %s6476_s17, %s6739_s12 }
0x16b7   : > { %p5186_p1 = scmp.lt.u32.totalorder %s5184_s26, %s5180_s13  ;;  %p5188_p9 = scmp.lt.u32.totalorder %s5180_s13, %s6476_s17 }
0x16b8   : > { %p5182_p5 = pnand %p5181_p2, %p6740_p11 }
0x16b9   : > { %p5187_p13 = por %p5186_p1, %p5185_p10 }
0x16ba   : > { %p5183_p0 = pneg %p5182_p5 }
0x16bb   : > { %p5189_p7 = por %p5188_p9, %p5187_p13 }
0x16bd   : > { %p5190_p4 = pnand %p5189_p7, %p5183_p0 }
0x16bf   : > { %5193 = shalt.err (!%p5190_p4)
}
0x16c0   : > { %s5385_s11 = smov 128   ;;  %s5386_s15 = smov 256  }
0x16c1   : > { %s5387_s6 = smov 8  }
0x16c2   : > { %4299 = dma.vmem_to_hbm [thread:$0]  (%p6740_p11), %s6479_s16, 512, %s6476_s17, %s6486_s3, %s5385_s11, %s5386_s15, %s5387_s6  }
0x16c3 PF: > { %s6741_s10 = sld [smem:[#allocation45_spill]]  ;;  %s6742_s14 = sld [smem:[#allocation59_spill]] }
0x16c4   : > { %p4390_p8 = scmp.ge.s32.totalorder %s5356_s25, 2 }
0x16c9   : > { %s3456_s29 = sand.u32 1, %s6741_s10   ;;  %p6743_p12 = scmp.ne.s32.totalorder %s6742_s14, 0 }
0x16ca   : > { %s3457_s9 = scalar_lea.sflag [#allocation5], %s3456_s29 }
0x16cb   : > { %p4358_p3 = pnand %p4390_p8, %p6743_p12 }
0x16cd   : > { %5299 = dma.done.wait (!%p4358_p3), %s3457_s9, 512  }
0x16ce   : > { %5301 = vsyncadd (!%p4358_p3), %s3457_s9, 4294966784  ;;  %s44_s25 = sadd.s32 1, %s5356_s25   ;;  %s6745_s0 = sld [smem:[#allocation46_spill]] }
0x16cf   : > { %p6515_p6 = scmp.ge.s32.totalorder %s44_s25, 6   ;;  %s6746_s29 = sld [smem:[#allocation58_spill]] }
0x16d0   : > { %s6747_s30 = sld [smem:[#allocation48_spill]]  ;;  %s6748_s16 = sld [smem:[#allocation49_spill]] }
0x16d1   : > { %s6749_s24 = sld [smem:[#allocation50_spill]]  ;;  %s6750_s21 = sld [smem:[#allocation57_spill]] }
0x16d2   : > { %s6751_s2 = sld [smem:[#allocation53_spill]]  ;;  %s6752_s17 = sld [smem:[#allocation55_spill]] }
0x16d3   : > { %s6753_s3 = sld [smem:[#allocation56_spill]]  ;;  %s6755_s27 = smov %s5308_s28 }
0x16d4   : > { %s6756_s28 = smov %s6745_s0  ;;  %s6758_s19 = smov %s6038_s22 }
0x16d5   : > { %s6759_s1 = smov %s5332_s20  ;;  %s6761_s22 = smov %s5348_s23 }
0x16d6   : > { %s6757_s0 = smov %s6748_s16  ;;  %43 = sbr.rel (!%p6515_p6) target bundleno = 39 (0x27), region = 244 }
0x16d7   : > { %s6760_s20 = smov %s6749_s24 }
0x16d8   : > { %s6762_s23 = smov %s6752_s17 }
0x16d9   : > { %s6763_s24 = smov %s6753_s3 }
0x16dd   :  { %3462 = vsyncpa [#allocation4], 1 }
0x16de   :  { %3464 = vsyncpa [#allocation4 + $0x1], 1 }
0x16df   :  { %3465 = vsyncpa [#allocation7], 1 }
0x16e0   :  { %3467 = vsyncpa [#allocation7 + $0x1], 1 }
0x16e1   :  { %3468 = vsyncpa [#allocation10], 1 }
0x16e2   :  { %3469 = vsyncpa [#allocation13], 1 }
0x16e3   :  { %3470 = vsyncpa [#allocation16], 1 }
0x16e4   :  { %3471 = vsyncpa [#allocation19], 1 }
0x16e5   :  { %3472 = vsyncpa [#allocation22], 1 }
0x16e6   :  { %3473 = vsyncpa [#allocation25], 1 }
0x16e7   :  { %3474 = vsyncpa [#allocation28], 1 }
0x16e8   :  { %3475 = vsyncpa [#allocation5], 1 }
0x16e9   :  { %3477 = vsyncpa [#allocation5 + $0x1], 1 }

</bundles_post_ra>
